<compile_context>
chip_gen: v7x
topology: tpu7x:2x2x1
jax: 0.10.0
libtpu: 0.0.40
codegen_flags: <defaults>
</compile_context>

<pallas_src>
import functools

import jax
import jax.numpy as jnp
from jax.experimental import pallas as pl
from jax.experimental.pallas import tpu as pltpu


# ----------------------------------------------------------------------------
# Tiled matmul + bias (+ optional ReLU) Pallas kernel (MXU, bf16 in / f32 acc).
# ----------------------------------------------------------------------------
def _round_up(x, m):
    return (x + m - 1) // m * m


def _pick_tk(kp):
    """Largest K tile (multiple of 128, <=1024) that divides the padded K."""
    nk = kp // 128
    for g in range(min(8, nk), 0, -1):
        if nk % g == 0:
            return 128 * g
    return 128


def _matmul_kernel(x_ref, w_ref, b_ref, o_ref, acc_ref, *, relu):
    @pl.when(pl.program_id(2) == 0)
    def _():
        acc_ref[...] = jnp.zeros_like(acc_ref)

    acc_ref[...] += jnp.dot(x_ref[...], w_ref[...],
                            preferred_element_type=jnp.float32)

    @pl.when(pl.program_id(2) == pl.num_programs(2) - 1)
    def _():
        out = acc_ref[...] + b_ref[...]          # (1, tn) bias broadcasts
        if relu:
            out = jnp.maximum(out, 0.0)
        o_ref[...] = out.astype(o_ref.dtype)


def _pad2(a, rows, cols):
    r, c = a.shape
    if r == rows and c == cols:
        return a
    return jnp.pad(a, ((0, rows - r), (0, cols - c)))


def matmul_bias(x, w, b, relu=False):
    """x: (M, K), w: (K, N), b: (N,)  ->  (M, N) f32.

    Tiled/pipelined Pallas matmul: bf16 operands, f32 accumulation, fused
    bias(+ReLU) epilogue.  Arbitrary M/N/K are zero-padded to tile multiples
    (zero rows/cols contribute nothing and are sliced off afterwards).
    """
    M, K = x.shape
    N = w.shape[1]

    Kp = _round_up(K, 128)
    tk = _pick_tk(Kp)
    tm = min(512, _round_up(M, 8))
    Mp = _round_up(M, tm)
    tn = min(256, _round_up(N, 128))
    Np = _round_up(N, tn)

    xp = _pad2(x, Mp, Kp).astype(jnp.bfloat16)
    wp = _pad2(w, Kp, Np).astype(jnp.bfloat16)
    bp = _pad2(b.reshape(1, N).astype(jnp.float32), 1, Np)

    grid = (Mp // tm, Np // tn, Kp // tk)
    out = pl.pallas_call(
        functools.partial(_matmul_kernel, relu=relu),
        out_shape=jax.ShapeDtypeStruct((Mp, Np), jnp.float32),
        grid_spec=pltpu.PrefetchScalarGridSpec(
            num_scalar_prefetch=0,
            grid=grid,
            in_specs=[pl.BlockSpec((tm, tk), lambda i, j, k: (i, k)),
                      pl.BlockSpec((tk, tn), lambda i, j, k: (k, j)),
                      pl.BlockSpec((1, tn), lambda i, j, k: (0, j))],
            out_specs=pl.BlockSpec((tm, tn), lambda i, j, k: (i, j)),
            scratch_shapes=[pltpu.VMEM((tm, tn), jnp.float32)]),
        compiler_params=pltpu.CompilerParams(
            dimension_semantics=("parallel", "parallel", "arbitrary"),
            vmem_limit_bytes=32 * 1024 * 1024),
    )(xp, wp, bp)

    if Mp != M or Np != N:
        out = out[:M, :N]
    return out


# ----------------------------------------------------------------------------
# Conv2d 5x5, stride 2, padding 2 via im2col (bf16) + tiled Pallas matmul.
# ----------------------------------------------------------------------------
def conv5x5_s2(x, w, b, relu):
    """x: (N, H, W, Cin); w: (5, 5, Cin, Cout); b: (Cout,)."""
    n, h, wdt, cin = x.shape
    cout = w.shape[-1]
    ho = (h - 1) // 2 + 1
    wo = (wdt - 1) // 2 + 1
    # TODO(synk): fuse the im2col into the conv matmul kernel (phase-decomposed
    # 5x5 taps accumulated in a VMEM scratch) to avoid materializing the 25x
    # patch tensor in HBM; kept as JAX slicing glue here for lowering safety.
    # It is built in bf16 so the materialized bytes are halved vs f32.
    xp = jnp.pad(x.astype(jnp.bfloat16), ((0, 0), (2, 2), (2, 2), (0, 0)))
    patches = []
    for kh in range(5):
        for kw in range(5):
            patches.append(xp[:, kh:kh + 2 * ho - 1:2, kw:kw + 2 * wo - 1:2, :])
    pat = jnp.concatenate(patches, axis=-1)                 # (N, Ho, Wo, 25*Cin)
    pat2 = pat.reshape(n * ho * wo, 25 * cin)               # K padded to 128 in matmul_bias
    w2 = w.reshape(25 * cin, cout).astype(jnp.bfloat16)     # (kh, kw, cin) flatten order
    out = matmul_bias(pat2, w2, b, relu=relu)
    return out.reshape(n, ho, wo, cout)


def batchnorm_relu(x, gamma, beta, eps=1e-5):
    # PyTorch BatchNorm2d in (default) training mode: batch statistics over
    # (N, H, W) per channel, biased variance.  Small reduction -> plain JAX.
    # TODO(synk): fuse the normalize+ReLU (post-stats) into the adjacent matmul
    # epilogue to drop one activation round-trip per BN layer.
    mean = jnp.mean(x, axis=(0, 1, 2), keepdims=True)
    var = jnp.mean((x - mean) ** 2, axis=(0, 1, 2), keepdims=True)
    y = (x - mean) / jnp.sqrt(var + eps) * gamma + beta
    return jnp.maximum(y, 0.0)


def conv_block(x_nhwc, params):
    x = conv5x5_s2(x_nhwc, params["w1"], params["b1"], relu=True)
    x = conv5x5_s2(x, params["w2"], params["b2"], relu=False)
    x = batchnorm_relu(x, params["g2"], params["be2"])
    x = conv5x5_s2(x, params["w3"], params["b3"], relu=True)
    x = conv5x5_s2(x, params["w4"], params["b4"], relu=False)
    x = batchnorm_relu(x, params["g4"], params["be4"])
    return jnp.mean(x, axis=(1, 2))                          # (N, 256)


# ----------------------------------------------------------------------------
# CfC RNN (mode='default', lecun_tanh backbone, 1 backbone layer of 128 units,
# proj_size=n_actions).  Only the h-dependent recurrence runs in the kernel;
# input/output projections are hoisted into big matmuls outside.
# ----------------------------------------------------------------------------
def _cfc_kernel(xz_ref, h0_ref, whh_ref, whead_ref, bhead_ref,
                hseq_ref, hN_ref, h_scr, *, tc, hidden):
    step = pl.program_id(0)

    @pl.when(step == 0)
    def _():
        h_scr[...] = h0_ref[...]

    h = h_scr[...]                                           # (B, H) f32
    whh = whh_ref[...]                                       # (H, 128)
    whead = whead_ref[...]                                   # (128, 4H)
    bhead = bhead_ref[...]                                   # (1, 4H)

    for i in range(tc):                                      # unrolled Tc steps
        # backbone: precomputed (x @ Wx + b) + h @ Wh, then LeCun tanh
        z = xz_ref[i] + jnp.dot(h, whh, preferred_element_type=jnp.float32)
        bb = 1.7159 * jnp.tanh(0.666 * z)
        # fused ff1 | ff2 | time_a | time_b heads in one MXU pass
        heads = jnp.dot(bb, whead, preferred_element_type=jnp.float32) + bhead
        ff1 = jnp.tanh(heads[:, :hidden])
        ff2 = jnp.tanh(heads[:, hidden:2 * hidden])
        t_a = heads[:, 2 * hidden:3 * hidden]
        t_b = heads[:, 3 * hidden:4 * hidden]
        t_interp = jax.nn.sigmoid(t_a + t_b)                 # ts = 1.0 (timespans=None)
        h = ff1 * (1.0 - t_interp) + t_interp * ff2
        hseq_ref[i] = h

    h_scr[...] = h

    @pl.when(step == pl.num_programs(0) - 1)
    def _():
        hN_ref[...] = h


def cfc_forward(x_seq, h0, p, n_actions):
    """x_seq: (B, T, 256), h0: (B, H) -> (out (B, T, A), h_final (B, H))."""
    b, t, d = x_seq.shape
    hidden = h0.shape[1]
    backbone = p["wbb_x"].shape[1]

    # Hoisted input projection: one well-shaped matmul over all timesteps.
    x_tb = jnp.transpose(x_seq, (1, 0, 2)).reshape(t * b, d)  # time-major
    xz = matmul_bias(x_tb, p["wbb_x"], p["bbb"]).reshape(t, b, backbone)

    # Fused head weights: (128, 4H), biases (1, 4H).
    whead = jnp.concatenate([p["wff1"], p["wff2"], p["wta"], p["wtb"]], axis=1)
    bhead = jnp.concatenate([p["bff1"], p["bff2"], p["bta"], p["btb"]]
                            ).reshape(1, 4 * hidden)

    # Block the time axis (Tc steps per grid iteration).
    tc = t if t <= 8 else max(g for g in range(1, 9) if t % g == 0)
    grid_t = t // tc

    hseq, h_final = pl.pallas_call(
        functools.partial(_cfc_kernel, tc=tc, hidden=hidden),
        out_shape=(jax.ShapeDtypeStruct((t, b, hidden), jnp.float32),
                   jax.ShapeDtypeStruct((b, hidden), jnp.float32)),
        grid_spec=pltpu.PrefetchScalarGridSpec(
            num_scalar_prefetch=0,
            grid=(grid_t,),
            in_specs=[pl.BlockSpec((tc, b, backbone), lambda i: (i, 0, 0)),
                      pl.BlockSpec((b, hidden), lambda i: (0, 0)),
                      pl.BlockSpec((hidden, backbone), lambda i: (0, 0)),
                      pl.BlockSpec((backbone, 4 * hidden), lambda i: (0, 0)),
                      pl.BlockSpec((1, 4 * hidden), lambda i: (0, 0))],
            out_specs=[pl.BlockSpec((tc, b, hidden), lambda i: (i, 0, 0)),
                       pl.BlockSpec((b, hidden), lambda i: (0, 0))],
            scratch_shapes=[pltpu.VMEM((b, hidden), jnp.float32)]),
        compiler_params=pltpu.CompilerParams(
            dimension_semantics=("arbitrary",),
            vmem_limit_bytes=32 * 1024 * 1024),
    )(xz, h0, p["wbb_h"], whead, bhead)

    # Hoisted output projection: one lane-dense matmul over all timesteps.
    out = matmul_bias(hseq.reshape(t * b, hidden), p["wfc"], p["bfc"])
    out = out.reshape(t, b, n_actions).transpose(1, 0, 2)    # (B, T, A)
    return out, h_final


# ----------------------------------------------------------------------------
# Parameter construction (deterministic, synthetic) + full ConvCfC forward.
# ----------------------------------------------------------------------------
def _xavier(key, shape):
    fan_in, fan_out = shape[-2] if len(shape) >= 2 else shape[0], shape[-1]
    if len(shape) == 4:   # (kh, kw, cin, cout)
        fan_in = shape[0] * shape[1] * shape[2]
        fan_out = shape[0] * shape[1] * shape[3]
    limit = (6.0 / (fan_in + fan_out)) ** 0.5
    return jax.random.uniform(key, shape, jnp.float32, -limit, limit)


def make_params(key, n_actions, hidden=64, feat=256, backbone=128):
    ks = jax.random.split(key, 16)
    return {
        # conv block
        "w1": _xavier(ks[0], (5, 5, 4, 64)),    "b1": jnp.zeros((64,), jnp.float32),
        "w2": _xavier(ks[1], (5, 5, 64, 128)),  "b2": jnp.zeros((128,), jnp.float32),
        "g2": jnp.ones((128,), jnp.float32),    "be2": jnp.zeros((128,), jnp.float32),
        "w3": _xavier(ks[2], (5, 5, 128, 128)), "b3": jnp.zeros((128,), jnp.float32),
        "w4": _xavier(ks[3], (5, 5, 128, 256)), "b4": jnp.zeros((256,), jnp.float32),
        "g4": jnp.ones((256,), jnp.float32),    "be4": jnp.zeros((256,), jnp.float32),
        # CfC cell (input 256, hidden 64, backbone 128)
        "wbb_x": _xavier(ks[4], (feat, backbone)),
        "wbb_h": _xavier(ks[5], (hidden, backbone)),
        "bbb":   jnp.zeros((backbone,), jnp.float32),
        "wff1":  _xavier(ks[6], (backbone, hidden)), "bff1": jnp.zeros((hidden,), jnp.float32),
        "wff2":  _xavier(ks[7], (backbone, hidden)), "bff2": jnp.zeros((hidden,), jnp.float32),
        "wta":   _xavier(ks[8], (backbone, hidden)), "bta":  jnp.zeros((hidden,), jnp.float32),
        "wtb":   _xavier(ks[9], (backbone, hidden)), "btb":  jnp.zeros((hidden,), jnp.float32),
        # output projection (proj_size = n_actions)
        "wfc":   _xavier(ks[10], (hidden, n_actions)),
        "bfc":   jnp.zeros((n_actions,), jnp.float32),
    }


def conv_cfc_forward(x_btchw, params, n_actions, hidden=64):
    """x: (B, T, 4, H, W) float32 (PyTorch NCHW frames) -> ((B, T, A), (B, H))."""
    b, t, c, h, w = x_btchw.shape
    frames = x_btchw.reshape(b * t, c, h, w)
    frames = jnp.transpose(frames, (0, 2, 3, 1))             # NCHW -> NHWC
    feats = conv_block(frames, params)                       # (B*T, 256)
    feats = feats.reshape(b, t, -1)
    h0 = jnp.zeros((b, hidden), jnp.float32)                 # hx=None -> zeros
    return cfc_forward(feats, h0, params, n_actions)


if __name__ == "__main__":
    B, T, C, H, W = 2, 4, 4, 16, 16
    N_ACTIONS = 8

    key = jax.random.PRNGKey(0)
    kx, kp = jax.random.split(key)
    x = jax.random.normal(kx, (B, T, C, H, W), jnp.float32)
    params = make_params(kp, N_ACTIONS)

    fwd = jax.jit(functools.partial(conv_cfc_forward, n_actions=N_ACTIONS))
    out, hx = fwd(x, params)
    jax.block_until_ready((out, hx))

    assert out.shape == (B, T, N_ACTIONS), out.shape
    assert hx.shape == (B, 64), hx.shape
    assert bool(jnp.all(jnp.isfinite(out))) and bool(jnp.all(jnp.isfinite(hx)))
    print("KERNEL_OK")
</pallas_src>

<mosaic_0001>
module attributes {stable_mosaic.version = 11 : i64} {
  func.func @_matmul_kernel(%arg0: i32, %arg1: i32, %arg2: i32, %arg3: memref<512x128xbf16, #tpu.memory_space<vmem>>, %arg4: memref<128x128xbf16, #tpu.memory_space<vmem>>, %arg5: memref<1x128xf32, #tpu.memory_space<vmem>>, %arg6: memref<512x128xf32, #tpu.memory_space<vmem>>, %arg7: memref<512x128xf32, #tpu.memory_space<vmem>>) attributes {dimension_semantics = [#tpu.dimension_semantics<parallel>, #tpu.dimension_semantics<parallel>, #tpu.dimension_semantics<arbitrary>], iteration_bounds = array<i64: 1, 1, 1>, scalar_prefetch = 0 : i64, scratch_operands = 1 : i64, tpu.core_type = #tpu.core_type<tc>, window_params = [{transform_indices = @transform_0, window_bounds = array<i64: 512, 128>}, {transform_indices = @transform_1, window_bounds = array<i64: 128, 128>}, {transform_indices = @transform_2, window_bounds = array<i64: 1, 128>}, {transform_indices = @transform_3, window_bounds = array<i64: 512, 128>}]} {
    %c0_i32 = arith.constant 0 : i32
    %0 = arith.cmpi eq, %arg2, %c0_i32 : i32
    %1 = arith.extui %0 : i1 to i32
    %c0_i32_0 = arith.constant 0 : i32
    %2 = arith.cmpi ne, %1, %c0_i32_0 : i32
    scf.if %2 {
      %cst_10 = arith.constant 0.000000e+00 : f32
      %12 = vector.broadcast %cst_10 : f32 to vector<512x128xf32>
      %c0_11 = arith.constant 0 : index
      %c0_12 = arith.constant 0 : index
      %13 = vector.load %arg7[%c0_11, %c0_12] : memref<512x128xf32, #tpu.memory_space<vmem>>, vector<512x128xf32>
      tpu.vector_store %arg7[%c0_11, %c0_12], %12 {strides = array<i32>} : memref<512x128xf32, #tpu.memory_space<vmem>>, vector<512x128xf32>,
    } else {
    }
    %c0 = arith.constant 0 : index
    %c0_1 = arith.constant 0 : index
    %3 = vector.load %arg7[%c0, %c0_1] : memref<512x128xf32, #tpu.memory_space<vmem>>, vector<512x128xf32>
    %c0_2 = arith.constant 0 : index
    %c0_3 = arith.constant 0 : index
    %4 = vector.load %arg3[%c0_2, %c0_3] : memref<512x128xbf16, #tpu.memory_space<vmem>>, vector<512x128xbf16>
    %c0_4 = arith.constant 0 : index
    %c0_5 = arith.constant 0 : index
    %5 = vector.load %arg4[%c0_4, %c0_5] : memref<128x128xbf16, #tpu.memory_space<vmem>>, vector<128x128xbf16>
    %cst = arith.constant dense<0.000000e+00> : vector<512x128xf32>
    %6 = tpu.matmul %4, %5, %cst {dimension_numbers = #tpu.dot_dimension_numbers<[1], [0], [0], [1], [0, 0, 1, 1], [], []>} : vector<512x128xbf16>, vector<128x128xbf16>, vector<512x128xf32> -> vector<512x128xf32>
    %7 = arith.addf %3, %6 : vector<512x128xf32>
    %c0_6 = arith.constant 0 : index
    %c0_7 = arith.constant 0 : index
    %8 = vector.load %arg7[%c0_6, %c0_7] : memref<512x128xf32, #tpu.memory_space<vmem>>, vector<512x128xf32>
    tpu.vector_store %arg7[%c0_6, %c0_7], %7 {strides = array<i32>} : memref<512x128xf32, #tpu.memory_space<vmem>>, vector<512x128xf32>,
    %c0_i32_8 = arith.constant 0 : i32
    %9 = arith.cmpi eq, %arg2, %c0_i32_8 : i32
    %10 = arith.extui %9 : i1 to i32
    %c0_i32_9 = arith.constant 0 : i32
    %11 = arith.cmpi ne, %10, %c0_i32_9 : i32
    scf.if %11 {
      %c0_10 = arith.constant 0 : index
      %c0_11 = arith.constant 0 : index
      %12 = vector.load %arg7[%c0_10, %c0_11] : memref<512x128xf32, #tpu.memory_space<vmem>>, vector<512x128xf32>
      %c0_12 = arith.constant 0 : index
      %c0_13 = arith.constant 0 : index
      %13 = vector.load %arg5[%c0_12, %c0_13] : memref<1x128xf32, #tpu.memory_space<vmem>>, vector<1x128xf32>
      %14 = vector.broadcast %13 : vector<1x128xf32> to vector<512x128xf32>
      %15 = arith.addf %12, %14 : vector<512x128xf32>
      %cst_14 = arith.constant 0.000000e+00 : f32
      %16 = vector.broadcast %cst_14 : f32 to vector<512x128xf32>
      %17 = arith.maximumf %15, %16 : vector<512x128xf32>
      %c0_15 = arith.constant 0 : index
      %c0_16 = arith.constant 0 : index
      %18 = vector.load %arg6[%c0_15, %c0_16] : memref<512x128xf32, #tpu.memory_space<vmem>>, vector<512x128xf32>
      tpu.vector_store %arg6[%c0_15, %c0_16], %17 {strides = array<i32>} : memref<512x128xf32, #tpu.memory_space<vmem>>, vector<512x128xf32>,
    } else {
    }
    return
  }
  func.func @transform_0(%arg0: i32, %arg1: i32, %arg2: i32) -> (i32, i32) {
    %c0_i32 = arith.constant 0 : i32
    return %arg0, %arg2 : i32, i32
  }
  func.func @transform_1(%arg0: i32, %arg1: i32, %arg2: i32) -> (i32, i32) {
    %c0_i32 = arith.constant 0 : i32
    return %arg2, %arg1 : i32, i32
  }
  func.func @transform_2(%arg0: i32, %arg1: i32, %arg2: i32) -> (i32, i32) {
    %c0_i32 = arith.constant 0 : i32
    %c0_i32_0 = arith.constant 0 : i32
    return %c0_i32, %arg1 : i32, i32
  }
  func.func @transform_3(%arg0: i32, %arg1: i32, %arg2: i32) -> (i32, i32) {
    %c0_i32 = arith.constant 0 : i32
    return %arg0, %arg1 : i32, i32
  }
}

module attributes {stable_mosaic.version = 11 : i64} {
  func.func @_matmul_kernel(%arg0: i32, %arg1: i32, %arg2: i32, %arg3: memref<128x128xbf16, #tpu.memory_space<vmem>>, %arg4: memref<128x128xbf16, #tpu.memory_space<vmem>>, %arg5: memref<1x128xf32, #tpu.memory_space<vmem>>, %arg6: memref<128x128xf32, #tpu.memory_space<vmem>>, %arg7: memref<128x128xf32, #tpu.memory_space<vmem>>) attributes {dimension_semantics = [#tpu.dimension_semantics<parallel>, #tpu.dimension_semantics<parallel>, #tpu.dimension_semantics<arbitrary>], iteration_bounds = array<i64: 1, 1, 13>, scalar_prefetch = 0 : i64, scratch_operands = 1 : i64, tpu.core_type = #tpu.core_type<tc>, window_params = [{transform_indices = @transform_0, window_bounds = array<i64: 128, 128>}, {transform_indices = @transform_1, window_bounds = array<i64: 128, 128>}, {transform_indices = @transform_2, window_bounds = array<i64: 1, 128>}, {transform_indices = @transform_3, window_bounds = array<i64: 128, 128>}]} {
    %c0_i32 = arith.constant 0 : i32
    %0 = arith.cmpi eq, %arg2, %c0_i32 : i32
    %1 = arith.extui %0 : i1 to i32
    %c0_i32_0 = arith.constant 0 : i32
    %2 = arith.cmpi ne, %1, %c0_i32_0 : i32
    scf.if %2 {
      %cst_9 = arith.constant 0.000000e+00 : f32
      %12 = vector.broadcast %cst_9 : f32 to vector<128x128xf32>
      %c0_10 = arith.constant 0 : index
      %c0_11 = arith.constant 0 : index
      %13 = vector.load %arg7[%c0_10, %c0_11] : memref<128x128xf32, #tpu.memory_space<vmem>>, vector<128x128xf32>
      tpu.vector_store %arg7[%c0_10, %c0_11], %12 {strides = array<i32>} : memref<128x128xf32, #tpu.memory_space<vmem>>, vector<128x128xf32>,
    } else {
    }
    %c0 = arith.constant 0 : index
    %c0_1 = arith.constant 0 : index
    %3 = vector.load %arg7[%c0, %c0_1] : memref<128x128xf32, #tpu.memory_space<vmem>>, vector<128x128xf32>
    %c0_2 = arith.constant 0 : index
    %c0_3 = arith.constant 0 : index
    %4 = vector.load %arg3[%c0_2, %c0_3] : memref<128x128xbf16, #tpu.memory_space<vmem>>, vector<128x128xbf16>
    %c0_4 = arith.constant 0 : index
    %c0_5 = arith.constant 0 : index
    %5 = vector.load %arg4[%c0_4, %c0_5] : memref<128x128xbf16, #tpu.memory_space<vmem>>, vector<128x128xbf16>
    %cst = arith.constant dense<0.000000e+00> : vector<128x128xf32>
    %6 = tpu.matmul %4, %5, %cst {dimension_numbers = #tpu.dot_dimension_numbers<[1], [0], [0], [1], [0, 0, 1, 1], [], []>} : vector<128x128xbf16>, vector<128x128xbf16>, vector<128x128xf32> -> vector<128x128xf32>
    %7 = arith.addf %3, %6 : vector<128x128xf32>
    %c0_6 = arith.constant 0 : index
    %c0_7 = arith.constant 0 : index
    %8 = vector.load %arg7[%c0_6, %c0_7] : memref<128x128xf32, #tpu.memory_space<vmem>>, vector<128x128xf32>
    tpu.vector_store %arg7[%c0_6, %c0_7], %7 {strides = array<i32>} : memref<128x128xf32, #tpu.memory_space<vmem>>, vector<128x128xf32>,
    %c12_i32 = arith.constant 12 : i32
    %9 = arith.cmpi eq, %arg2, %c12_i32 : i32
    %10 = arith.extui %9 : i1 to i32
    %c0_i32_8 = arith.constant 0 : i32
    %11 = arith.cmpi ne, %10, %c0_i32_8 : i32
    scf.if %11 {
      %c0_9 = arith.constant 0 : index
      %c0_10 = arith.constant 0 : index
      %12 = vector.load %arg7[%c0_9, %c0_10] : memref<128x128xf32, #tpu.memory_space<vmem>>, vector<128x128xf32>
      %c0_11 = arith.constant 0 : index
      %c0_12 = arith.constant 0 : index
      %13 = vector.load %arg5[%c0_11, %c0_12] : memref<1x128xf32, #tpu.memory_space<vmem>>, vector<1x128xf32>
      %14 = vector.broadcast %13 : vector<1x128xf32> to vector<128x128xf32>
      %15 = arith.addf %12, %14 : vector<128x128xf32>
      %c0_13 = arith.constant 0 : index
      %c0_14 = arith.constant 0 : index
      %16 = vector.load %arg6[%c0_13, %c0_14] : memref<128x128xf32, #tpu.memory_space<vmem>>, vector<128x128xf32>
      tpu.vector_store %arg6[%c0_13, %c0_14], %15 {strides = array<i32>} : memref<128x128xf32, #tpu.memory_space<vmem>>, vector<128x128xf32>,
    } else {
    }
    return
  }
  func.func @transform_0(%arg0: i32, %arg1: i32, %arg2: i32) -> (i32, i32) {
    %c0_i32 = arith.constant 0 : i32
    return %arg0, %arg2 : i32, i32
  }
  func.func @transform_1(%arg0: i32, %arg1: i32, %arg2: i32) -> (i32, i32) {
    %c0_i32 = arith.constant 0 : i32
    return %arg2, %arg1 : i32, i32
  }
  func.func @transform_2(%arg0: i32, %arg1: i32, %arg2: i32) -> (i32, i32) {
    %c0_i32 = arith.constant 0 : i32
    %c0_i32_0 = arith.constant 0 : i32
    return %c0_i32, %arg1 : i32, i32
  }
  func.func @transform_3(%arg0: i32, %arg1: i32, %arg2: i32) -> (i32, i32) {
    %c0_i32 = arith.constant 0 : i32
    return %arg0, %arg1 : i32, i32
  }
}

module attributes {stable_mosaic.version = 11 : i64} {
  func.func @_matmul_kernel(%arg0: i32, %arg1: i32, %arg2: i32, %arg3: memref<32x640xbf16, #tpu.memory_space<vmem>>, %arg4: memref<640x128xbf16, #tpu.memory_space<vmem>>, %arg5: memref<1x128xf32, #tpu.memory_space<vmem>>, %arg6: memref<32x128xf32, #tpu.memory_space<vmem>>, %arg7: memref<32x128xf32, #tpu.memory_space<vmem>>) attributes {dimension_semantics = [#tpu.dimension_semantics<parallel>, #tpu.dimension_semantics<parallel>, #tpu.dimension_semantics<arbitrary>], iteration_bounds = array<i64: 1, 1, 5>, scalar_prefetch = 0 : i64, scratch_operands = 1 : i64, tpu.core_type = #tpu.core_type<tc>, window_params = [{transform_indices = @transform_0, window_bounds = array<i64: 32, 640>}, {transform_indices = @transform_1, window_bounds = array<i64: 640, 128>}, {transform_indices = @transform_2, window_bounds = array<i64: 1, 128>}, {transform_indices = @transform_3, window_bounds = array<i64: 32, 128>}]} {
    %c0_i32 = arith.constant 0 : i32
    %0 = arith.cmpi eq, %arg2, %c0_i32 : i32
    %1 = arith.extui %0 : i1 to i32
    %c0_i32_0 = arith.constant 0 : i32
    %2 = arith.cmpi ne, %1, %c0_i32_0 : i32
    scf.if %2 {
      %cst_9 = arith.constant 0.000000e+00 : f32
      %12 = vector.broadcast %cst_9 : f32 to vector<32x128xf32>
      %c0_10 = arith.constant 0 : index
      %c0_11 = arith.constant 0 : index
      %13 = vector.load %arg7[%c0_10, %c0_11] : memref<32x128xf32, #tpu.memory_space<vmem>>, vector<32x128xf32>
      tpu.vector_store %arg7[%c0_10, %c0_11], %12 {strides = array<i32>} : memref<32x128xf32, #tpu.memory_space<vmem>>, vector<32x128xf32>,
    } else {
    }
    %c0 = arith.constant 0 : index
    %c0_1 = arith.constant 0 : index
    %3 = vector.load %arg7[%c0, %c0_1] : memref<32x128xf32, #tpu.memory_space<vmem>>, vector<32x128xf32>
    %c0_2 = arith.constant 0 : index
    %c0_3 = arith.constant 0 : index
    %4 = vector.load %arg3[%c0_2, %c0_3] : memref<32x640xbf16, #tpu.memory_space<vmem>>, vector<32x640xbf16>
    %c0_4 = arith.constant 0 : index
    %c0_5 = arith.constant 0 : index
    %5 = vector.load %arg4[%c0_4, %c0_5] : memref<640x128xbf16, #tpu.memory_space<vmem>>, vector<640x128xbf16>
    %cst = arith.constant dense<0.000000e+00> : vector<32x128xf32>
    %6 = tpu.matmul %4, %5, %cst {dimension_numbers = #tpu.dot_dimension_numbers<[1], [0], [0], [1], [0, 0, 1, 1], [], []>} : vector<32x640xbf16>, vector<640x128xbf16>, vector<32x128xf32> -> vector<32x128xf32>
    %7 = arith.addf %3, %6 : vector<32x128xf32>
    %c0_6 = arith.constant 0 : index
    %c0_7 = arith.constant 0 : index
    %8 = vector.load %arg7[%c0_6, %c0_7] : memref<32x128xf32, #tpu.memory_space<vmem>>, vector<32x128xf32>
    tpu.vector_store %arg7[%c0_6, %c0_7], %7 {strides = array<i32>} : memref<32x128xf32, #tpu.memory_space<vmem>>, vector<32x128xf32>,
    %c4_i32 = arith.constant 4 : i32
    %9 = arith.cmpi eq, %arg2, %c4_i32 : i32
    %10 = arith.extui %9 : i1 to i32
    %c0_i32_8 = arith.constant 0 : i32
    %11 = arith.cmpi ne, %10, %c0_i32_8 : i32
    scf.if %11 {
      %c0_9 = arith.constant 0 : index
      %c0_10 = arith.constant 0 : index
      %12 = vector.load %arg7[%c0_9, %c0_10] : memref<32x128xf32, #tpu.memory_space<vmem>>, vector<32x128xf32>
      %c0_11 = arith.constant 0 : index
      %c0_12 = arith.constant 0 : index
      %13 = vector.load %arg5[%c0_11, %c0_12] : memref<1x128xf32, #tpu.memory_space<vmem>>, vector<1x128xf32>
      %14 = vector.broadcast %13 : vector<1x128xf32> to vector<32x128xf32>
      %15 = arith.addf %12, %14 : vector<32x128xf32>
      %cst_13 = arith.constant 0.000000e+00 : f32
      %16 = vector.broadcast %cst_13 : f32 to vector<32x128xf32>
      %17 = arith.maximumf %15, %16 : vector<32x128xf32>
      %c0_14 = arith.constant 0 : index
      %c0_15 = arith.constant 0 : index
      %18 = vector.load %arg6[%c0_14, %c0_15] : memref<32x128xf32, #tpu.memory_space<vmem>>, vector<32x128xf32>
      tpu.vector_store %arg6[%c0_14, %c0_15], %17 {strides = array<i32>} : memref<32x128xf32, #tpu.memory_space<vmem>>, vector<32x128xf32>,
    } else {
    }
    return
  }
  func.func @transform_0(%arg0: i32, %arg1: i32, %arg2: i32) -> (i32, i32) {
    %c0_i32 = arith.constant 0 : i32
    return %arg0, %arg2 : i32, i32
  }
  func.func @transform_1(%arg0: i32, %arg1: i32, %arg2: i32) -> (i32, i32) {
    %c0_i32 = arith.constant 0 : i32
    return %arg2, %arg1 : i32, i32
  }
  func.func @transform_2(%arg0: i32, %arg1: i32, %arg2: i32) -> (i32, i32) {
    %c0_i32 = arith.constant 0 : i32
    %c0_i32_0 = arith.constant 0 : i32
    return %c0_i32, %arg1 : i32, i32
  }
  func.func @transform_3(%arg0: i32, %arg1: i32, %arg2: i32) -> (i32, i32) {
    %c0_i32 = arith.constant 0 : i32
    return %arg0, %arg1 : i32, i32
  }
}

module attributes {stable_mosaic.version = 11 : i64} {
  func.func @_matmul_kernel(%arg0: i32, %arg1: i32, %arg2: i32, %arg3: memref<8x640xbf16, #tpu.memory_space<vmem>>, %arg4: memref<640x256xbf16, #tpu.memory_space<vmem>>, %arg5: memref<1x256xf32, #tpu.memory_space<vmem>>, %arg6: memref<8x256xf32, #tpu.memory_space<vmem>>, %arg7: memref<8x256xf32, #tpu.memory_space<vmem>>) attributes {dimension_semantics = [#tpu.dimension_semantics<parallel>, #tpu.dimension_semantics<parallel>, #tpu.dimension_semantics<arbitrary>], iteration_bounds = array<i64: 1, 1, 5>, scalar_prefetch = 0 : i64, scratch_operands = 1 : i64, tpu.core_type = #tpu.core_type<tc>, window_params = [{transform_indices = @transform_0, window_bounds = array<i64: 8, 640>}, {transform_indices = @transform_1, window_bounds = array<i64: 640, 256>}, {transform_indices = @transform_2, window_bounds = array<i64: 1, 256>}, {transform_indices = @transform_3, window_bounds = array<i64: 8, 256>}]} {
    %c0_i32 = arith.constant 0 : i32
    %0 = arith.cmpi eq, %arg2, %c0_i32 : i32
    %1 = arith.extui %0 : i1 to i32
    %c0_i32_0 = arith.constant 0 : i32
    %2 = arith.cmpi ne, %1, %c0_i32_0 : i32
    scf.if %2 {
      %cst_9 = arith.constant 0.000000e+00 : f32
      %12 = vector.broadcast %cst_9 : f32 to vector<8x256xf32>
      %c0_10 = arith.constant 0 : index
      %c0_11 = arith.constant 0 : index
      %13 = vector.load %arg7[%c0_10, %c0_11] : memref<8x256xf32, #tpu.memory_space<vmem>>, vector<8x256xf32>
      tpu.vector_store %arg7[%c0_10, %c0_11], %12 {strides = array<i32>} : memref<8x256xf32, #tpu.memory_space<vmem>>, vector<8x256xf32>,
    } else {
    }
    %c0 = arith.constant 0 : index
    %c0_1 = arith.constant 0 : index
    %3 = vector.load %arg7[%c0, %c0_1] : memref<8x256xf32, #tpu.memory_space<vmem>>, vector<8x256xf32>
    %c0_2 = arith.constant 0 : index
    %c0_3 = arith.constant 0 : index
    %4 = vector.load %arg3[%c0_2, %c0_3] : memref<8x640xbf16, #tpu.memory_space<vmem>>, vector<8x640xbf16>
    %c0_4 = arith.constant 0 : index
    %c0_5 = arith.constant 0 : index
    %5 = vector.load %arg4[%c0_4, %c0_5] : memref<640x256xbf16, #tpu.memory_space<vmem>>, vector<640x256xbf16>
    %cst = arith.constant dense<0.000000e+00> : vector<8x256xf32>
    %6 = tpu.matmul %4, %5, %cst {dimension_numbers = #tpu.dot_dimension_numbers<[1], [0], [0], [1], [0, 0, 1, 1], [], []>} : vector<8x640xbf16>, vector<640x256xbf16>, vector<8x256xf32> -> vector<8x256xf32>
    %7 = arith.addf %3, %6 : vector<8x256xf32>
    %c0_6 = arith.constant 0 : index
    %c0_7 = arith.constant 0 : index
    %8 = vector.load %arg7[%c0_6, %c0_7] : memref<8x256xf32, #tpu.memory_space<vmem>>, vector<8x256xf32>
    tpu.vector_store %arg7[%c0_6, %c0_7], %7 {strides = array<i32>} : memref<8x256xf32, #tpu.memory_space<vmem>>, vector<8x256xf32>,
    %c4_i32 = arith.constant 4 : i32
    %9 = arith.cmpi eq, %arg2, %c4_i32 : i32
    %10 = arith.extui %9 : i1 to i32
    %c0_i32_8 = arith.constant 0 : i32
    %11 = arith.cmpi ne, %10, %c0_i32_8 : i32
    scf.if %11 {
      %c0_9 = arith.constant 0 : index
      %c0_10 = arith.constant 0 : index
      %12 = vector.load %arg7[%c0_9, %c0_10] : memref<8x256xf32, #tpu.memory_space<vmem>>, vector<8x256xf32>
      %c0_11 = arith.constant 0 : index
      %c0_12 = arith.constant 0 : index
      %13 = vector.load %arg5[%c0_11, %c0_12] : memref<1x256xf32, #tpu.memory_space<vmem>>, vector<1x256xf32>
      %14 = vector.broadcast %13 : vector<1x256xf32> to vector<8x256xf32>
      %15 = arith.addf %12, %14 : vector<8x256xf32>
      %c0_13 = arith.constant 0 : index
      %c0_14 = arith.constant 0 : index
      %16 = vector.load %arg6[%c0_13, %c0_14] : memref<8x256xf32, #tpu.memory_space<vmem>>, vector<8x256xf32>
      tpu.vector_store %arg6[%c0_13, %c0_14], %15 {strides = array<i32>} : memref<8x256xf32, #tpu.memory_space<vmem>>, vector<8x256xf32>,
    } else {
    }
    return
  }
  func.func @transform_0(%arg0: i32, %arg1: i32, %arg2: i32) -> (i32, i32) {
    %c0_i32 = arith.constant 0 : i32
    return %arg0, %arg2 : i32, i32
  }
  func.func @transform_1(%arg0: i32, %arg1: i32, %arg2: i32) -> (i32, i32) {
    %c0_i32 = arith.constant 0 : i32
    return %arg2, %arg1 : i32, i32
  }
  func.func @transform_2(%arg0: i32, %arg1: i32, %arg2: i32) -> (i32, i32) {
    %c0_i32 = arith.constant 0 : i32
    %c0_i32_0 = arith.constant 0 : i32
    return %c0_i32, %arg1 : i32, i32
  }
  func.func @transform_3(%arg0: i32, %arg1: i32, %arg2: i32) -> (i32, i32) {
    %c0_i32 = arith.constant 0 : i32
    return %arg0, %arg1 : i32, i32
  }
}

module attributes {stable_mosaic.version = 11 : i64} {
  func.func @_matmul_kernel(%arg0: i32, %arg1: i32, %arg2: i32, %arg3: memref<8x256xbf16, #tpu.memory_space<vmem>>, %arg4: memref<256x128xbf16, #tpu.memory_space<vmem>>, %arg5: memref<1x128xf32, #tpu.memory_space<vmem>>, %arg6: memref<8x128xf32, #tpu.memory_space<vmem>>, %arg7: memref<8x128xf32, #tpu.memory_space<vmem>>) attributes {dimension_semantics = [#tpu.dimension_semantics<parallel>, #tpu.dimension_semantics<parallel>, #tpu.dimension_semantics<arbitrary>], iteration_bounds = array<i64: 1, 1, 1>, scalar_prefetch = 0 : i64, scratch_operands = 1 : i64, tpu.core_type = #tpu.core_type<tc>, window_params = [{transform_indices = @transform_0, window_bounds = array<i64: 8, 256>}, {transform_indices = @transform_1, window_bounds = array<i64: 256, 128>}, {transform_indices = @transform_2, window_bounds = array<i64: 1, 128>}, {transform_indices = @transform_3, window_bounds = array<i64: 8, 128>}]} {
    %c0_i32 = arith.constant 0 : i32
    %0 = arith.cmpi eq, %arg2, %c0_i32 : i32
    %1 = arith.extui %0 : i1 to i32
    %c0_i32_0 = arith.constant 0 : i32
    %2 = arith.cmpi ne, %1, %c0_i32_0 : i32
    scf.if %2 {
      %cst_10 = arith.constant 0.000000e+00 : f32
      %12 = vector.broadcast %cst_10 : f32 to vector<8x128xf32>
      %c0_11 = arith.constant 0 : index
      %c0_12 = arith.constant 0 : index
      %13 = vector.load %arg7[%c0_11, %c0_12] : memref<8x128xf32, #tpu.memory_space<vmem>>, vector<8x128xf32>
      tpu.vector_store %arg7[%c0_11, %c0_12], %12 {strides = array<i32>} : memref<8x128xf32, #tpu.memory_space<vmem>>, vector<8x128xf32>,
    } else {
    }
    %c0 = arith.constant 0 : index
    %c0_1 = arith.constant 0 : index
    %3 = vector.load %arg7[%c0, %c0_1] : memref<8x128xf32, #tpu.memory_space<vmem>>, vector<8x128xf32>
    %c0_2 = arith.constant 0 : index
    %c0_3 = arith.constant 0 : index
    %4 = vector.load %arg3[%c0_2, %c0_3] : memref<8x256xbf16, #tpu.memory_space<vmem>>, vector<8x256xbf16>
    %c0_4 = arith.constant 0 : index
    %c0_5 = arith.constant 0 : index
    %5 = vector.load %arg4[%c0_4, %c0_5] : memref<256x128xbf16, #tpu.memory_space<vmem>>, vector<256x128xbf16>
    %cst = arith.constant dense<0.000000e+00> : vector<8x128xf32>
    %6 = tpu.matmul %4, %5, %cst {dimension_numbers = #tpu.dot_dimension_numbers<[1], [0], [0], [1], [0, 0, 1, 1], [], []>} : vector<8x256xbf16>, vector<256x128xbf16>, vector<8x128xf32> -> vector<8x128xf32>
    %7 = arith.addf %3, %6 : vector<8x128xf32>
    %c0_6 = arith.constant 0 : index
    %c0_7 = arith.constant 0 : index
    %8 = vector.load %arg7[%c0_6, %c0_7] : memref<8x128xf32, #tpu.memory_space<vmem>>, vector<8x128xf32>
    tpu.vector_store %arg7[%c0_6, %c0_7], %7 {strides = array<i32>} : memref<8x128xf32, #tpu.memory_space<vmem>>, vector<8x128xf32>,
    %c0_i32_8 = arith.constant 0 : i32
    %9 = arith.cmpi eq, %arg2, %c0_i32_8 : i32
    %10 = arith.extui %9 : i1 to i32
    %c0_i32_9 = arith.constant 0 : i32
    %11 = arith.cmpi ne, %10, %c0_i32_9 : i32
    scf.if %11 {
      %c0_10 = arith.constant 0 : index
      %c0_11 = arith.constant 0 : index
      %12 = vector.load %arg7[%c0_10, %c0_11] : memref<8x128xf32, #tpu.memory_space<vmem>>, vector<8x128xf32>
      %c0_12 = arith.constant 0 : index
      %c0_13 = arith.constant 0 : index
      %13 = vector.load %arg5[%c0_12, %c0_13] : memref<1x128xf32, #tpu.memory_space<vmem>>, vector<1x128xf32>
      %14 = vector.broadcast %13 : vector<1x128xf32> to vector<8x128xf32>
      %15 = arith.addf %12, %14 : vector<8x128xf32>
      %c0_14 = arith.constant 0 : index
      %c0_15 = arith.constant 0 : index
      %16 = vector.load %arg6[%c0_14, %c0_15] : memref<8x128xf32, #tpu.memory_space<vmem>>, vector<8x128xf32>
      tpu.vector_store %arg6[%c0_14, %c0_15], %15 {strides = array<i32>} : memref<8x128xf32, #tpu.memory_space<vmem>>, vector<8x128xf32>,
    } else {
    }
    return
  }
  func.func @transform_0(%arg0: i32, %arg1: i32, %arg2: i32) -> (i32, i32) {
    %c0_i32 = arith.constant 0 : i32
    return %arg0, %arg2 : i32, i32
  }
  func.func @transform_1(%arg0: i32, %arg1: i32, %arg2: i32) -> (i32, i32) {
    %c0_i32 = arith.constant 0 : i32
    return %arg2, %arg1 : i32, i32
  }
  func.func @transform_2(%arg0: i32, %arg1: i32, %arg2: i32) -> (i32, i32) {
    %c0_i32 = arith.constant 0 : i32
    %c0_i32_0 = arith.constant 0 : i32
    return %c0_i32, %arg1 : i32, i32
  }
  func.func @transform_3(%arg0: i32, %arg1: i32, %arg2: i32) -> (i32, i32) {
    %c0_i32 = arith.constant 0 : i32
    return %arg0, %arg1 : i32, i32
  }
}

module attributes {stable_mosaic.version = 11 : i64} {
  func.func @_cfc_kernel(%arg0: i32, %arg1: memref<4x2x128xf32, #tpu.memory_space<vmem>>, %arg2: memref<2x64xf32, #tpu.memory_space<vmem>>, %arg3: memref<64x128xf32, #tpu.memory_space<vmem>>, %arg4: memref<128x256xf32, #tpu.memory_space<vmem>>, %arg5: memref<1x256xf32, #tpu.memory_space<vmem>>, %arg6: memref<4x2x64xf32, #tpu.memory_space<vmem>>, %arg7: memref<2x64xf32, #tpu.memory_space<vmem>>, %arg8: memref<2x64xf32, #tpu.memory_space<vmem>>) attributes {dimension_semantics = [#tpu.dimension_semantics<arbitrary>], iteration_bounds = array<i64: 1>, scalar_prefetch = 0 : i64, scratch_operands = 1 : i64, tpu.core_type = #tpu.core_type<tc>, window_params = [{transform_indices = @transform_0, window_bounds = array<i64: 4, 2, 128>}, {pipeline_mode = #tpu.pipeline_mode<synchronous>, transform_indices = @transform_1, window_bounds = array<i64: 2, 64>}, {pipeline_mode = #tpu.pipeline_mode<synchronous>, transform_indices = @transform_2, window_bounds = array<i64: 64, 128>}, {pipeline_mode = #tpu.pipeline_mode<synchronous>, transform_indices = @transform_3, window_bounds = array<i64: 128, 256>}, {pipeline_mode = #tpu.pipeline_mode<synchronous>, transform_indices = @transform_4, window_bounds = array<i64: 1, 256>}, {transform_indices = @transform_5, window_bounds = array<i64: 4, 2, 64>}, {pipeline_mode = #tpu.pipeline_mode<synchronous>, transform_indices = @transform_6, window_bounds = array<i64: 2, 64>}]} {
    %c0_i32 = arith.constant 0 : i32
    %0 = arith.cmpi eq, %arg0, %c0_i32 : i32
    %1 = arith.extui %0 : i1 to i32
    %c0_i32_0 = arith.constant 0 : i32
    %2 = arith.cmpi ne, %1, %c0_i32_0 : i32
    scf.if %2 {
      %c0_56 = arith.constant 0 : index
      %c0_57 = arith.constant 0 : index
      %139 = vector.load %arg2[%c0_56, %c0_57] : memref<2x64xf32, #tpu.memory_space<vmem>>, vector<2x64xf32>
      %c0_58 = arith.constant 0 : index
      %c0_59 = arith.constant 0 : index
      %140 = vector.load %arg8[%c0_58, %c0_59] : memref<2x64xf32, #tpu.memory_space<vmem>>, vector<2x64xf32>
      tpu.vector_store %arg8[%c0_58, %c0_59], %139 {strides = array<i32>} : memref<2x64xf32, #tpu.memory_space<vmem>>, vector<2x64xf32>,
    } else {
    }
    %c0 = arith.constant 0 : index
    %c0_1 = arith.constant 0 : index
    %3 = vector.load %arg8[%c0, %c0_1] : memref<2x64xf32, #tpu.memory_space<vmem>>, vector<2x64xf32>
    %c0_2 = arith.constant 0 : index
    %c0_3 = arith.constant 0 : index
    %4 = vector.load %arg3[%c0_2, %c0_3] : memref<64x128xf32, #tpu.memory_space<vmem>>, vector<64x128xf32>
    %c0_4 = arith.constant 0 : index
    %c0_5 = arith.constant 0 : index
    %5 = vector.load %arg4[%c0_4, %c0_5] : memref<128x256xf32, #tpu.memory_space<vmem>>, vector<128x256xf32>
    %c0_6 = arith.constant 0 : index
    %c0_7 = arith.constant 0 : index
    %6 = vector.load %arg5[%c0_6, %c0_7] : memref<1x256xf32, #tpu.memory_space<vmem>>, vector<1x256xf32>
    %c0_8 = arith.constant 0 : index
    %c0_9 = arith.constant 0 : index
    %c0_10 = arith.constant 0 : index
    %7 = vector.load %arg1[%c0_8, %c0_9, %c0_10] : memref<4x2x128xf32, #tpu.memory_space<vmem>>, vector<1x2x128xf32>
    %8 = vector.shape_cast %7 : vector<1x2x128xf32> to vector<2x128xf32>
    %cst = arith.constant dense<0.000000e+00> : vector<2x128xf32>
    %9 = tpu.matmul %3, %4, %cst {dimension_numbers = #tpu.dot_dimension_numbers<[1], [0], [0], [1], [0, 0, 1, 1], [], []>} : vector<2x64xf32>, vector<64x128xf32>, vector<2x128xf32> -> vector<2x128xf32>
    %10 = arith.addf %8, %9 : vector<2x128xf32>
    %cst_11 = arith.constant 6.660000e-01 : f32
    %11 = vector.broadcast %cst_11 : f32 to vector<2x128xf32>
    %12 = arith.mulf %11, %10 : vector<2x128xf32>
    %13 = math.tanh %12 : vector<2x128xf32>
    %cst_12 = arith.constant 1.715900e+00 : f32
    %14 = vector.broadcast %cst_12 : f32 to vector<2x128xf32>
    %15 = arith.mulf %14, %13 : vector<2x128xf32>
    %cst_13 = arith.constant dense<0.000000e+00> : vector<2x256xf32>
    %16 = tpu.matmul %15, %5, %cst_13 {dimension_numbers = #tpu.dot_dimension_numbers<[1], [0], [0], [1], [0, 0, 1, 1], [], []>} : vector<2x128xf32>, vector<128x256xf32>, vector<2x256xf32> -> vector<2x256xf32>
    %17 = vector.broadcast %6 : vector<1x256xf32> to vector<2x256xf32>
    %18 = arith.addf %16, %17 : vector<2x256xf32>
    %19 = vector.extract_strided_slice %18 {offsets = [0, 0], sizes = [2, 64], strides = [1, 1]} : vector<2x256xf32> to vector<2x64xf32>
    %20 = math.tanh %19 : vector<2x64xf32>
    %21 = vector.extract_strided_slice %18 {offsets = [0, 64], sizes = [2, 64], strides = [1, 1]} : vector<2x256xf32> to vector<2x64xf32>
    %22 = math.tanh %21 : vector<2x64xf32>
    %23 = vector.extract_strided_slice %18 {offsets = [0, 128], sizes = [2, 64], strides = [1, 1]} : vector<2x256xf32> to vector<2x64xf32>
    %24 = vector.extract_strided_slice %18 {offsets = [0, 192], sizes = [2, 64], strides = [1, 1]} : vector<2x256xf32> to vector<2x64xf32>
    %25 = arith.addf %23, %24 : vector<2x64xf32>
    %26 = arith.negf %25 : vector<2x64xf32>
    %27 = math.exp %26 : vector<2x64xf32>
    %cst_14 = arith.constant 1.000000e+00 : f32
    %28 = vector.broadcast %cst_14 : f32 to vector<2x64xf32>
    %29 = arith.addf %28, %27 : vector<2x64xf32>
    %30 = arith.divf %28, %29 : vector<2x64xf32>
    %cst_15 = arith.constant 1.000000e+00 : f32
    %31 = vector.broadcast %cst_15 : f32 to vector<2x64xf32>
    %32 = arith.subf %31, %30 : vector<2x64xf32>
    %33 = arith.mulf %20, %32 : vector<2x64xf32>
    %34 = arith.mulf %30, %22 : vector<2x64xf32>
    %35 = arith.addf %33, %34 : vector<2x64xf32>
    %c0_16 = arith.constant 0 : index
    %c0_17 = arith.constant 0 : index
    %c0_18 = arith.constant 0 : index
    %36 = vector.load %arg6[%c0_16, %c0_17, %c0_18] : memref<4x2x64xf32, #tpu.memory_space<vmem>>, vector<1x2x64xf32>
    %37 = vector.shape_cast %36 : vector<1x2x64xf32> to vector<2x64xf32>
    %38 = vector.shape_cast %35 : vector<2x64xf32> to vector<1x2x64xf32>
    tpu.vector_store %arg6[%c0_16, %c0_17, %c0_18], %38 {strides = array<i32>} : memref<4x2x64xf32, #tpu.memory_space<vmem>>, vector<1x2x64xf32>,
    %c1 = arith.constant 1 : index
    %c0_19 = arith.constant 0 : index
    %c0_20 = arith.constant 0 : index
    %39 = vector.load %arg1[%c1, %c0_19, %c0_20] : memref<4x2x128xf32, #tpu.memory_space<vmem>>, vector<1x2x128xf32>
    %40 = vector.shape_cast %39 : vector<1x2x128xf32> to vector<2x128xf32>
    %cst_21 = arith.constant dense<0.000000e+00> : vector<2x128xf32>
    %41 = tpu.matmul %35, %4, %cst_21 {dimension_numbers = #tpu.dot_dimension_numbers<[1], [0], [0], [1], [0, 0, 1, 1], [], []>} : vector<2x64xf32>, vector<64x128xf32>, vector<2x128xf32> -> vector<2x128xf32>
    %42 = arith.addf %40, %41 : vector<2x128xf32>
    %cst_22 = arith.constant 6.660000e-01 : f32
    %43 = vector.broadcast %cst_22 : f32 to vector<2x128xf32>
    %44 = arith.mulf %43, %42 : vector<2x128xf32>
    %45 = math.tanh %44 : vector<2x128xf32>
    %cst_23 = arith.constant 1.715900e+00 : f32
    %46 = vector.broadcast %cst_23 : f32 to vector<2x128xf32>
    %47 = arith.mulf %46, %45 : vector<2x128xf32>
    %cst_24 = arith.constant dense<0.000000e+00> : vector<2x256xf32>
    %48 = tpu.matmul %47, %5, %cst_24 {dimension_numbers = #tpu.dot_dimension_numbers<[1], [0], [0], [1], [0, 0, 1, 1], [], []>} : vector<2x128xf32>, vector<128x256xf32>, vector<2x256xf32> -> vector<2x256xf32>
    %49 = vector.broadcast %6 : vector<1x256xf32> to vector<2x256xf32>
    %50 = arith.addf %48, %49 : vector<2x256xf32>
    %51 = vector.extract_strided_slice %50 {offsets = [0, 0], sizes = [2, 64], strides = [1, 1]} : vector<2x256xf32> to vector<2x64xf32>
    %52 = math.tanh %51 : vector<2x64xf32>
    %53 = vector.extract_strided_slice %50 {offsets = [0, 64], sizes = [2, 64], strides = [1, 1]} : vector<2x256xf32> to vector<2x64xf32>
    %54 = math.tanh %53 : vector<2x64xf32>
    %55 = vector.extract_strided_slice %50 {offsets = [0, 128], sizes = [2, 64], strides = [1, 1]} : vector<2x256xf32> to vector<2x64xf32>
    %56 = vector.extract_strided_slice %50 {offsets = [0, 192], sizes = [2, 64], strides = [1, 1]} : vector<2x256xf32> to vector<2x64xf32>
    %57 = arith.addf %55, %56 : vector<2x64xf32>
    %58 = arith.negf %57 : vector<2x64xf32>
    %59 = math.exp %58 : vector<2x64xf32>
    %cst_25 = arith.constant 1.000000e+00 : f32
    %60 = vector.broadcast %cst_25 : f32 to vector<2x64xf32>
    %61 = arith.addf %60, %59 : vector<2x64xf32>
    %62 = arith.divf %60, %61 : vector<2x64xf32>
    %cst_26 = arith.constant 1.000000e+00 : f32
    %63 = vector.broadcast %cst_26 : f32 to vector<2x64xf32>
    %64 = arith.subf %63, %62 : vector<2x64xf32>
    %65 = arith.mulf %52, %64 : vector<2x64xf32>
    %66 = arith.mulf %62, %54 : vector<2x64xf32>
    %67 = arith.addf %65, %66 : vector<2x64xf32>
    %c1_27 = arith.constant 1 : index
    %c0_28 = arith.constant 0 : index
    %c0_29 = arith.constant 0 : index
    %68 = vector.load %arg6[%c1_27, %c0_28, %c0_29] : memref<4x2x64xf32, #tpu.memory_space<vmem>>, vector<1x2x64xf32>
    %69 = vector.shape_cast %68 : vector<1x2x64xf32> to vector<2x64xf32>
    %70 = vector.shape_cast %67 : vector<2x64xf32> to vector<1x2x64xf32>
    tpu.vector_store %arg6[%c1_27, %c0_28, %c0_29], %70 {strides = array<i32>} : memref<4x2x64xf32, #tpu.memory_space<vmem>>, vector<1x2x64xf32>,
    %c2 = arith.constant 2 : index
    %c0_30 = arith.constant 0 : index
    %c0_31 = arith.constant 0 : index
    %71 = vector.load %arg1[%c2, %c0_30, %c0_31] : memref<4x2x128xf32, #tpu.memory_space<vmem>>, vector<1x2x128xf32>
    %72 = vector.shape_cast %71 : vector<1x2x128xf32> to vector<2x128xf32>
    %cst_32 = arith.constant dense<0.000000e+00> : vector<2x128xf32>
    %73 = tpu.matmul %67, %4, %cst_32 {dimension_numbers = #tpu.dot_dimension_numbers<[1], [0], [0], [1], [0, 0, 1, 1], [], []>} : vector<2x64xf32>, vector<64x128xf32>, vector<2x128xf32> -> vector<2x128xf32>
    %74 = arith.addf %72, %73 : vector<2x128xf32>
    %cst_33 = arith.constant 6.660000e-01 : f32
    %75 = vector.broadcast %cst_33 : f32 to vector<2x128xf32>
    %76 = arith.mulf %75, %74 : vector<2x128xf32>
    %77 = math.tanh %76 : vector<2x128xf32>
    %cst_34 = arith.constant 1.715900e+00 : f32
    %78 = vector.broadcast %cst_34 : f32 to vector<2x128xf32>
    %79 = arith.mulf %78, %77 : vector<2x128xf32>
    %cst_35 = arith.constant dense<0.000000e+00> : vector<2x256xf32>
    %80 = tpu.matmul %79, %5, %cst_35 {dimension_numbers = #tpu.dot_dimension_numbers<[1], [0], [0], [1], [0, 0, 1, 1], [], []>} : vector<2x128xf32>, vector<128x256xf32>, vector<2x256xf32> -> vector<2x256xf32>
    %81 = vector.broadcast %6 : vector<1x256xf32> to vector<2x256xf32>
    %82 = arith.addf %80, %81 : vector<2x256xf32>
    %83 = vector.extract_strided_slice %82 {offsets = [0, 0], sizes = [2, 64], strides = [1, 1]} : vector<2x256xf32> to vector<2x64xf32>
    %84 = math.tanh %83 : vector<2x64xf32>
    %85 = vector.extract_strided_slice %82 {offsets = [0, 64], sizes = [2, 64], strides = [1, 1]} : vector<2x256xf32> to vector<2x64xf32>
    %86 = math.tanh %85 : vector<2x64xf32>
    %87 = vector.extract_strided_slice %82 {offsets = [0, 128], sizes = [2, 64], strides = [1, 1]} : vector<2x256xf32> to vector<2x64xf32>
    %88 = vector.extract_strided_slice %82 {offsets = [0, 192], sizes = [2, 64], strides = [1, 1]} : vector<2x256xf32> to vector<2x64xf32>
    %89 = arith.addf %87, %88 : vector<2x64xf32>
    %90 = arith.negf %89 : vector<2x64xf32>
    %91 = math.exp %90 : vector<2x64xf32>
    %cst_36 = arith.constant 1.000000e+00 : f32
    %92 = vector.broadcast %cst_36 : f32 to vector<2x64xf32>
    %93 = arith.addf %92, %91 : vector<2x64xf32>
    %94 = arith.divf %92, %93 : vector<2x64xf32>
    %cst_37 = arith.constant 1.000000e+00 : f32
    %95 = vector.broadcast %cst_37 : f32 to vector<2x64xf32>
    %96 = arith.subf %95, %94 : vector<2x64xf32>
    %97 = arith.mulf %84, %96 : vector<2x64xf32>
    %98 = arith.mulf %94, %86 : vector<2x64xf32>
    %99 = arith.addf %97, %98 : vector<2x64xf32>
    %c2_38 = arith.constant 2 : index
    %c0_39 = arith.constant 0 : index
    %c0_40 = arith.constant 0 : index
    %100 = vector.load %arg6[%c2_38, %c0_39, %c0_40] : memref<4x2x64xf32, #tpu.memory_space<vmem>>, vector<1x2x64xf32>
    %101 = vector.shape_cast %100 : vector<1x2x64xf32> to vector<2x64xf32>
    %102 = vector.shape_cast %99 : vector<2x64xf32> to vector<1x2x64xf32>
    tpu.vector_store %arg6[%c2_38, %c0_39, %c0_40], %102 {strides = array<i32>} : memref<4x2x64xf32, #tpu.memory_space<vmem>>, vector<1x2x64xf32>,
    %c3 = arith.constant 3 : index
    %c0_41 = arith.constant 0 : index
    %c0_42 = arith.constant 0 : index
    %103 = vector.load %arg1[%c3, %c0_41, %c0_42] : memref<4x2x128xf32, #tpu.memory_space<vmem>>, vector<1x2x128xf32>
    %104 = vector.shape_cast %103 : vector<1x2x128xf32> to vector<2x128xf32>
    %cst_43 = arith.constant dense<0.000000e+00> : vector<2x128xf32>
    %105 = tpu.matmul %99, %4, %cst_43 {dimension_numbers = #tpu.dot_dimension_numbers<[1], [0], [0], [1], [0, 0, 1, 1], [], []>} : vector<2x64xf32>, vector<64x128xf32>, vector<2x128xf32> -> vector<2x128xf32>
    %106 = arith.addf %104, %105 : vector<2x128xf32>
    %cst_44 = arith.constant 6.660000e-01 : f32
    %107 = vector.broadcast %cst_44 : f32 to vector<2x128xf32>
    %108 = arith.mulf %107, %106 : vector<2x128xf32>
    %109 = math.tanh %108 : vector<2x128xf32>
    %cst_45 = arith.constant 1.715900e+00 : f32
    %110 = vector.broadcast %cst_45 : f32 to vector<2x128xf32>
    %111 = arith.mulf %110, %109 : vector<2x128xf32>
    %cst_46 = arith.constant dense<0.000000e+00> : vector<2x256xf32>
    %112 = tpu.matmul %111, %5, %cst_46 {dimension_numbers = #tpu.dot_dimension_numbers<[1], [0], [0], [1], [0, 0, 1, 1], [], []>} : vector<2x128xf32>, vector<128x256xf32>, vector<2x256xf32> -> vector<2x256xf32>
    %113 = vector.broadcast %6 : vector<1x256xf32> to vector<2x256xf32>
    %114 = arith.addf %112, %113 : vector<2x256xf32>
    %115 = vector.extract_strided_slice %114 {offsets = [0, 0], sizes = [2, 64], strides = [1, 1]} : vector<2x256xf32> to vector<2x64xf32>
    %116 = math.tanh %115 : vector<2x64xf32>
    %117 = vector.extract_strided_slice %114 {offsets = [0, 64], sizes = [2, 64], strides = [1, 1]} : vector<2x256xf32> to vector<2x64xf32>
    %118 = math.tanh %117 : vector<2x64xf32>
    %119 = vector.extract_strided_slice %114 {offsets = [0, 128], sizes = [2, 64], strides = [1, 1]} : vector<2x256xf32> to vector<2x64xf32>
    %120 = vector.extract_strided_slice %114 {offsets = [0, 192], sizes = [2, 64], strides = [1, 1]} : vector<2x256xf32> to vector<2x64xf32>
    %121 = arith.addf %119, %120 : vector<2x64xf32>
    %122 = arith.negf %121 : vector<2x64xf32>
    %123 = math.exp %122 : vector<2x64xf32>
    %cst_47 = arith.constant 1.000000e+00 : f32
    %124 = vector.broadcast %cst_47 : f32 to vector<2x64xf32>
    %125 = arith.addf %124, %123 : vector<2x64xf32>
    %126 = arith.divf %124, %125 : vector<2x64xf32>
    %cst_48 = arith.constant 1.000000e+00 : f32
    %127 = vector.broadcast %cst_48 : f32 to vector<2x64xf32>
    %128 = arith.subf %127, %126 : vector<2x64xf32>
    %129 = arith.mulf %116, %128 : vector<2x64xf32>
    %130 = arith.mulf %126, %118 : vector<2x64xf32>
    %131 = arith.addf %129, %130 : vector<2x64xf32>
    %c3_49 = arith.constant 3 : index
    %c0_50 = arith.constant 0 : index
    %c0_51 = arith.constant 0 : index
    %132 = vector.load %arg6[%c3_49, %c0_50, %c0_51] : memref<4x2x64xf32, #tpu.memory_space<vmem>>, vector<1x2x64xf32>
    %133 = vector.shape_cast %132 : vector<1x2x64xf32> to vector<2x64xf32>
    %134 = vector.shape_cast %131 : vector<2x64xf32> to vector<1x2x64xf32>
    tpu.vector_store %arg6[%c3_49, %c0_50, %c0_51], %134 {strides = array<i32>} : memref<4x2x64xf32, #tpu.memory_space<vmem>>, vector<1x2x64xf32>,
    %c0_52 = arith.constant 0 : index
    %c0_53 = arith.constant 0 : index
    %135 = vector.load %arg8[%c0_52, %c0_53] : memref<2x64xf32, #tpu.memory_space<vmem>>, vector<2x64xf32>
    tpu.vector_store %arg8[%c0_52, %c0_53], %131 {strides = array<i32>} : memref<2x64xf32, #tpu.memory_space<vmem>>, vector<2x64xf32>,
    %c0_i32_54 = arith.constant 0 : i32
    %136 = arith.cmpi eq, %arg0, %c0_i32_54 : i32
    %137 = arith.extui %136 : i1 to i32
    %c0_i32_55 = arith.constant 0 : i32
    %138 = arith.cmpi ne, %137, %c0_i32_55 : i32
    scf.if %138 {
      %c0_56 = arith.constant 0 : index
      %c0_57 = arith.constant 0 : index
      %139 = vector.load %arg7[%c0_56, %c0_57] : memref<2x64xf32, #tpu.memory_space<vmem>>, vector<2x64xf32>
      tpu.vector_store %arg7[%c0_56, %c0_57], %131 {strides = array<i32>} : memref<2x64xf32, #tpu.memory_space<vmem>>, vector<2x64xf32>,
    } else {
    }
    return
  }
  func.func @transform_0(%arg0: i32) -> (i32, i32, i32) {
    %c0_i32 = arith.constant 0 : i32
    %c0_i32_0 = arith.constant 0 : i32
    %c0_i32_1 = arith.constant 0 : i32
    return %arg0, %c0_i32, %c0_i32_0 : i32, i32, i32
  }
  func.func @transform_1(%arg0: i32) -> (i32, i32) {
    %c0_i32 = arith.constant 0 : i32
    %c0_i32_0 = arith.constant 0 : i32
    %c0_i32_1 = arith.constant 0 : i32
    return %c0_i32, %c0_i32_0 : i32, i32
  }
  func.func @transform_2(%arg0: i32) -> (i32, i32) {
    %c0_i32 = arith.constant 0 : i32
    %c0_i32_0 = arith.constant 0 : i32
    %c0_i32_1 = arith.constant 0 : i32
    return %c0_i32, %c0_i32_0 : i32, i32
  }
  func.func @transform_3(%arg0: i32) -> (i32, i32) {
    %c0_i32 = arith.constant 0 : i32
    %c0_i32_0 = arith.constant 0 : i32
    %c0_i32_1 = arith.constant 0 : i32
    return %c0_i32, %c0_i32_0 : i32, i32
  }
  func.func @transform_4(%arg0: i32) -> (i32, i32) {
    %c0_i32 = arith.constant 0 : i32
    %c0_i32_0 = arith.constant 0 : i32
    %c0_i32_1 = arith.constant 0 : i32
    return %c0_i32, %c0_i32_0 : i32, i32
  }
  func.func @transform_5(%arg0: i32) -> (i32, i32, i32) {
    %c0_i32 = arith.constant 0 : i32
    %c0_i32_0 = arith.constant 0 : i32
    %c0_i32_1 = arith.constant 0 : i32
    return %arg0, %c0_i32, %c0_i32_0 : i32, i32, i32
  }
  func.func @transform_6(%arg0: i32) -> (i32, i32) {
    %c0_i32 = arith.constant 0 : i32
    %c0_i32_0 = arith.constant 0 : i32
    %c0_i32_1 = arith.constant 0 : i32
    return %c0_i32, %c0_i32_0 : i32, i32
  }
}

module attributes {stable_mosaic.version = 11 : i64} {
  func.func @_matmul_kernel(%arg0: i32, %arg1: i32, %arg2: i32, %arg3: memref<8x128xbf16, #tpu.memory_space<vmem>>, %arg4: memref<128x128xbf16, #tpu.memory_space<vmem>>, %arg5: memref<1x128xf32, #tpu.memory_space<vmem>>, %arg6: memref<8x128xf32, #tpu.memory_space<vmem>>, %arg7: memref<8x128xf32, #tpu.memory_space<vmem>>) attributes {dimension_semantics = [#tpu.dimension_semantics<parallel>, #tpu.dimension_semantics<parallel>, #tpu.dimension_semantics<arbitrary>], iteration_bounds = array<i64: 1, 1, 1>, scalar_prefetch = 0 : i64, scratch_operands = 1 : i64, tpu.core_type = #tpu.core_type<tc>, window_params = [{transform_indices = @transform_0, window_bounds = array<i64: 8, 128>}, {transform_indices = @transform_1, window_bounds = array<i64: 128, 128>}, {transform_indices = @transform_2, window_bounds = array<i64: 1, 128>}, {transform_indices = @transform_3, window_bounds = array<i64: 8, 128>}]} {
    %c0_i32 = arith.constant 0 : i32
    %0 = arith.cmpi eq, %arg2, %c0_i32 : i32
    %1 = arith.extui %0 : i1 to i32
    %c0_i32_0 = arith.constant 0 : i32
    %2 = arith.cmpi ne, %1, %c0_i32_0 : i32
    scf.if %2 {
      %cst_10 = arith.constant 0.000000e+00 : f32
      %12 = vector.broadcast %cst_10 : f32 to vector<8x128xf32>
      %c0_11 = arith.constant 0 : index
      %c0_12 = arith.constant 0 : index
      %13 = vector.load %arg7[%c0_11, %c0_12] : memref<8x128xf32, #tpu.memory_space<vmem>>, vector<8x128xf32>
      tpu.vector_store %arg7[%c0_11, %c0_12], %12 {strides = array<i32>} : memref<8x128xf32, #tpu.memory_space<vmem>>, vector<8x128xf32>,
    } else {
    }
    %c0 = arith.constant 0 : index
    %c0_1 = arith.constant 0 : index
    %3 = vector.load %arg7[%c0, %c0_1] : memref<8x128xf32, #tpu.memory_space<vmem>>, vector<8x128xf32>
    %c0_2 = arith.constant 0 : index
    %c0_3 = arith.constant 0 : index
    %4 = vector.load %arg3[%c0_2, %c0_3] : memref<8x128xbf16, #tpu.memory_space<vmem>>, vector<8x128xbf16>
    %c0_4 = arith.constant 0 : index
    %c0_5 = arith.constant 0 : index
    %5 = vector.load %arg4[%c0_4, %c0_5] : memref<128x128xbf16, #tpu.memory_space<vmem>>, vector<128x128xbf16>
    %cst = arith.constant dense<0.000000e+00> : vector<8x128xf32>
    %6 = tpu.matmul %4, %5, %cst {dimension_numbers = #tpu.dot_dimension_numbers<[1], [0], [0], [1], [0, 0, 1, 1], [], []>} : vector<8x128xbf16>, vector<128x128xbf16>, vector<8x128xf32> -> vector<8x128xf32>
    %7 = arith.addf %3, %6 : vector<8x128xf32>
    %c0_6 = arith.constant 0 : index
    %c0_7 = arith.constant 0 : index
    %8 = vector.load %arg7[%c0_6, %c0_7] : memref<8x128xf32, #tpu.memory_space<vmem>>, vector<8x128xf32>
    tpu.vector_store %arg7[%c0_6, %c0_7], %7 {strides = array<i32>} : memref<8x128xf32, #tpu.memory_space<vmem>>, vector<8x128xf32>,
    %c0_i32_8 = arith.constant 0 : i32
    %9 = arith.cmpi eq, %arg2, %c0_i32_8 : i32
    %10 = arith.extui %9 : i1 to i32
    %c0_i32_9 = arith.constant 0 : i32
    %11 = arith.cmpi ne, %10, %c0_i32_9 : i32
    scf.if %11 {
      %c0_10 = arith.constant 0 : index
      %c0_11 = arith.constant 0 : index
      %12 = vector.load %arg7[%c0_10, %c0_11] : memref<8x128xf32, #tpu.memory_space<vmem>>, vector<8x128xf32>
      %c0_12 = arith.constant 0 : index
      %c0_13 = arith.constant 0 : index
      %13 = vector.load %arg5[%c0_12, %c0_13] : memref<1x128xf32, #tpu.memory_space<vmem>>, vector<1x128xf32>
      %14 = vector.broadcast %13 : vector<1x128xf32> to vector<8x128xf32>
      %15 = arith.addf %12, %14 : vector<8x128xf32>
      %c0_14 = arith.constant 0 : index
      %c0_15 = arith.constant 0 : index
      %16 = vector.load %arg6[%c0_14, %c0_15] : memref<8x128xf32, #tpu.memory_space<vmem>>, vector<8x128xf32>
      tpu.vector_store %arg6[%c0_14, %c0_15], %15 {strides = array<i32>} : memref<8x128xf32, #tpu.memory_space<vmem>>, vector<8x128xf32>,
    } else {
    }
    return
  }
  func.func @transform_0(%arg0: i32, %arg1: i32, %arg2: i32) -> (i32, i32) {
    %c0_i32 = arith.constant 0 : i32
    return %arg0, %arg2 : i32, i32
  }
  func.func @transform_1(%arg0: i32, %arg1: i32, %arg2: i32) -> (i32, i32) {
    %c0_i32 = arith.constant 0 : i32
    return %arg2, %arg1 : i32, i32
  }
  func.func @transform_2(%arg0: i32, %arg1: i32, %arg2: i32) -> (i32, i32) {
    %c0_i32 = arith.constant 0 : i32
    %c0_i32_0 = arith.constant 0 : i32
    return %c0_i32, %arg1 : i32, i32
  }
  func.func @transform_3(%arg0: i32, %arg1: i32, %arg2: i32) -> (i32, i32) {
    %c0_i32 = arith.constant 0 : i32
    return %arg0, %arg1 : i32, i32
  }
}

</mosaic_0001>

<bundles_post_ra>
// kernel: conv_cfc_forward.7
= control target key start
LH: loop header
LB: loop body
LE: loop exit
PB: predicated region body
PF: predicated region fallthrough
CT: control target
= control target key end

     0   :  { %s1772_s1 = inlined_call_operand.vmem [shape: bf16[128,128], index: 1, kind: input, shape index: {}]   ;;  %s1773_s0 = inlined_call_operand.vmem [shape: bf16[512,128], index: 0, kind: input, shape index: {}]   ;;  %s1774_s2 = inlined_call_operand.vmem [shape: f32[1,128], index: 2, kind: input, shape index: {}]   ;;  %s1775_s3 = inlined_call_operand.vmem [shape: f32[512,128], index: 3, kind: output, shape index: {}]  }
   0x1   :  { %v1331_v0 = vld [vmem:[%s1772_s1] sm:$0xff]   ;;  %v1332_v1 = vld [vmem:[%s1772_s1 + $0x8] sm:$0xff]   ;;  %v1333_v2 = vld [vmem:[%s1772_s1 + $0x10] sm:$0xff]  }
   0x2   :  { %1235 = vmatprep.subr.bf16.mxu0 %v1331_v0  ;;  %1315 = vmatprep.subr.bf16.mxu1 %v1331_v0  ;;  %v1334_v3 = vld [vmem:[%s1772_s1 + $0x18] sm:$0xff]   ;;  %v1339_v4 = vld [vmem:[%s1773_s0] sm:$0xff]   ;;  %v1336_v7 = vld [vmem:[%s1772_s1 + $0x28] sm:$0xff]  }
   0x3   :  { %1236 = vmatpush3.bf16.msra.mxu0 %v1331_v0  ;;  %1323 = vmatpush3.bf16.msra.mxu1 %v1331_v0  ;;  %v1340_v5 = vld [vmem:[%s1773_s0 + $0x80] sm:$0xff]   ;;  %v1337_v8 = vld [vmem:[%s1772_s1 + $0x30] sm:$0xff]   ;;  %v1338_v9 = vld [vmem:[%s1772_s1 + $0x38] sm:$0xff]  }
   0x4   :  { %1237 = vmatprep.subr.bf16.mxu0 %v1332_v1  ;;  %1316 = vmatprep.subr.bf16.mxu1 %v1332_v1  ;;  %v1335_v6 = vld [vmem:[%s1772_s1 + $0x20] sm:$0xff]   ;;  %v1341_v10 = vld [vmem:[%s1773_s0 + $0x8] sm:$0xff]   ;;  %v1343_v12 = vld [vmem:[%s1773_s0 + $0x10] sm:$0xff]  }
   0x5   :  { %1251 = vmatprep.mubr.bf16.mxu0 %v1339_v4  ;;  %1283 = vmatprep.mubr.bf16.mxu1 %v1340_v5  ;;  %v1342_v11 = vld [vmem:[%s1773_s0 + $0x88] sm:$0xff]   ;;  %v1344_v13 = vld [vmem:[%s1773_s0 + $0x90] sm:$0xff]   ;;  %v1345_v14 = vld [vmem:[%s1773_s0 + $0x18] sm:$0xff]  }
   0x6   :  { %v1346_v15 = vld [vmem:[%s1773_s0 + $0x98] sm:$0xff]   ;;  %v1347_v16 = vld [vmem:[%s1773_s0 + $0x20] sm:$0xff]   ;;  %v1349_v18 = vld [vmem:[%s1773_s0 + $0x28] sm:$0xff]  }
   0x7   :  { %1238 = vmatpush3.bf16.msra.mxu0 %v1332_v1  ;;  %1324 = vmatpush3.bf16.msra.mxu1 %v1332_v1  ;;  %v1348_v17 = vld [vmem:[%s1773_s0 + $0xa0] sm:$0xff]   ;;  %v1350_v19 = vld [vmem:[%s1773_s0 + $0xa8] sm:$0xff]   ;;  %v1351_v20 = vld [vmem:[%s1773_s0 + $0x30] sm:$0xff]  }
   0x8   :  { %1239 = vmatprep.subr.bf16.mxu0 %v1333_v2  ;;  %1317 = vmatprep.subr.bf16.mxu1 %v1333_v2  ;;  %v1352_v21 = vld [vmem:[%s1773_s0 + $0xb0] sm:$0xff]   ;;  %v1353_v22 = vld [vmem:[%s1773_s0 + $0x38] sm:$0xff]   ;;  %v1355_v24 = vld [vmem:[%s1773_s0 + $0x40] sm:$0xff]  }
   0x9   :  { %v1354_v23 = vld [vmem:[%s1773_s0 + $0xb8] sm:$0xff]   ;;  %v1356_v25 = vld [vmem:[%s1773_s0 + $0xc0] sm:$0xff]   ;;  %v1357_v26 = vld [vmem:[%s1773_s0 + $0x48] sm:$0xff]  }
   0xa   :  { %v1358_v27 = vld [vmem:[%s1773_s0 + $0xc8] sm:$0xff]   ;;  %v1359_v28 = vld [vmem:[%s1773_s0 + $0x50] sm:$0xff]   ;;  %v1361_v30 = vld [vmem:[%s1773_s0 + $0x58] sm:$0xff]  }
   0xb   :  { %1240 = vmatpush3.bf16.msra.mxu0 %v1333_v2  ;;  %1325 = vmatpush3.bf16.msra.mxu1 %v1333_v2  ;;  %v1360_v29 = vld [vmem:[%s1773_s0 + $0xd0] sm:$0xff]   ;;  %v1362_v31 = vld [vmem:[%s1773_s0 + $0xd8] sm:$0xff]   ;;  %v1363_v32 = vld [vmem:[%s1773_s0 + $0x60] sm:$0xff]  }
   0xc   :  { %1241 = vmatprep.subr.bf16.mxu0 %v1334_v3  ;;  %1318 = vmatprep.subr.bf16.mxu1 %v1334_v3  ;;  %v1364_v33 = vld [vmem:[%s1773_s0 + $0xe0] sm:$0xff]   ;;  %v1365_v34 = vld [vmem:[%s1773_s0 + $0x68] sm:$0xff]   ;;  %v1367_v36 = vld [vmem:[%s1773_s0 + $0x70] sm:$0xff]  }
   0xd   :  { %v1366_v35 = vld [vmem:[%s1773_s0 + $0xe8] sm:$0xff]   ;;  %v1368_v37 = vld [vmem:[%s1773_s0 + $0xf0] sm:$0xff]   ;;  %v1369_v38 = vld [vmem:[%s1773_s0 + $0x78] sm:$0xff]  }
   0xe   :  { %v1370_v39 = vld [vmem:[%s1773_s0 + $0xf8] sm:$0xff]   ;;  %v1514_v40 = vld [vmem:[%s1774_s2] ss:$0 sm:$0xff] }
   0xf   :  { %1242 = vmatpush3.bf16.msra.mxu0 %v1334_v3  ;;  %1326 = vmatpush3.bf16.msra.mxu1 %v1334_v3 }
  0x10   :  { %1243 = vmatprep.subr.bf16.mxu0 %v1335_v6  ;;  %1319 = vmatprep.subr.bf16.mxu1 %v1335_v6 }
  0x13   :  { %1244 = vmatpush3.bf16.msra.mxu0 %v1335_v6  ;;  %1327 = vmatpush3.bf16.msra.mxu1 %v1335_v6 }
  0x14   :  { %1245 = vmatprep.subr.bf16.mxu0 %v1336_v7  ;;  %1320 = vmatprep.subr.bf16.mxu1 %v1336_v7 }
  0x17   :  { %1246 = vmatpush3.bf16.msra.mxu0 %v1336_v7  ;;  %1328 = vmatpush3.bf16.msra.mxu1 %v1336_v7 }
  0x18   :  { %1247 = vmatprep.subr.bf16.mxu0 %v1337_v8  ;;  %1321 = vmatprep.subr.bf16.mxu1 %v1337_v8 }
  0x1b   :  { %1248 = vmatpush3.bf16.msra.mxu0 %v1337_v8  ;;  %1329 = vmatpush3.bf16.msra.mxu1 %v1337_v8 }
  0x1c   :  { %1249 = vmatprep.subr.bf16.mxu0 %v1338_v9  ;;  %1322 = vmatprep.subr.bf16.mxu1 %v1338_v9 }
  0x1f   :  { %1250 = vmatpush3.bf16.msra.mxu0 %v1338_v9  ;;  %1330 = vmatpush3.bf16.msra.mxu1 %v1338_v9 }
  0x22   :  { %1252 = vmatmul.mubr.bf16.vlgmr.msra.gmra.mrb[0].mxu0 %v1341_v10  ;;  %1284 = vmatmul.mubr.bf16.vlgmr.msra.gmra.mrb[0].mxu1 %v1342_v11 }
  0x23   :  { %1255 = vmatprep.mubr.bf16.mxu0 %v1343_v12  ;;  %1287 = vmatprep.mubr.bf16.mxu1 %v1344_v13 }
  0x2a   :  { %1256 = vmatmul.mubr.bf16.gmra.mrb[4].mxu0 %v1345_v14  ;;  %1288 = vmatmul.mubr.bf16.gmra.mrb[4].mxu1 %v1346_v15 }
  0x2b   :  { %1259 = vmatprep.mubr.bf16.mxu0 %v1347_v16  ;;  %1291 = vmatprep.mubr.bf16.mxu1 %v1348_v17 }
  0x32   :  { %1260 = vmatmul.mubr.bf16.gmra.mrb[8].mxu0 %v1349_v18  ;;  %1292 = vmatmul.mubr.bf16.gmra.mrb[8].mxu1 %v1350_v19 }
  0x33   :  { %1263 = vmatprep.mubr.bf16.mxu0 %v1351_v20  ;;  %1295 = vmatprep.mubr.bf16.mxu1 %v1352_v21 }
  0x3a   :  { %1264 = vmatmul.mubr.bf16.gmra.mrb[12].mxu0 %v1353_v22  ;;  %1296 = vmatmul.mubr.bf16.gmra.mrb[12].mxu1 %v1354_v23 }
  0x3b   :  { %1267 = vmatprep.mubr.bf16.mxu0 %v1355_v24  ;;  %1299 = vmatprep.mubr.bf16.mxu1 %v1356_v25 }
  0x42   :  { %1268 = vmatmul.mubr.bf16.gmra.mrb[16].mxu0 %v1357_v26  ;;  %1300 = vmatmul.mubr.bf16.gmra.mrb[16].mxu1 %v1358_v27 }
  0x43   :  { %1271 = vmatprep.mubr.bf16.mxu0 %v1359_v28  ;;  %1303 = vmatprep.mubr.bf16.mxu1 %v1360_v29 }
  0x4a   :  { %1272 = vmatmul.mubr.bf16.gmra.mrb[20].mxu0 %v1361_v30  ;;  %1304 = vmatmul.mubr.bf16.gmra.mrb[20].mxu1 %v1362_v31 }
  0x4b   :  { %1275 = vmatprep.mubr.bf16.mxu0 %v1363_v32  ;;  %1307 = vmatprep.mubr.bf16.mxu1 %v1364_v33 }
  0x52   :  { %1276 = vmatmul.mubr.bf16.gmra.mrb[24].mxu0 %v1365_v34  ;;  %1308 = vmatmul.mubr.bf16.gmra.mrb[24].mxu1 %v1366_v35 }
  0x53   :  { %1279 = vmatprep.mubr.bf16.mxu0 %v1367_v36  ;;  %1311 = vmatprep.mubr.bf16.mxu1 %v1368_v37 }
  0x5a   :  { %1280 = vmatmul.mubr.bf16.gmra.mrb[28].mxu0 %v1369_v38  ;;  %1312 = vmatmul.mubr.bf16.gmra.mrb[28].mxu1 %v1370_v39 }
  0xf5   :  { %v1253_v41 = vpop.f32.mrb[0].mxu0  ;;  %v1285_v42 = vpop.f32.mrb[0].mxu1 }
  0xf6   :  { %v960_v43 = vadd.f32 %v1253_v41, %v1514_v40  ;;  %v992_v44 = vadd.f32 %v1285_v42, %v1514_v40  ;;  %v501_v45 = vpop.f32.mrb[1].mxu0  ;;  %v629_v46 = vpop.f32.mrb[1].mxu1 }
  0xf7   :  { %v958_v47 = vadd.f32 %v1514_v40, %v501_v45  ;;  %v990_v48 = vadd.f32 %v1514_v40, %v629_v46  ;;  %v1254_v49 = vpop.f32.mrb[2].mxu0  ;;  %v1286_v50 = vpop.f32.mrb[2].mxu1 }
  0xf8   :  { %v1024_v51 = vmax.f32 %v960_v43, 0.0  ;;  %v1056_v52 = vmax.f32 %v992_v44, 0.0  ;;  %v961_v53 = vadd.f32 %v1254_v49, %v1514_v40  ;;  %v993_v54 = vadd.f32 %v1286_v50, %v1514_v40  ;;  %v504_v55 = vpop.f32.mrb[3].mxu0  ;;  %v632_v56 = vpop.f32.mrb[3].mxu1 }
  0xf9   :  { %v1022_v57 = vmax.f32 %v958_v47, 0.0  ;;  %v1054_v58 = vmax.f32 %v990_v48, 0.0  ;;  %v959_v59 = vadd.f32 %v1514_v40, %v504_v55  ;;  %v991_v60 = vadd.f32 %v1514_v40, %v632_v56 }
  0xfa   :  { %1088 = vst [vmem:[%s1775_s3 + $0x10] sm:$0xff] %v1024_v51  ;;  %1120 = vst [vmem:[%s1775_s3 + $0x110] sm:$0xff] %v1056_v52  ;;  %v1025_v61 = vmax.f32 %v961_v53, 0.0  ;;  %v1057_v62 = vmax.f32 %v993_v54, 0.0 }
  0xfb   :  { %1086 = vst [vmem:[%s1775_s3] sm:$0xff] %v1022_v57  ;;  %1118 = vst [vmem:[%s1775_s3 + $0x100] sm:$0xff] %v1054_v58  ;;  %v1023_v63 = vmax.f32 %v959_v59, 0.0  ;;  %v1055_v0 = vmax.f32 %v991_v60, 0.0 }
  0xfc   :  { %1089 = vst [vmem:[%s1775_s3 + $0x18] sm:$0xff] %v1025_v61  ;;  %1121 = vst [vmem:[%s1775_s3 + $0x118] sm:$0xff] %v1057_v62 }
  0xfd   :  { %1087 = vst [vmem:[%s1775_s3 + $0x8] sm:$0xff] %v1023_v63  ;;  %1119 = vst [vmem:[%s1775_s3 + $0x108] sm:$0xff] %v1055_v0  ;;  %v1257_v1 = vpop.f32.mrb[4].mxu0  ;;  %v1289_v2 = vpop.f32.mrb[4].mxu1 }
  0xfe   :  { %v964_v3 = vadd.f32 %v1257_v1, %v1514_v40  ;;  %v996_v4 = vadd.f32 %v1289_v2, %v1514_v40  ;;  %v517_v5 = vpop.f32.mrb[5].mxu0  ;;  %v645_v6 = vpop.f32.mrb[5].mxu1 }
  0xff   :  { %v962_v7 = vadd.f32 %v1514_v40, %v517_v5  ;;  %v994_v8 = vadd.f32 %v1514_v40, %v645_v6  ;;  %v1258_v9 = vpop.f32.mrb[6].mxu0  ;;  %v1290_v10 = vpop.f32.mrb[6].mxu1 }
 0x100   :  { %v1028_v11 = vmax.f32 %v964_v3, 0.0  ;;  %v1060_v12 = vmax.f32 %v996_v4, 0.0  ;;  %v965_v13 = vadd.f32 %v1258_v9, %v1514_v40  ;;  %v997_v14 = vadd.f32 %v1290_v10, %v1514_v40  ;;  %v520_v15 = vpop.f32.mrb[7].mxu0  ;;  %v648_v16 = vpop.f32.mrb[7].mxu1 }
 0x101   :  { %v1026_v17 = vmax.f32 %v962_v7, 0.0  ;;  %v1058_v18 = vmax.f32 %v994_v8, 0.0  ;;  %v963_v19 = vadd.f32 %v1514_v40, %v520_v15  ;;  %v995_v20 = vadd.f32 %v1514_v40, %v648_v16 }
 0x102   :  { %1092 = vst [vmem:[%s1775_s3 + $0x30] sm:$0xff] %v1028_v11  ;;  %1124 = vst [vmem:[%s1775_s3 + $0x130] sm:$0xff] %v1060_v12  ;;  %v1029_v21 = vmax.f32 %v965_v13, 0.0  ;;  %v1061_v22 = vmax.f32 %v997_v14, 0.0 }
 0x103   :  { %1090 = vst [vmem:[%s1775_s3 + $0x20] sm:$0xff] %v1026_v17  ;;  %1122 = vst [vmem:[%s1775_s3 + $0x120] sm:$0xff] %v1058_v18  ;;  %v1027_v23 = vmax.f32 %v963_v19, 0.0  ;;  %v1059_v24 = vmax.f32 %v995_v20, 0.0 }
 0x104   :  { %1093 = vst [vmem:[%s1775_s3 + $0x38] sm:$0xff] %v1029_v21  ;;  %1125 = vst [vmem:[%s1775_s3 + $0x138] sm:$0xff] %v1061_v22 }
 0x105   :  { %1091 = vst [vmem:[%s1775_s3 + $0x28] sm:$0xff] %v1027_v23  ;;  %1123 = vst [vmem:[%s1775_s3 + $0x128] sm:$0xff] %v1059_v24  ;;  %v1261_v25 = vpop.f32.mrb[8].mxu0  ;;  %v1293_v26 = vpop.f32.mrb[8].mxu1 }
 0x106   :  { %v968_v27 = vadd.f32 %v1261_v25, %v1514_v40  ;;  %v1000_v28 = vadd.f32 %v1293_v26, %v1514_v40  ;;  %v533_v29 = vpop.f32.mrb[9].mxu0  ;;  %v661_v30 = vpop.f32.mrb[9].mxu1 }
 0x107   :  { %v966_v31 = vadd.f32 %v1514_v40, %v533_v29  ;;  %v998_v32 = vadd.f32 %v1514_v40, %v661_v30  ;;  %v1262_v33 = vpop.f32.mrb[10].mxu0  ;;  %v1294_v34 = vpop.f32.mrb[10].mxu1 }
 0x108   :  { %v1032_v35 = vmax.f32 %v968_v27, 0.0  ;;  %v1064_v36 = vmax.f32 %v1000_v28, 0.0  ;;  %v969_v37 = vadd.f32 %v1262_v33, %v1514_v40  ;;  %v1001_v38 = vadd.f32 %v1294_v34, %v1514_v40  ;;  %v536_v39 = vpop.f32.mrb[11].mxu0  ;;  %v664_v41 = vpop.f32.mrb[11].mxu1 }
 0x109   :  { %v1030_v42 = vmax.f32 %v966_v31, 0.0  ;;  %v1062_v43 = vmax.f32 %v998_v32, 0.0  ;;  %v967_v44 = vadd.f32 %v1514_v40, %v536_v39  ;;  %v999_v45 = vadd.f32 %v1514_v40, %v664_v41 }
 0x10a   :  { %1096 = vst [vmem:[%s1775_s3 + $0x50] sm:$0xff] %v1032_v35  ;;  %1128 = vst [vmem:[%s1775_s3 + $0x150] sm:$0xff] %v1064_v36  ;;  %v1033_v46 = vmax.f32 %v969_v37, 0.0  ;;  %v1065_v47 = vmax.f32 %v1001_v38, 0.0 }
 0x10b   :  { %1094 = vst [vmem:[%s1775_s3 + $0x40] sm:$0xff] %v1030_v42  ;;  %1126 = vst [vmem:[%s1775_s3 + $0x140] sm:$0xff] %v1062_v43  ;;  %v1031_v48 = vmax.f32 %v967_v44, 0.0  ;;  %v1063_v49 = vmax.f32 %v999_v45, 0.0 }
 0x10c   :  { %1097 = vst [vmem:[%s1775_s3 + $0x58] sm:$0xff] %v1033_v46  ;;  %1129 = vst [vmem:[%s1775_s3 + $0x158] sm:$0xff] %v1065_v47 }
 0x10d   :  { %1095 = vst [vmem:[%s1775_s3 + $0x48] sm:$0xff] %v1031_v48  ;;  %1127 = vst [vmem:[%s1775_s3 + $0x148] sm:$0xff] %v1063_v49  ;;  %v1265_v50 = vpop.f32.mrb[12].mxu0  ;;  %v1297_v51 = vpop.f32.mrb[12].mxu1 }
 0x10e   :  { %v972_v52 = vadd.f32 %v1265_v50, %v1514_v40  ;;  %v1004_v53 = vadd.f32 %v1297_v51, %v1514_v40  ;;  %v549_v54 = vpop.f32.mrb[13].mxu0  ;;  %v677_v55 = vpop.f32.mrb[13].mxu1 }
 0x10f   :  { %v970_v56 = vadd.f32 %v1514_v40, %v549_v54  ;;  %v1002_v57 = vadd.f32 %v1514_v40, %v677_v55  ;;  %v1266_v58 = vpop.f32.mrb[14].mxu0  ;;  %v1298_v59 = vpop.f32.mrb[14].mxu1 }
 0x110   :  { %v1036_v60 = vmax.f32 %v972_v52, 0.0  ;;  %v1068_v61 = vmax.f32 %v1004_v53, 0.0  ;;  %v973_v62 = vadd.f32 %v1266_v58, %v1514_v40  ;;  %v1005_v63 = vadd.f32 %v1298_v59, %v1514_v40  ;;  %v552_v0 = vpop.f32.mrb[15].mxu0  ;;  %v680_v1 = vpop.f32.mrb[15].mxu1 }
 0x111   :  { %v1034_v2 = vmax.f32 %v970_v56, 0.0  ;;  %v1066_v3 = vmax.f32 %v1002_v57, 0.0  ;;  %v971_v4 = vadd.f32 %v1514_v40, %v552_v0  ;;  %v1003_v5 = vadd.f32 %v1514_v40, %v680_v1 }
 0x112   :  { %1100 = vst [vmem:[%s1775_s3 + $0x70] sm:$0xff] %v1036_v60  ;;  %1132 = vst [vmem:[%s1775_s3 + $0x170] sm:$0xff] %v1068_v61  ;;  %v1037_v6 = vmax.f32 %v973_v62, 0.0  ;;  %v1069_v7 = vmax.f32 %v1005_v63, 0.0 }
 0x113   :  { %1098 = vst [vmem:[%s1775_s3 + $0x60] sm:$0xff] %v1034_v2  ;;  %1130 = vst [vmem:[%s1775_s3 + $0x160] sm:$0xff] %v1066_v3  ;;  %v1035_v8 = vmax.f32 %v971_v4, 0.0  ;;  %v1067_v9 = vmax.f32 %v1003_v5, 0.0 }
 0x114   :  { %1101 = vst [vmem:[%s1775_s3 + $0x78] sm:$0xff] %v1037_v6  ;;  %1133 = vst [vmem:[%s1775_s3 + $0x178] sm:$0xff] %v1069_v7 }
 0x115   :  { %1099 = vst [vmem:[%s1775_s3 + $0x68] sm:$0xff] %v1035_v8  ;;  %1131 = vst [vmem:[%s1775_s3 + $0x168] sm:$0xff] %v1067_v9  ;;  %v1269_v10 = vpop.f32.mrb[16].mxu0  ;;  %v1301_v11 = vpop.f32.mrb[16].mxu1 }
 0x116   :  { %v976_v12 = vadd.f32 %v1269_v10, %v1514_v40  ;;  %v1008_v13 = vadd.f32 %v1301_v11, %v1514_v40  ;;  %v565_v14 = vpop.f32.mrb[17].mxu0  ;;  %v693_v15 = vpop.f32.mrb[17].mxu1 }
 0x117   :  { %v974_v16 = vadd.f32 %v1514_v40, %v565_v14  ;;  %v1006_v17 = vadd.f32 %v1514_v40, %v693_v15  ;;  %v1270_v18 = vpop.f32.mrb[18].mxu0  ;;  %v1302_v19 = vpop.f32.mrb[18].mxu1 }
 0x118   :  { %v1040_v20 = vmax.f32 %v976_v12, 0.0  ;;  %v1072_v21 = vmax.f32 %v1008_v13, 0.0  ;;  %v977_v22 = vadd.f32 %v1270_v18, %v1514_v40  ;;  %v1009_v23 = vadd.f32 %v1302_v19, %v1514_v40  ;;  %v568_v24 = vpop.f32.mrb[19].mxu0  ;;  %v696_v25 = vpop.f32.mrb[19].mxu1 }
 0x119   :  { %v1038_v26 = vmax.f32 %v974_v16, 0.0  ;;  %v1070_v27 = vmax.f32 %v1006_v17, 0.0  ;;  %v975_v28 = vadd.f32 %v1514_v40, %v568_v24  ;;  %v1007_v29 = vadd.f32 %v1514_v40, %v696_v25 }
 0x11a   :  { %1104 = vst [vmem:[%s1775_s3 + $0x90] sm:$0xff] %v1040_v20  ;;  %1136 = vst [vmem:[%s1775_s3 + $0x190] sm:$0xff] %v1072_v21  ;;  %v1041_v30 = vmax.f32 %v977_v22, 0.0  ;;  %v1073_v31 = vmax.f32 %v1009_v23, 0.0 }
 0x11b   :  { %1102 = vst [vmem:[%s1775_s3 + $0x80] sm:$0xff] %v1038_v26  ;;  %1134 = vst [vmem:[%s1775_s3 + $0x180] sm:$0xff] %v1070_v27  ;;  %v1039_v32 = vmax.f32 %v975_v28, 0.0  ;;  %v1071_v33 = vmax.f32 %v1007_v29, 0.0 }
 0x11c   :  { %1105 = vst [vmem:[%s1775_s3 + $0x98] sm:$0xff] %v1041_v30  ;;  %1137 = vst [vmem:[%s1775_s3 + $0x198] sm:$0xff] %v1073_v31 }
 0x11d   :  { %1103 = vst [vmem:[%s1775_s3 + $0x88] sm:$0xff] %v1039_v32  ;;  %1135 = vst [vmem:[%s1775_s3 + $0x188] sm:$0xff] %v1071_v33  ;;  %v1273_v34 = vpop.f32.mrb[20].mxu0  ;;  %v1305_v35 = vpop.f32.mrb[20].mxu1 }
 0x11e   :  { %v980_v36 = vadd.f32 %v1273_v34, %v1514_v40  ;;  %v1012_v37 = vadd.f32 %v1305_v35, %v1514_v40  ;;  %v581_v38 = vpop.f32.mrb[21].mxu0  ;;  %v709_v39 = vpop.f32.mrb[21].mxu1 }
 0x11f   :  { %v978_v41 = vadd.f32 %v1514_v40, %v581_v38  ;;  %v1010_v42 = vadd.f32 %v1514_v40, %v709_v39  ;;  %v1274_v43 = vpop.f32.mrb[22].mxu0  ;;  %v1306_v44 = vpop.f32.mrb[22].mxu1 }
 0x120   :  { %v1044_v45 = vmax.f32 %v980_v36, 0.0  ;;  %v1076_v46 = vmax.f32 %v1012_v37, 0.0  ;;  %v981_v47 = vadd.f32 %v1274_v43, %v1514_v40  ;;  %v1013_v48 = vadd.f32 %v1306_v44, %v1514_v40  ;;  %v584_v49 = vpop.f32.mrb[23].mxu0  ;;  %v712_v50 = vpop.f32.mrb[23].mxu1 }
 0x121   :  { %v1042_v51 = vmax.f32 %v978_v41, 0.0  ;;  %v1074_v52 = vmax.f32 %v1010_v42, 0.0  ;;  %v979_v53 = vadd.f32 %v1514_v40, %v584_v49  ;;  %v1011_v54 = vadd.f32 %v1514_v40, %v712_v50 }
 0x122   :  { %1108 = vst [vmem:[%s1775_s3 + $0xb0] sm:$0xff] %v1044_v45  ;;  %1140 = vst [vmem:[%s1775_s3 + $0x1b0] sm:$0xff] %v1076_v46  ;;  %v1045_v55 = vmax.f32 %v981_v47, 0.0  ;;  %v1077_v56 = vmax.f32 %v1013_v48, 0.0 }
 0x123   :  { %1106 = vst [vmem:[%s1775_s3 + $0xa0] sm:$0xff] %v1042_v51  ;;  %1138 = vst [vmem:[%s1775_s3 + $0x1a0] sm:$0xff] %v1074_v52  ;;  %v1043_v57 = vmax.f32 %v979_v53, 0.0  ;;  %v1075_v58 = vmax.f32 %v1011_v54, 0.0 }
 0x124   :  { %1109 = vst [vmem:[%s1775_s3 + $0xb8] sm:$0xff] %v1045_v55  ;;  %1141 = vst [vmem:[%s1775_s3 + $0x1b8] sm:$0xff] %v1077_v56 }
 0x125   :  { %1107 = vst [vmem:[%s1775_s3 + $0xa8] sm:$0xff] %v1043_v57  ;;  %1139 = vst [vmem:[%s1775_s3 + $0x1a8] sm:$0xff] %v1075_v58  ;;  %v1277_v59 = vpop.f32.mrb[24].mxu0  ;;  %v1309_v60 = vpop.f32.mrb[24].mxu1 }
 0x126   :  { %v984_v61 = vadd.f32 %v1277_v59, %v1514_v40  ;;  %v1016_v62 = vadd.f32 %v1309_v60, %v1514_v40  ;;  %v597_v63 = vpop.f32.mrb[25].mxu0  ;;  %v725_v0 = vpop.f32.mrb[25].mxu1 }
 0x127   :  { %v982_v1 = vadd.f32 %v1514_v40, %v597_v63  ;;  %v1014_v2 = vadd.f32 %v1514_v40, %v725_v0  ;;  %v1278_v3 = vpop.f32.mrb[26].mxu0  ;;  %v1310_v4 = vpop.f32.mrb[26].mxu1 }
 0x128   :  { %v1048_v5 = vmax.f32 %v984_v61, 0.0  ;;  %v1080_v6 = vmax.f32 %v1016_v62, 0.0  ;;  %v985_v7 = vadd.f32 %v1278_v3, %v1514_v40  ;;  %v1017_v8 = vadd.f32 %v1310_v4, %v1514_v40  ;;  %v600_v9 = vpop.f32.mrb[27].mxu0  ;;  %v728_v10 = vpop.f32.mrb[27].mxu1 }
 0x129   :  { %v1046_v11 = vmax.f32 %v982_v1, 0.0  ;;  %v1078_v12 = vmax.f32 %v1014_v2, 0.0  ;;  %v983_v13 = vadd.f32 %v1514_v40, %v600_v9  ;;  %v1015_v14 = vadd.f32 %v1514_v40, %v728_v10 }
 0x12a   :  { %1112 = vst [vmem:[%s1775_s3 + $0xd0] sm:$0xff] %v1048_v5  ;;  %1144 = vst [vmem:[%s1775_s3 + $0x1d0] sm:$0xff] %v1080_v6  ;;  %v1049_v15 = vmax.f32 %v985_v7, 0.0  ;;  %v1081_v16 = vmax.f32 %v1017_v8, 0.0 }
 0x12b   :  { %1110 = vst [vmem:[%s1775_s3 + $0xc0] sm:$0xff] %v1046_v11  ;;  %1142 = vst [vmem:[%s1775_s3 + $0x1c0] sm:$0xff] %v1078_v12  ;;  %v1047_v17 = vmax.f32 %v983_v13, 0.0  ;;  %v1079_v18 = vmax.f32 %v1015_v14, 0.0 }
 0x12c   :  { %1113 = vst [vmem:[%s1775_s3 + $0xd8] sm:$0xff] %v1049_v15  ;;  %1145 = vst [vmem:[%s1775_s3 + $0x1d8] sm:$0xff] %v1081_v16 }
 0x12d   :  { %1111 = vst [vmem:[%s1775_s3 + $0xc8] sm:$0xff] %v1047_v17  ;;  %1143 = vst [vmem:[%s1775_s3 + $0x1c8] sm:$0xff] %v1079_v18  ;;  %v1281_v19 = vpop.f32.mrb[28].mxu0  ;;  %v1313_v20 = vpop.f32.mrb[28].mxu1 }
 0x12e   :  { %v988_v21 = vadd.f32 %v1281_v19, %v1514_v40  ;;  %v1020_v22 = vadd.f32 %v1313_v20, %v1514_v40  ;;  %v613_v23 = vpop.f32.mrb[29].mxu0  ;;  %v741_v24 = vpop.f32.mrb[29].mxu1 }
 0x12f   :  { %v986_v25 = vadd.f32 %v1514_v40, %v613_v23  ;;  %v1018_v26 = vadd.f32 %v1514_v40, %v741_v24  ;;  %v1282_v27 = vpop.f32.mrb[30].mxu0  ;;  %v1314_v28 = vpop.f32.mrb[30].mxu1 }
 0x130   :  { %v1052_v29 = vmax.f32 %v988_v21, 0.0  ;;  %v1084_v30 = vmax.f32 %v1020_v22, 0.0  ;;  %v989_v31 = vadd.f32 %v1282_v27, %v1514_v40  ;;  %v1021_v32 = vadd.f32 %v1314_v28, %v1514_v40  ;;  %v616_v33 = vpop.f32.mrb[31].mxu0  ;;  %v744_v34 = vpop.f32.mrb[31].mxu1 }
 0x131   :  { %v1050_v35 = vmax.f32 %v986_v25, 0.0  ;;  %v1082_v36 = vmax.f32 %v1018_v26, 0.0  ;;  %v987_v37 = vadd.f32 %v1514_v40, %v616_v33  ;;  %v1019_v38 = vadd.f32 %v1514_v40, %v744_v34 }
 0x132   :  { %1116 = vst [vmem:[%s1775_s3 + $0xf0] sm:$0xff] %v1052_v29  ;;  %1148 = vst [vmem:[%s1775_s3 + $0x1f0] sm:$0xff] %v1084_v30  ;;  %v1053_v39 = vmax.f32 %v989_v31, 0.0  ;;  %v1085_v41 = vmax.f32 %v1021_v32, 0.0 }
 0x133   :  { %1114 = vst [vmem:[%s1775_s3 + $0xe0] sm:$0xff] %v1050_v35  ;;  %1146 = vst [vmem:[%s1775_s3 + $0x1e0] sm:$0xff] %v1082_v36  ;;  %v1051_v42 = vmax.f32 %v987_v37, 0.0  ;;  %v1083_v40 = vmax.f32 %v1019_v38, 0.0 }
 0x134   :  { %1117 = vst [vmem:[%s1775_s3 + $0xf8] sm:$0xff] %v1053_v39  ;;  %1149 = vst [vmem:[%s1775_s3 + $0x1f8] sm:$0xff] %v1085_v41 }
 0x135   :  { %1115 = vst [vmem:[%s1775_s3 + $0xe8] sm:$0xff] %v1051_v42  ;;  %1147 = vst [vmem:[%s1775_s3 + $0x1e8] sm:$0xff] %v1083_v40 }

// kernel: conv_cfc_forward.8
= control target key start
LH: loop header
LB: loop body
LE: loop exit
PB: predicated region body
PF: predicated region fallthrough
CT: control target
= control target key end

     0   :  { %s1031_s12 = smov 0   ;;  %s1033_s13 = smov 0   ;;  %s1187_s0 = inlined_call_operand.vmem [shape: bf16[128,1664], index: 0, kind: input, shape index: {}]   ;;  %s1188_s1 = inlined_call_operand.vmem [shape: bf16[1664,128], index: 1, kind: input, shape index: {}]   ;;  %s1189_s2 = inlined_call_operand.vmem [shape: f32[1,128], index: 2, kind: input, shape index: {}]   ;;  %s1190_s3 = inlined_call_operand.vmem [shape: f32[128,128], index: 3, kind: output, shape index: {}]  }
   0x1   :  { %s1035_s14 = smov 0   ;;  %s1037_s15 = smov 0  }
   0x2   :  { %s1039_s16 = smov 0  }
   0x3 LB: > { %s25_s17 = sadd.s32 1, %s1004_s15  ;;  %p48_p1 = scmp.ne.s32.totalorder %s996_s13, %s992_s12  ;;  %s1008_s16 = sphi %s1039_s16, %s13_s16   ;;  %s1004_s15 = sphi %s1037_s15, %s1194_s15   ;;  %s1000_s14 = sphi %s1035_s14, %s1193_s14   ;;  %s996_s13 = sphi %s1033_s13, %s1192_s13   ;;  %s992_s12 = sphi %s1031_s12, %s1191_s12  }
   0x4   : > { %p26_p0 = scmp.ge.s32.totalorder %s25_s17, 13  ;;  %p49_p2 = scmp.eq.s32.totalorder %s1008_s16, 0 }
   0x5   : > { %s41_s19 = sadd.s32 1, %s996_s13  ;;  %p819_p5 = scmp.ge.s32.totalorder %s1008_s16, 13 }
   0x6   : > { %s1196_s17 = smov (%p26_p0, %s25_s17), 0  ;;  %p50_p3 = por %p49_p2, %p48_p1 }
   0x7   : > { %s37_s18 = ssub.s32 %s1004_s15, %s1196_s17  ;;  %162 = sbr.rel (%p819_p5) target bundleno = 28 (0x1c), region = 20 }
   0x8   : > { %p39_p4 = scmp.eq.s32.totalorder %s37_s18, 0 }
   0xa   : > { %s1066_s20 = scalar_select %p39_p4, %s996_s13, %s41_s19  }
   0xe   : > { %165 = sbr.rel (!%p50_p3) target bundleno = 28 (0x1c), region = 24  ;;  %s167_s21 = sand.u32 (%p50_p3), 1, %s996_s13  }
   0xf   : > { %s821_s22 = sshll.u32 (%p50_p3), %s1004_s15, 2  ;;  %s820_s23 = sshll.u32 (%p50_p3), %s167_s21, 6 }
  0x10   : > { %s1074_s26 = scalar_lea.vmem (%p50_p3), %s1187_s0, %s821_s22  ;;  %s169_s27 = scalar_lea.vmem (%p50_p3), [#allocation3], %s820_s23 }
  0x11   : > { %v190_v0 = vld [vmem:[%s1074_s26] sm:$0xf] (%p50_p3)  ;;  %v192_v1 = vld [vmem:[%s1074_s26 + $0x34] sm:$0xf] (%p50_p3)  ;;  %v194_v2 = vld [vmem:[%s1074_s26 + $0x68] sm:$0xf] (%p50_p3) }
  0x12   : > { %191 = vst [vmem:[%s169_s27] sm:$0xf] (%p50_p3), %v190_v0  ;;  %193 = vst [vmem:[%s169_s27 + $0x4] sm:$0xf] (%p50_p3), %v192_v1  ;;  %v196_v3 = vld [vmem:[%s1074_s26 + $0x9c] sm:$0xf] (%p50_p3) }
  0x13   : > { %v198_v4 = vld [vmem:[%s1074_s26 + $0xd0] sm:$0xf] (%p50_p3)  ;;  %195 = vst [vmem:[%s169_s27 + $0x8] sm:$0xf] (%p50_p3), %v194_v2  ;;  %197 = vst [vmem:[%s169_s27 + $0xc] sm:$0xf] (%p50_p3), %v196_v3 }
  0x14   : > { %199 = vst [vmem:[%s169_s27 + $0x10] sm:$0xf] (%p50_p3), %v198_v4  ;;  %v200_v5 = vld [vmem:[%s1074_s26 + $0x104] sm:$0xf] (%p50_p3)  ;;  %v202_v6 = vld [vmem:[%s1074_s26 + $0x138] sm:$0xf] (%p50_p3) }
  0x15   : > { %v204_v7 = vld [vmem:[%s1074_s26 + $0x16c] sm:$0xf]  ;;  %201 = vst [vmem:[%s169_s27 + $0x14] sm:$0xf] %v200_v5  ;;  %203 = vst [vmem:[%s169_s27 + $0x18] sm:$0xf] %v202_v6 }
  0x16   : > { %205 = vst [vmem:[%s169_s27 + $0x1c] sm:$0xf] %v204_v7  ;;  %v206_v8 = vld [vmem:[%s1074_s26 + $0x1a0] sm:$0xf]  ;;  %v208_v9 = vld [vmem:[%s1074_s26 + $0x1d4] sm:$0xf] }
  0x17   : > { %v210_v10 = vld [vmem:[%s1074_s26 + $0x208] sm:$0xf]  ;;  %207 = vst [vmem:[%s169_s27 + $0x20] sm:$0xf] %v206_v8  ;;  %209 = vst [vmem:[%s169_s27 + $0x24] sm:$0xf] %v208_v9 }
  0x18   : > { %211 = vst [vmem:[%s169_s27 + $0x28] sm:$0xf] %v210_v10  ;;  %v212_v11 = vld [vmem:[%s1074_s26 + $0x23c] sm:$0xf]  ;;  %v214_v12 = vld [vmem:[%s1074_s26 + $0x270] sm:$0xf] }
  0x19   : > { %v216_v13 = vld [vmem:[%s1074_s26 + $0x2a4] sm:$0xf]  ;;  %213 = vst [vmem:[%s169_s27 + $0x2c] sm:$0xf] %v212_v11  ;;  %215 = vst [vmem:[%s169_s27 + $0x30] sm:$0xf] %v214_v12 }
  0x1a   : > { %217 = vst [vmem:[%s169_s27 + $0x34] sm:$0xf] %v216_v13  ;;  %v218_v14 = vld [vmem:[%s1074_s26 + $0x2d8] sm:$0xf]  ;;  %v220_v15 = vld [vmem:[%s1074_s26 + $0x30c] sm:$0xf] }
  0x1b   : > { %219 = vst [vmem:[%s169_s27 + $0x38] sm:$0xf] %v218_v14  ;;  %221 = vst [vmem:[%s169_s27 + $0x3c] sm:$0xf] %v220_v15 }
  0x1c PF: > { %p822_p6 = scmp.ge.s32.totalorder %s1008_s16, 1  ;;  %p287_p7 = scmp.lt.s32.totalorder %s1008_s16, 14 }
  0x1e   : > { %p288_p8 = pnand %p822_p6, %p287_p7 }
  0x1f   : > { %s294_s28 = sand.u32 (!%p288_p8), 1, %s992_s12   ;;  %s824_s29 = sshll.u32 (!%p288_p8), %s1000_s14, 4 }
  0x20   : > { %291 = sbr.rel (%p288_p8) target bundleno = 319 (0x13f), region = 69  ;;  %s823_s30 = sshll.u32 (!%p288_p8), %s294_s28, 6 }
  0x21   : > { %p333_p9 = scmp.lt.s32.totalorder (!%p288_p8), %s824_s29, 207  ;;  %s1101_s8 = scalar_lea.vmem (!%p288_p8), [#allocation3], %s823_s30 }
  0x22   : > { %p826_p10 = scmp.ne.s32.totalorder (!%p288_p8), %s1000_s14, 0 }
  0x27   : > { %s1198_s29 = smov (!%p333_p9, %s824_s29), 207  ;;  %357 = sbr.rel (%p826_p10) target bundleno = 49 (0x31), region = 77 }
  0x28   : > { %s825_s4 = sshll.u32 %s1198_s29, 2  ;;  %v1010_v16 = vmov (!%p826_p10), 0.0  }
  0x29   : > { %s1099_s7 = scalar_lea.vmem %s1188_s1, %s825_s4  ;;  %358 = vst [vmem:[#allocation2] sm:$0xff] (!%p826_p10), %v1010_v16  ;;  %359 = vst [vmem:[#allocation2 + $0x8] sm:$0xff] (!%p826_p10), %v1010_v16 }
  0x2a   : > { %360 = vst [vmem:[#allocation2 + $0x10] sm:$0xff] (!%p826_p10), %v1010_v16  ;;  %361 = vst [vmem:[#allocation2 + $0x18] sm:$0xff] (!%p826_p10), %v1010_v16 }
  0x2b   : > { %362 = vst [vmem:[#allocation2 + $0x20] sm:$0xff] (!%p826_p10), %v1010_v16  ;;  %363 = vst [vmem:[#allocation2 + $0x28] sm:$0xff] (!%p826_p10), %v1010_v16 }
  0x2c   : > { %364 = vst [vmem:[#allocation2 + $0x30] sm:$0xff] (!%p826_p10), %v1010_v16  ;;  %365 = vst [vmem:[#allocation2 + $0x38] sm:$0xff] (!%p826_p10), %v1010_v16 }
  0x2d   : > { %366 = vst [vmem:[#allocation2 + $0x40] sm:$0xff] (!%p826_p10), %v1010_v16  ;;  %367 = vst [vmem:[#allocation2 + $0x48] sm:$0xff] (!%p826_p10), %v1010_v16 }
  0x2e   : > { %368 = vst [vmem:[#allocation2 + $0x50] sm:$0xff] %v1010_v16  ;;  %369 = vst [vmem:[#allocation2 + $0x58] sm:$0xff] %v1010_v16 }
  0x2f   : > { %370 = vst [vmem:[#allocation2 + $0x60] sm:$0xff] %v1010_v16  ;;  %371 = vst [vmem:[#allocation2 + $0x68] sm:$0xff] %v1010_v16 }
  0x30   : > { %372 = vst [vmem:[#allocation2 + $0x70] sm:$0xff] %v1010_v16  ;;  %373 = vst [vmem:[#allocation2 + $0x78] sm:$0xff] %v1010_v16 }
  0x31 PF: > { %v954_v17 = vld [vmem:[%s1099_s7] sm:$0xff]   ;;  %v955_v18 = vld [vmem:[%s1099_s7 + $0x8] sm:$0xff]   ;;  %v956_v19 = vld [vmem:[%s1099_s7 + $0x10] sm:$0xff]   ;;  %p843_p11 = scmp.ne.s32.totalorder %s1000_s14, 12 }
  0x32   : > { %865 = vmatprep.subr.bf16.mxu0 %v954_v17  ;;  %897 = vmatprep.subr.bf16.mxu1 %v954_v17  ;;  %v957_v20 = vld [vmem:[%s1099_s7 + $0x18] sm:$0xff]   ;;  %v962_v21 = vld [vmem:[%s1101_s8] sm:$0xff]   ;;  %v959_v24 = vld [vmem:[%s1099_s7 + $0x28] sm:$0xff]  }
  0x33   : > { %866 = vmatpush3.bf16.msra.mxu0 %v954_v17  ;;  %905 = vmatpush3.bf16.msra.mxu1 %v954_v17  ;;  %v963_v22 = vld [vmem:[%s1101_s8 + $0x20] sm:$0xff]   ;;  %v960_v25 = vld [vmem:[%s1099_s7 + $0x30] sm:$0xff]   ;;  %v961_v26 = vld [vmem:[%s1099_s7 + $0x38] sm:$0xff]  }
  0x34   : > { %867 = vmatprep.subr.bf16.mxu0 %v955_v18  ;;  %898 = vmatprep.subr.bf16.mxu1 %v955_v18  ;;  %v958_v23 = vld [vmem:[%s1099_s7 + $0x20] sm:$0xff]   ;;  %v964_v27 = vld [vmem:[%s1101_s8 + $0x8] sm:$0xff]   ;;  %v966_v29 = vld [vmem:[%s1101_s8 + $0x10] sm:$0xff]  }
  0x35   : > { %881 = vmatprep.mubr.bf16.mxu0 %v962_v21  ;;  %889 = vmatprep.mubr.bf16.mxu1 %v963_v22  ;;  %v965_v28 = vld [vmem:[%s1101_s8 + $0x28] sm:$0xff]   ;;  %v967_v30 = vld [vmem:[%s1101_s8 + $0x30] sm:$0xff]   ;;  %v968_v31 = vld [vmem:[%s1101_s8 + $0x18] sm:$0xff]  }
  0x36   : > { %v969_v32 = vld [vmem:[%s1101_s8 + $0x38] sm:$0xff]   ;;  %v376_v33 = vld [vmem:[#allocation2 + $0x10] sm:$0xff]  ;;  %v374_v35 = vld [vmem:[#allocation2] sm:$0xff] }
  0x37   : > { %868 = vmatpush3.bf16.msra.mxu0 %v955_v18  ;;  %906 = vmatpush3.bf16.msra.mxu1 %v955_v18  ;;  %v384_v34 = vld [vmem:[#allocation2 + $0x50] sm:$0xff]  ;;  %v382_v36 = vld [vmem:[#allocation2 + $0x40] sm:$0xff]  ;;  %v377_v39 = vld [vmem:[#allocation2 + $0x18] sm:$0xff] }
  0x38   : > { %869 = vmatprep.subr.bf16.mxu0 %v956_v19  ;;  %899 = vmatprep.subr.bf16.mxu1 %v956_v19  ;;  %v385_v40 = vld [vmem:[#allocation2 + $0x58] sm:$0xff]  ;;  %v375_v45 = vld [vmem:[#allocation2 + $0x8] sm:$0xff]  ;;  %v380_v57 = vld [vmem:[#allocation2 + $0x30] sm:$0xff] }
  0x39   : > { %v383_v46 = vld [vmem:[#allocation2 + $0x48] sm:$0xff]  ;;  %v388_v58 = vld [vmem:[#allocation2 + $0x70] sm:$0xff]  ;;  %v378_v59 = vld [vmem:[#allocation2 + $0x20] sm:$0xff] }
  0x3a   : > { %v386_v60 = vld [vmem:[#allocation2 + $0x60] sm:$0xff]  ;;  %v381_v63 = vld [vmem:[#allocation2 + $0x38] sm:$0xff]  ;;  %v379_v5 = vld [vmem:[#allocation2 + $0x28] sm:$0xff] }
  0x3b   : > { %870 = vmatpush3.bf16.msra.mxu0 %v956_v19  ;;  %907 = vmatpush3.bf16.msra.mxu1 %v956_v19  ;;  %v389_v0 = vld [vmem:[#allocation2 + $0x78] sm:$0xff]  ;;  %v387_v6 = vld [vmem:[#allocation2 + $0x68] sm:$0xff]  ;;  %v844_v18 = vld [vmem:[%s1189_s2] ss:$0 sm:$0xff] (!%p843_p11) }
  0x3c   : > { %871 = vmatprep.subr.bf16.mxu0 %v957_v20  ;;  %900 = vmatprep.subr.bf16.mxu1 %v957_v20 }
  0x3f   : > { %872 = vmatpush3.bf16.msra.mxu0 %v957_v20  ;;  %908 = vmatpush3.bf16.msra.mxu1 %v957_v20 }
  0x40   : > { %873 = vmatprep.subr.bf16.mxu0 %v958_v23  ;;  %901 = vmatprep.subr.bf16.mxu1 %v958_v23 }
  0x43   : > { %874 = vmatpush3.bf16.msra.mxu0 %v958_v23  ;;  %909 = vmatpush3.bf16.msra.mxu1 %v958_v23 }
  0x44   : > { %875 = vmatprep.subr.bf16.mxu0 %v959_v24  ;;  %902 = vmatprep.subr.bf16.mxu1 %v959_v24 }
  0x47   : > { %876 = vmatpush3.bf16.msra.mxu0 %v959_v24  ;;  %910 = vmatpush3.bf16.msra.mxu1 %v959_v24 }
  0x48   : > { %877 = vmatprep.subr.bf16.mxu0 %v960_v25  ;;  %903 = vmatprep.subr.bf16.mxu1 %v960_v25 }
  0x4b   : > { %878 = vmatpush3.bf16.msra.mxu0 %v960_v25  ;;  %911 = vmatpush3.bf16.msra.mxu1 %v960_v25 }
  0x4c   : > { %879 = vmatprep.subr.bf16.mxu0 %v961_v26  ;;  %904 = vmatprep.subr.bf16.mxu1 %v961_v26 }
  0x4f   : > { %880 = vmatpush3.bf16.msra.mxu0 %v961_v26  ;;  %912 = vmatpush3.bf16.msra.mxu1 %v961_v26 }
  0x52   : > { %882 = vmatmul.mubr.bf16.vlgmr.msra.gmra.mrb[0].mxu0 %v964_v27  ;;  %890 = vmatmul.mubr.bf16.vlgmr.msra.gmra.mrb[0].mxu1 %v965_v28 }
  0x53   : > { %885 = vmatprep.mubr.bf16.mxu0 %v966_v29  ;;  %893 = vmatprep.mubr.bf16.mxu1 %v967_v30 }
  0x5a   : > { %886 = vmatmul.mubr.bf16.gmra.mrb[4].mxu0 %v968_v31  ;;  %894 = vmatmul.mubr.bf16.gmra.mrb[4].mxu1 %v969_v32 }
 0x125   : > { %v883_v37 = vpop.f32.mrb[0].mxu0  ;;  %v891_v38 = vpop.f32.mrb[0].mxu1 }
 0x126   : > { %v617_v41 = vadd.f32 %v883_v37, %v376_v33  ;;  %v625_v42 = vadd.f32 %v891_v38, %v384_v34  ;;  %v552_v43 = vpop.f32.mrb[1].mxu0  ;;  %v584_v44 = vpop.f32.mrb[1].mxu1 }
 0x127   : > { %v615_v47 = vadd.f32 %v552_v43, %v374_v35  ;;  %v623_v48 = vadd.f32 %v584_v44, %v382_v36  ;;  %v884_v49 = vpop.f32.mrb[2].mxu0  ;;  %v892_v50 = vpop.f32.mrb[2].mxu1 }
 0x128   : > { %633 = vst [vmem:[#allocation2 + $0x10] sm:$0xff] %v617_v41  ;;  %641 = vst [vmem:[#allocation2 + $0x50] sm:$0xff] %v625_v42  ;;  %v618_v51 = vadd.f32 %v884_v49, %v377_v39  ;;  %v626_v52 = vadd.f32 %v892_v50, %v385_v40  ;;  %v555_v53 = vpop.f32.mrb[3].mxu0  ;;  %v587_v54 = vpop.f32.mrb[3].mxu1 }
 0x129   : > { %631 = vst [vmem:[#allocation2] sm:$0xff] %v615_v47  ;;  %639 = vst [vmem:[#allocation2 + $0x40] sm:$0xff] %v623_v48  ;;  %v616_v55 = vadd.f32 %v555_v53, %v375_v45  ;;  %v624_v56 = vadd.f32 %v587_v54, %v383_v46 }
 0x12a   : > { %634 = vst [vmem:[#allocation2 + $0x18] sm:$0xff] %v618_v51  ;;  %642 = vst [vmem:[#allocation2 + $0x58] sm:$0xff] %v626_v52 }
 0x12b   : > { %632 = vst [vmem:[#allocation2 + $0x8] sm:$0xff] %v616_v55  ;;  %640 = vst [vmem:[#allocation2 + $0x48] sm:$0xff] %v624_v56 }
 0x12d   : > { %v887_v61 = vpop.f32.mrb[4].mxu0  ;;  %v895_v62 = vpop.f32.mrb[4].mxu1  ;;  %650 = sbr.rel (%p843_p11) target bundleno = 319 (0x13f), region = 81 }
 0x12e   : > { %v621_v1 = vadd.f32 %v887_v61, %v380_v57  ;;  %v629_v2 = vadd.f32 %v895_v62, %v388_v58  ;;  %v568_v3 = vpop.f32.mrb[5].mxu0  ;;  %v600_v4 = vpop.f32.mrb[5].mxu1 }
 0x12f   : > { %v619_v7 = vadd.f32 %v568_v3, %v378_v59  ;;  %v627_v8 = vadd.f32 %v600_v4, %v386_v60  ;;  %v888_v9 = vpop.f32.mrb[6].mxu0  ;;  %v896_v10 = vpop.f32.mrb[6].mxu1  ;;  %v653_v22 = vld [vmem:[#allocation2 + $0x10] sm:$0xff] (!%p843_p11) }
 0x130   : > { %637 = vst [vmem:[#allocation2 + $0x30] sm:$0xff] %v621_v1  ;;  %645 = vst [vmem:[#allocation2 + $0x70] sm:$0xff] %v629_v2  ;;  %v622_v11 = vadd.f32 %v888_v9, %v381_v63  ;;  %v630_v12 = vadd.f32 %v896_v10, %v389_v0  ;;  %v571_v13 = vpop.f32.mrb[7].mxu0  ;;  %v603_v14 = vpop.f32.mrb[7].mxu1  ;;  %v651_v17 = vld [vmem:[#allocation2] sm:$0xff] (!%p843_p11)  ;;  %v676_v25 = vadd.f32 (!%p843_p11), %v844_v18, %v653_v22  ;;  %v661_v36 = vld [vmem:[#allocation2 + $0x50] sm:$0xff] (!%p843_p11) }
 0x131   : > { %635 = vst [vmem:[#allocation2 + $0x20] sm:$0xff] %v619_v7  ;;  %643 = vst [vmem:[#allocation2 + $0x60] sm:$0xff] %v627_v8  ;;  %v620_v15 = vadd.f32 %v571_v13, %v379_v5  ;;  %v628_v16 = vadd.f32 %v603_v14, %v387_v6  ;;  %v674_v20 = vadd.f32 (!%p843_p11), %v844_v18, %v651_v17  ;;  %v654_v23 = vld [vmem:[#allocation2 + $0x18] sm:$0xff] (!%p843_p11)  ;;  %v659_v34 = vld [vmem:[#allocation2 + $0x40] sm:$0xff] (!%p843_p11) }
 0x132   : > { %638 = vst [vmem:[#allocation2 + $0x38] sm:$0xff] %v622_v11  ;;  %646 = vst [vmem:[#allocation2 + $0x78] sm:$0xff] %v630_v12  ;;  %v652_v19 = vld [vmem:[#allocation2 + $0x8] sm:$0xff] (!%p843_p11)  ;;  %v677_v26 = vadd.f32 (!%p843_p11), %v844_v18, %v654_v23  ;;  %v682_v37 = vadd.f32 (!%p843_p11), %v844_v18, %v659_v34  ;;  %v684_v39 = vadd.f32 (!%p843_p11), %v844_v18, %v661_v36  ;;  %v662_v40 = vld [vmem:[#allocation2 + $0x58] sm:$0xff] (!%p843_p11) }
 0x133   : > { %636 = vst [vmem:[#allocation2 + $0x28] sm:$0xff] %v620_v15  ;;  %644 = vst [vmem:[#allocation2 + $0x68] sm:$0xff] %v628_v16  ;;  %v675_v21 = vadd.f32 (!%p843_p11), %v844_v18, %v652_v19  ;;  %v660_v35 = vld [vmem:[#allocation2 + $0x48] sm:$0xff] (!%p843_p11)  ;;  %v685_v43 = vadd.f32 (!%p843_p11), %v844_v18, %v662_v40 }
 0x134   : > { %690 = vst [vmem:[%s1190_s3] sm:$0xff] %v674_v20  ;;  %692 = vst [vmem:[%s1190_s3 + $0x10] sm:$0xff] %v676_v25  ;;  %v683_v38 = vadd.f32 %v844_v18, %v660_v35 }
 0x135   : > { %691 = vst [vmem:[%s1190_s3 + $0x8] sm:$0xff] %v675_v21  ;;  %693 = vst [vmem:[%s1190_s3 + $0x18] sm:$0xff] %v677_v26 }
 0x136   : > { %698 = vst [vmem:[%s1190_s3 + $0x40] sm:$0xff] %v682_v37  ;;  %699 = vst [vmem:[%s1190_s3 + $0x48] sm:$0xff] %v683_v38 }
 0x137   : > { %v657_v29 = vld [vmem:[#allocation2 + $0x30] sm:$0xff]  ;;  %700 = vst [vmem:[%s1190_s3 + $0x50] sm:$0xff] %v684_v39  ;;  %701 = vst [vmem:[%s1190_s3 + $0x58] sm:$0xff] %v685_v43 }
 0x138   : > { %v655_v24 = vld [vmem:[#allocation2 + $0x20] sm:$0xff]  ;;  %v680_v32 = vadd.f32 %v844_v18, %v657_v29  ;;  %v665_v46 = vld [vmem:[#allocation2 + $0x70] sm:$0xff] }
 0x139   : > { %v678_v27 = vadd.f32 %v844_v18, %v655_v24  ;;  %v658_v30 = vld [vmem:[#allocation2 + $0x38] sm:$0xff]  ;;  %v663_v41 = vld [vmem:[#allocation2 + $0x60] sm:$0xff]  ;;  %v688_v48 = vadd.f32 %v844_v18, %v665_v46 }
 0x13a   : > { %v656_v28 = vld [vmem:[#allocation2 + $0x28] sm:$0xff]  ;;  %v681_v33 = vadd.f32 %v844_v18, %v658_v30  ;;  %696 = vst [vmem:[%s1190_s3 + $0x30] sm:$0xff] %v680_v32  ;;  %v686_v44 = vadd.f32 %v844_v18, %v663_v41  ;;  %v666_v47 = vld [vmem:[#allocation2 + $0x78] sm:$0xff] }
 0x13b   : > { %v679_v31 = vadd.f32 %v844_v18, %v656_v28  ;;  %694 = vst [vmem:[%s1190_s3 + $0x20] sm:$0xff] %v678_v27  ;;  %v664_v42 = vld [vmem:[#allocation2 + $0x68] sm:$0xff]  ;;  %v689_v49 = vadd.f32 %v844_v18, %v666_v47  ;;  %704 = vst [vmem:[%s1190_s3 + $0x70] sm:$0xff] %v688_v48 }
 0x13c   : > { %697 = vst [vmem:[%s1190_s3 + $0x38] sm:$0xff] %v681_v33  ;;  %v687_v45 = vadd.f32 %v844_v18, %v664_v42  ;;  %702 = vst [vmem:[%s1190_s3 + $0x60] sm:$0xff] %v686_v44 }
 0x13d   : > { %695 = vst [vmem:[%s1190_s3 + $0x28] sm:$0xff] %v679_v31  ;;  %705 = vst [vmem:[%s1190_s3 + $0x78] sm:$0xff] %v689_v49 }
 0x13e   : > { %703 = vst [vmem:[%s1190_s3 + $0x68] sm:$0xff] %v687_v45 }
 0x13f PF: > { %s13_s16 = sadd.s32 1, %s1008_s16   ;;  %s1191_s12 = smov %s996_s13 }
 0x140   : > { %p10_p12 = scmp.ge.s32.totalorder %s13_s16, 15   ;;  %s1192_s13 = smov %s1066_s20 }
 0x141   : > { %s1193_s14 = smov %s1004_s15  ;;  %s1194_s15 = smov %s1196_s17 }
 0x142   :  { %12 = sbr.rel (!%p10_p12) target bundleno = 3 (0x3), region = 122 }

// kernel: conv_cfc_forward.9
= control target key start
LH: loop header
LB: loop body
LE: loop exit
PB: predicated region body
PF: predicated region fallthrough
CT: control target
= control target key end

     0   :  { %s1315_s12 = smov 0   ;;  %s1317_s13 = smov 0   ;;  %s1451_s0 = inlined_call_operand.vmem [shape: bf16[32,3200], index: 0, kind: input, shape index: {}]   ;;  %s1452_s1 = inlined_call_operand.vmem [shape: bf16[3200,128], index: 1, kind: input, shape index: {}]   ;;  %s1453_s2 = inlined_call_operand.vmem [shape: f32[1,128], index: 2, kind: input, shape index: {}]   ;;  %s1454_s3 = inlined_call_operand.vmem [shape: f32[32,128], index: 3, kind: output, shape index: {}]  }
   0x1   :  { %s1319_s14 = smov 0   ;;  %s1321_s15 = smov 0  }
   0x2   :  { %s1323_s16 = smov 0  }
   0x3 LB: > { %s25_s17 = sadd.s32 1, %s1288_s15  ;;  %p48_p1 = scmp.ne.s32.totalorder %s1280_s13, %s1276_s12  ;;  %s1292_s16 = sphi %s1323_s16, %s13_s16   ;;  %s1288_s15 = sphi %s1321_s15, %s1458_s15   ;;  %s1284_s14 = sphi %s1319_s14, %s1457_s14   ;;  %s1280_s13 = sphi %s1317_s13, %s1456_s13   ;;  %s1276_s12 = sphi %s1315_s12, %s1455_s12  }
   0x4   : > { %p26_p0 = scmp.ge.s32.totalorder %s25_s17, 5  ;;  %p49_p2 = scmp.eq.s32.totalorder %s1292_s16, 0 }
   0x5   : > { %s41_s19 = sadd.s32 1, %s1280_s13  ;;  %p1001_p5 = scmp.ge.s32.totalorder %s1292_s16, 5 }
   0x6   : > { %s1460_s17 = smov (%p26_p0, %s25_s17), 0  ;;  %p50_p3 = por %p49_p2, %p48_p1 }
   0x7   : > { %s37_s18 = ssub.s32 %s1288_s15, %s1460_s17  ;;  %162 = sbr.rel (%p1001_p5) target bundleno = 25 (0x19), region = 20 }
   0x8   : > { %p39_p4 = scmp.eq.s32.totalorder %s37_s18, 0 }
   0xa   : > { %s1350_s20 = scalar_select %p39_p4, %s1280_s13, %s41_s19  }
   0xe   : > { %165 = sbr.rel (!%p50_p3) target bundleno = 25 (0x19), region = 24  ;;  %s167_s21 = sand.u32 (%p50_p3), 1, %s1280_s13  }
   0xf   : > { %s1070_s22 = smul.u32 (%p50_p3), 20, %s1288_s15 }
  0x10   : > { %s1157_s23 = smul.u32 (%p50_p3), 80, %s167_s21 }
  0x11   : > { %s175_s26 = scalar_lea.vmem (%p50_p3), %s1451_s0, %s1070_s22 }
  0x12   : > { %v190_v0 = vld [vmem:[%s175_s26] sm:$0xff] (%p50_p3)  ;;  %v192_v1 = vld [vmem:[%s175_s26 + $0x8] sm:$0xff] (%p50_p3)  ;;  %s169_s27 = scalar_lea.vmem (%p50_p3), [#allocation3], %s1157_s23  ;;  %v200_v5 = vld [vmem:[%s175_s26 + $0xd0] sm:$0xff] (%p50_p3) }
  0x13   : > { %v194_v2 = vld [vmem:[%s175_s26 + $0x64] sm:$0xff] (%p50_p3)  ;;  %191 = vst [vmem:[%s169_s27] sm:$0xff] (%p50_p3), %v190_v0  ;;  %193 = vst [vmem:[%s169_s27 + $0x8] sm:$0xff] (%p50_p3), %v192_v1  ;;  %v196_v3 = vld [vmem:[%s175_s26 + $0x6c] sm:$0xff] (%p50_p3) }
  0x14   : > { %195 = vst [vmem:[%s169_s27 + $0x14] sm:$0xff] (%p50_p3), %v194_v2  ;;  %v198_v4 = vld [vmem:[%s175_s26 + $0xc8] sm:$0xff] (%p50_p3)  ;;  %197 = vst [vmem:[%s169_s27 + $0x1c] sm:$0xff] (%p50_p3), %v196_v3  ;;  %v204_v7 = vld [vmem:[%s175_s26 + $0x134] sm:$0xff] (%p50_p3) }
  0x15   : > { %199 = vst [vmem:[%s169_s27 + $0x28] sm:$0xff] %v198_v4  ;;  %201 = vst [vmem:[%s169_s27 + $0x30] sm:$0xff] %v200_v5  ;;  %v202_v6 = vld [vmem:[%s175_s26 + $0x12c] sm:$0xff]  ;;  %v1005_v9 = vld [vmem:[%s175_s26 + $0x74] sm:$0xf] }
  0x16   : > { %v1003_v8 = vld [vmem:[%s175_s26 + $0x10] sm:$0xf]  ;;  %203 = vst [vmem:[%s169_s27 + $0x3c] sm:$0xff] %v202_v6  ;;  %205 = vst [vmem:[%s169_s27 + $0x44] sm:$0xff] %v204_v7  ;;  %v1007_v10 = vld [vmem:[%s175_s26 + $0xd8] sm:$0xf] }
  0x17   : > { %1004 = vst [vmem:[%s169_s27 + $0x10] sm:$0xf] %v1003_v8  ;;  %v1009_v11 = vld [vmem:[%s175_s26 + $0x13c] sm:$0xf]  ;;  %1006 = vst [vmem:[%s169_s27 + $0x24] sm:$0xf] %v1005_v9 }
  0x18   : > { %1008 = vst [vmem:[%s169_s27 + $0x38] sm:$0xf] %v1007_v10  ;;  %1010 = vst [vmem:[%s169_s27 + $0x4c] sm:$0xf] %v1009_v11 }
  0x19 PF: > { %p1011_p6 = scmp.ge.s32.totalorder %s1292_s16, 1  ;;  %p237_p7 = scmp.lt.s32.totalorder %s1292_s16, 6 }
  0x1b   : > { %p238_p8 = pnand %p1011_p6, %p237_p7 }
  0x1c   : > { %s244_s28 = sand.u32 (!%p238_p8), 1, %s1276_s12   ;;  %s283_s29 = smul.u32 (!%p238_p8), 80, %s1284_s14 }
  0x1d   : > { %241 = sbr.rel (%p238_p8) target bundleno = 341 (0x155), region = 54  ;;  %p1013_p10 = scmp.ne.s32.totalorder (!%p238_p8), %s1284_s14, 0 }
  0x1e   : > { %s1158_s30 = smul.u32 (!%p238_p8), 80, %s244_s28  ;;  %p284_p9 = scmp.lt.s32.totalorder (!%p238_p8), %s283_s29, 399 }
  0x20   : > { %s1367_s8 = scalar_lea.vmem (!%p238_p8), [#allocation3], %s1158_s30 }
  0x24   : > { %s1462_s29 = smov (!%p284_p9, %s283_s29), 399  ;;  %308 = sbr.rel (%p1013_p10) target bundleno = 43 (0x2b), region = 62 }
  0x25   : > { %s1012_s4 = sshll.u32 %s1462_s29, 2  ;;  %v1294_v12 = vmov (!%p1013_p10), 0.0  }
  0x26   : > { %s1365_s7 = scalar_lea.vmem %s1452_s1, %s1012_s4  ;;  %309 = vst [vmem:[#allocation2] sm:$0xff] (!%p1013_p10), %v1294_v12  ;;  %310 = vst [vmem:[#allocation2 + $0x8] sm:$0xff] (!%p1013_p10), %v1294_v12 }
  0x27   : > { %311 = vst [vmem:[#allocation2 + $0x10] sm:$0xff] (!%p1013_p10), %v1294_v12  ;;  %312 = vst [vmem:[#allocation2 + $0x18] sm:$0xff] (!%p1013_p10), %v1294_v12 }
  0x2b PF: > { %v1200_v13 = vld [vmem:[%s1365_s7 + $0x40] sm:$0xff]   ;;  %v1204_v17 = vld [vmem:[%s1365_s7 + $0x48] sm:$0xff]   ;;  %v1208_v21 = vld [vmem:[%s1365_s7 + $0x50] sm:$0xff]   ;;  %p1064_p11 = scmp.ne.s32.totalorder %s1284_s14, 4 }
  0x2c   : > { %v1201_v14 = vld [vmem:[%s1365_s7 + $0xc0] sm:$0xff]   ;;  %1071 = vmatprep.subr.bf16.mxu0 %v1200_v13  ;;  %v1205_v18 = vld [vmem:[%s1365_s7 + $0xc8] sm:$0xff]   ;;  %v1209_v22 = vld [vmem:[%s1365_s7 + $0xd0] sm:$0xff]  }
  0x2d   : > { %v1202_v15 = vld [vmem:[%s1365_s7] sm:$0xff]   ;;  %1099 = vmatprep.subr.bf16.mxu1 %v1201_v14  ;;  %v1206_v19 = vld [vmem:[%s1365_s7 + $0x8] sm:$0xff]   ;;  %v1210_v23 = vld [vmem:[%s1365_s7 + $0x10] sm:$0xff]  }
  0x2e   : > { %v1203_v16 = vld [vmem:[%s1365_s7 + $0x80] sm:$0xff]   ;;  %1072 = vmatpush3.bf16.msra.mxu0 %v1202_v15  ;;  %v1207_v20 = vld [vmem:[%s1365_s7 + $0x88] sm:$0xff]   ;;  %v1211_v24 = vld [vmem:[%s1365_s7 + $0x90] sm:$0xff]  }
  0x2f   : > { %1100 = vmatpush3.bf16.msra.mxu1 %v1203_v16  ;;  %1073 = vmatprep.subr.bf16.mxu0 %v1204_v17  ;;  %v1212_v25 = vld [vmem:[%s1365_s7 + $0x58] sm:$0xff]   ;;  %v1216_v29 = vld [vmem:[%s1365_s7 + $0x60] sm:$0xff]   ;;  %v1220_v33 = vld [vmem:[%s1365_s7 + $0x68] sm:$0xff]  }
  0x30   : > { %1101 = vmatprep.subr.bf16.mxu1 %v1205_v18  ;;  %v1213_v26 = vld [vmem:[%s1365_s7 + $0xd8] sm:$0xff]   ;;  %v1217_v30 = vld [vmem:[%s1365_s7 + $0xe0] sm:$0xff]   ;;  %v1221_v34 = vld [vmem:[%s1365_s7 + $0xe8] sm:$0xff]  }
  0x31   : > { %v1214_v27 = vld [vmem:[%s1365_s7 + $0x18] sm:$0xff]   ;;  %v1218_v31 = vld [vmem:[%s1365_s7 + $0x20] sm:$0xff]   ;;  %v1222_v35 = vld [vmem:[%s1365_s7 + $0x28] sm:$0xff]  }
  0x32   : > { %1074 = vmatpush3.bf16.msra.mxu0 %v1206_v19  ;;  %v1215_v28 = vld [vmem:[%s1365_s7 + $0x98] sm:$0xff]   ;;  %v1219_v32 = vld [vmem:[%s1365_s7 + $0xa0] sm:$0xff]   ;;  %v1223_v36 = vld [vmem:[%s1365_s7 + $0xa8] sm:$0xff]  }
  0x33   : > { %1102 = vmatpush3.bf16.msra.mxu1 %v1207_v20  ;;  %1075 = vmatprep.subr.bf16.mxu0 %v1208_v21  ;;  %v1224_v37 = vld [vmem:[%s1365_s7 + $0x70] sm:$0xff]   ;;  %v1228_v41 = vld [vmem:[%s1365_s7 + $0x78] sm:$0xff]   ;;  %v1238_v49 = vld [vmem:[%s1365_s7 + $0x100] sm:$0xff]  }
  0x34   : > { %1103 = vmatprep.subr.bf16.mxu1 %v1209_v22  ;;  %v1225_v38 = vld [vmem:[%s1365_s7 + $0xf0] sm:$0xff]   ;;  %v1229_v42 = vld [vmem:[%s1365_s7 + $0xf8] sm:$0xff]   ;;  %v1239_v50 = vld [vmem:[%s1365_s7 + $0x108] sm:$0xff]  }
  0x35   : > { %v1226_v39 = vld [vmem:[%s1365_s7 + $0x30] sm:$0xff]   ;;  %v1230_v43 = vld [vmem:[%s1365_s7 + $0x38] sm:$0xff]   ;;  %v1242_v58 = vld [vmem:[%s1365_s7 + $0x120] sm:$0xff]  }
  0x36   : > { %1076 = vmatpush3.bf16.msra.mxu0 %v1210_v23  ;;  %v1227_v40 = vld [vmem:[%s1365_s7 + $0xb0] sm:$0xff]   ;;  %v1231_v44 = vld [vmem:[%s1365_s7 + $0xb8] sm:$0xff]   ;;  %v1247_v59 = vld [vmem:[%s1365_s7 + $0x128] sm:$0xff]  }
  0x37   : > { %1104 = vmatpush3.bf16.msra.mxu1 %v1211_v24  ;;  %1077 = vmatprep.subr.bf16.mxu0 %v1212_v25  ;;  %v1232_v45 = vld [vmem:[%s1367_s8] ss:$20 sps:$4 sm:$0xff]   ;;  %v1234_v46 = vld [vmem:[%s1367_s8 + $0x4] ss:$20 sps:$4 sm:$0xff]   ;;  %v1235_v47 = vld [vmem:[%s1367_s8 + $0x8] ss:$20 sps:$4 sm:$0xff]  }
  0x38   : > { %1105 = vmatprep.subr.bf16.mxu1 %v1213_v26  ;;  %v1237_v48 = vld [vmem:[%s1367_s8 + $0xc] ss:$20 sps:$4 sm:$0xff]   ;;  %733 = vmatprep.mubr.bf16.mxu0 %v1234_v46  ;;  %v1245_v53 = vld [vmem:[%s1367_s8 + $0x34] ss:$20 sps:$4 sm:$0xff]   ;;  %v1249_v56 = vld [vmem:[%s1367_s8 + $0x30] ss:$20 sps:$4 sm:$0xff]  }
  0x39   : > { %782 = vmatprep.mubr.bf16.mxu1 %v1237_v48  ;;  %v1240_v51 = vld [vmem:[%s1365_s7 + $0x110] sm:$0xff]   ;;  %v1241_v54 = vld [vmem:[%s1365_s7 + $0x118] sm:$0xff]  }
  0x3a   : > { %1078 = vmatpush3.bf16.msra.mxu0 %v1214_v27  ;;  %v1243_v52 = vld [vmem:[%s1367_s8 + $0x2c] ss:$20 sps:$4 sm:$0xff]   ;;  %v1248_v55 = vld [vmem:[%s1367_s8 + $0x28] ss:$20 sps:$4 sm:$0xff]   ;;  %v1252_v57 = vld [vmem:[%s1367_s8 + $0x10] ss:$20 sps:$4 sm:$0xff]  }
  0x3b   : > { %1106 = vmatpush3.bf16.msra.mxu1 %v1215_v28  ;;  %1079 = vmatprep.subr.bf16.mxu0 %v1216_v29  ;;  %v1250_v60 = vld [vmem:[%s1365_s7 + $0x130] sm:$0xff]   ;;  %v1251_v61 = vld [vmem:[%s1365_s7 + $0x138] sm:$0xff]  }
  0x3c   : > { %1107 = vmatprep.subr.bf16.mxu1 %v1217_v30  ;;  %v1253_v62 = vld [vmem:[%s1367_s8 + $0x38] ss:$20 sps:$4 sm:$0xff]   ;;  %v315_v27 = vld [vmem:[#allocation2 + $0x10] sm:$0xff]  ;;  %v313_v30 = vld [vmem:[#allocation2] sm:$0xff] }
  0x3e   : > { %1080 = vmatpush3.bf16.msra.mxu0 %v1218_v31 }
  0x3f   : > { %1108 = vmatpush3.bf16.msra.mxu1 %v1219_v32  ;;  %1081 = vmatprep.subr.bf16.mxu0 %v1220_v33  ;;  %v316_v33 = vld [vmem:[#allocation2 + $0x18] sm:$0xff] }
  0x40   : > { %1109 = vmatprep.subr.bf16.mxu1 %v1221_v34 }
  0x42   : > { %1082 = vmatpush3.bf16.msra.mxu0 %v1222_v35 }
  0x43   : > { %1110 = vmatpush3.bf16.msra.mxu1 %v1223_v36  ;;  %1083 = vmatprep.subr.bf16.mxu0 %v1224_v37  ;;  %v314_v37 = vld [vmem:[#allocation2 + $0x8] sm:$0xff] }
  0x44   : > { %1111 = vmatprep.subr.bf16.mxu1 %v1225_v38 }
  0x46   : > { %1084 = vmatpush3.bf16.msra.mxu0 %v1226_v39 }
  0x47   : > { %1112 = vmatpush3.bf16.msra.mxu1 %v1227_v40  ;;  %1085 = vmatprep.subr.bf16.mxu0 %v1228_v41 }
  0x48   : > { %1113 = vmatprep.subr.bf16.mxu1 %v1229_v42 }
  0x4a   : > { %1086 = vmatpush3.bf16.msra.mxu0 %v1230_v43 }
  0x4b   : > { %1114 = vmatpush3.bf16.msra.mxu1 %v1231_v44  ;;  %1137 = vmatprep.subr.bf16.mxu0 %v1238_v49  ;;  %v1065_v44 = vld [vmem:[%s1453_s2] ss:$0 sm:$0xff] (!%p1064_p11) }
  0x4d   : > { %734 = vmatmul.mubr.bf16.vlgmr.msra.gmra.mrb[0].mxu0 %v1232_v45 }
  0x4e   : > { %783 = vmatmul.mubr.bf16.vlgmr.msra.gmra.mrb[0].mxu1 %v1235_v47  ;;  %1138 = vmatpush3.bf16.msra.mxu0 %v1238_v49 }
  0x4f   : > { %1139 = vmatprep.subr.bf16.mxu0 %v1239_v50  ;;  %741 = vmatprep.mubr.bf16.mxu0 %v1243_v52 }
  0x50   : > { %790 = vmatprep.mubr.bf16.mxu1 %v1245_v53 }
  0x52   : > { %1140 = vmatpush3.bf16.msra.mxu0 %v1239_v50 }
  0x53   : > { %1141 = vmatprep.subr.bf16.mxu0 %v1240_v51 }
  0x55   : > { %742 = vmatmul.mubr.bf16.gmra.mrb[4].mxu0 %v1248_v55 }
  0x56   : > { %791 = vmatmul.mubr.bf16.gmra.mrb[4].mxu1 %v1249_v56  ;;  %1142 = vmatpush3.bf16.msra.mxu0 %v1240_v51 }
  0x57   : > { %1143 = vmatprep.subr.bf16.mxu0 %v1241_v54  ;;  %1153 = vmatprep.mubr.bf16.mxu0 %v1252_v57 }
  0x5a   : > { %1144 = vmatpush3.bf16.msra.mxu0 %v1241_v54 }
  0x5b   : > { %1145 = vmatprep.subr.bf16.mxu0 %v1242_v58 }
  0x5e   : > { %1146 = vmatpush3.bf16.msra.mxu0 %v1242_v58 }
  0x5f   : > { %1147 = vmatprep.subr.bf16.mxu0 %v1247_v59 }
  0x62   : > { %1148 = vmatpush3.bf16.msra.mxu0 %v1247_v59 }
  0x63   : > { %1149 = vmatprep.subr.bf16.mxu0 %v1250_v60 }
  0x66   : > { %1150 = vmatpush3.bf16.msra.mxu0 %v1250_v60 }
  0x67   : > { %1151 = vmatprep.subr.bf16.mxu0 %v1251_v61 }
  0x6a   : > { %1152 = vmatpush3.bf16.msra.mxu0 %v1251_v61 }
  0x6d   : > { %1154 = vmatmul.mubr.bf16.vlgmr.msra.gmra.mrb[8].mxu0 %v1253_v62 }
 0x120   : > { %v1087_v63 = vpop.f32.mrb[0].mxu0 }
 0x121   : > { %v1115_v0 = vpop.f32.mrb[0].mxu1  ;;  %v1088_v1 = vpop.f32.mrb[1].mxu0 }
 0x122   : > { %v1089_v2 = vadd.f32 %v1088_v1, %v1087_v63  ;;  %v1116_v3 = vpop.f32.mrb[1].mxu1  ;;  %v1090_v4 = vpop.f32.mrb[2].mxu0 }
 0x123   : > { %v1117_v5 = vadd.f32 %v1116_v3, %v1115_v0  ;;  %v1118_v6 = vpop.f32.mrb[2].mxu1  ;;  %v1091_v7 = vpop.f32.mrb[3].mxu0 }
 0x124   : > { %v1092_v8 = vadd.f32 %v1091_v7, %v1090_v4  ;;  %v1119_v9 = vpop.f32.mrb[3].mxu1 }
 0x125   : > { %v1120_v10 = vadd.f32 %v1119_v9, %v1118_v6  ;;  %v785_v11 = vadd.f32 %v1117_v5, %v1089_v2 }
 0x127   : > { %v788_v12 = vadd.f32 %v1120_v10, %v1092_v8 }
 0x128   : > { %v1093_v13 = vpop.f32.mrb[4].mxu0 }
 0x129   : > { %v1121_v14 = vpop.f32.mrb[4].mxu1  ;;  %v1094_v15 = vpop.f32.mrb[5].mxu0 }
 0x12a   : > { %v1095_v16 = vadd.f32 %v1094_v15, %v1093_v13  ;;  %v1122_v17 = vpop.f32.mrb[5].mxu1  ;;  %v1096_v18 = vpop.f32.mrb[6].mxu0 }
 0x12b   : > { %v1123_v19 = vadd.f32 %v1122_v17, %v1121_v14  ;;  %v1124_v20 = vpop.f32.mrb[6].mxu1  ;;  %v1097_v21 = vpop.f32.mrb[7].mxu0 }
 0x12c   : > { %v1098_v22 = vadd.f32 %v1097_v21, %v1096_v18  ;;  %v1125_v23 = vpop.f32.mrb[7].mxu1 }
 0x12d   : > { %v1126_v24 = vadd.f32 %v1125_v23, %v1124_v20  ;;  %v793_v25 = vadd.f32 %v1123_v19, %v1095_v16 }
 0x12f   : > { %v796_v26 = vadd.f32 %v1126_v24, %v1098_v22 }
 0x140   : > { %v1155_v28 = vpop.f32.mrb[8].mxu0 }
 0x141   : > { %v842_v29 = vadd.f32 %v1155_v28, %v793_v25  ;;  %v833_v31 = vpop.f32.mrb[9].mxu0 }
 0x142   : > { %v834_v32 = vadd.f32 %v833_v31, %v785_v11  ;;  %v1156_v34 = vpop.f32.mrb[10].mxu0  ;;  %859 = sbr.rel (%p1064_p11) target bundleno = 341 (0x155), region = 66 }
 0x143   : > { %v850_v35 = vadd.f32 %v842_v29, %v315_v27  ;;  %v845_v36 = vadd.f32 %v1156_v34, %v796_v26  ;;  %v836_v38 = vpop.f32.mrb[11].mxu0 }
 0x144   : > { %v848_v39 = vadd.f32 %v834_v32, %v313_v30  ;;  %v837_v40 = vadd.f32 %v836_v38, %v788_v12 }
 0x145   : > { %854 = vst [vmem:[#allocation2 + $0x10] sm:$0xff] %v850_v35  ;;  %v851_v41 = vadd.f32 %v845_v36, %v316_v33 }
 0x146   : > { %852 = vst [vmem:[#allocation2] sm:$0xff] %v848_v39  ;;  %v849_v42 = vadd.f32 %v837_v40, %v314_v37 }
 0x147   : > { %855 = vst [vmem:[#allocation2 + $0x18] sm:$0xff] %v851_v41 }
 0x148   : > { %853 = vst [vmem:[#allocation2 + $0x8] sm:$0xff] %v849_v42 }
 0x14c   : > { %v862_v48 = vld [vmem:[#allocation2 + $0x10] sm:$0xff] }
 0x14d   : > { %v860_v43 = vld [vmem:[#allocation2] sm:$0xff]  ;;  %v873_v50 = vadd.f32 %v1065_v44, %v862_v48 }
 0x14e   : > { %v871_v46 = vadd.f32 %v1065_v44, %v860_v43  ;;  %v863_v49 = vld [vmem:[#allocation2 + $0x18] sm:$0xff] }
 0x14f   : > { %v861_v45 = vld [vmem:[#allocation2 + $0x8] sm:$0xff]  ;;  %v874_v51 = vadd.f32 %v1065_v44, %v863_v49  ;;  %v877_v54 = vmax.f32 %v873_v50, 0.0 }
 0x150   : > { %v872_v47 = vadd.f32 %v1065_v44, %v861_v45  ;;  %v875_v52 = vmax.f32 %v871_v46, 0.0 }
 0x151   : > { %v878_v55 = vmax.f32 %v874_v51, 0.0  ;;  %881 = vst [vmem:[%s1454_s3 + $0x10] sm:$0xff] %v877_v54 }
 0x152   : > { %v876_v53 = vmax.f32 %v872_v47, 0.0  ;;  %879 = vst [vmem:[%s1454_s3] sm:$0xff] %v875_v52 }
 0x153   : > { %882 = vst [vmem:[%s1454_s3 + $0x18] sm:$0xff] %v878_v55 }
 0x154   : > { %880 = vst [vmem:[%s1454_s3 + $0x8] sm:$0xff] %v876_v53 }
 0x155 PF: > { %s13_s16 = sadd.s32 1, %s1292_s16   ;;  %s1455_s12 = smov %s1280_s13 }
 0x156   : > { %p10_p12 = scmp.ge.s32.totalorder %s13_s16, 7   ;;  %s1456_s13 = smov %s1350_s20 }
 0x157   : > { %s1457_s14 = smov %s1288_s15  ;;  %s1458_s15 = smov %s1460_s17 }
 0x158   :  { %12 = sbr.rel (!%p10_p12) target bundleno = 3 (0x3), region = 113 }

// kernel: conv_cfc_forward.10
= control target key start
LH: loop header
LB: loop body
LE: loop exit
PB: predicated region body
PF: predicated region fallthrough
CT: control target
= control target key end

     0   :  { %s1350_s12 = smov 0   ;;  %s1352_s13 = smov 0   ;;  %s1485_s0 = inlined_call_operand.vmem [shape: bf16[8,3200], index: 0, kind: input, shape index: {}]   ;;  %s1486_s1 = inlined_call_operand.vmem [shape: bf16[3200,256], index: 1, kind: input, shape index: {}]   ;;  %s1487_s2 = inlined_call_operand.vmem [shape: f32[1,256], index: 2, kind: input, shape index: {}]   ;;  %s1488_s3 = inlined_call_operand.vmem [shape: f32[8,256], index: 3, kind: output, shape index: {}]  }
   0x1   :  { %s1354_s14 = smov 0  }
   0x2 LB: > { %s25_s15 = sadd.s32 1, %s1322_s13  ;;  %p1057_p0 = scmp.ge.s32.totalorder %s1326_s14, 1  ;;  %s1326_s14 = sphi %s1354_s14, %s13_s14   ;;  %s1322_s13 = sphi %s1352_s13, %s1490_s13   ;;  %s1318_s12 = sphi %s1350_s12, %s1489_s12  }
   0x3   : > { %p26_p1 = scmp.ge.s32.totalorder %s25_s15, 5  ;;  %p194_p2 = scmp.lt.s32.totalorder %s1326_s14, 6 }
   0x5   : > { %s1492_s15 = smov (%p26_p1, %s25_s15), 0  ;;  %p195_p3 = pnand %p1057_p0, %p194_p2 }
   0x6   : > { %s240_s16 = smul.u32 (!%p195_p3), 5, %s1318_s12  ;;  %p1061_p6 = scmp.ne.s32.totalorder (!%p195_p3), %s1318_s12, 0 }
   0x7   : > { %198 = sbr.rel (%p195_p3) target bundleno = 349 (0x15d), region = 32 }
   0x8   : > { %s250_s17 = smul.u32 (!%p195_p3), 80, %s1318_s12  ;;  %p243_p4 = scmp.lt.s32.totalorder (!%p195_p3), %s240_s16, 24 }
   0xa   : > { %p252_p5 = scmp.lt.s32.totalorder (!%p195_p3), %s250_s17, 399 }
   0xe   : > { %s1494_s16 = smov (!%p243_p4, %s240_s16), 24  ;;  %s1496_s17 = smov (!%p252_p5, %s250_s17), 399 }
   0xf   : > { %s1058_s18 = sshll.u32 %s1494_s16, 2  ;;  %s1152_s22 = sshll.u32 %s1496_s17, 3  ;;  %v1328_v0 = vmov (!%p1061_p6), 0.0  }
  0x10   : > { %s1375_s21 = scalar_lea.vmem %s1485_s0, %s1058_s18  ;;  %s1380_s25 = scalar_lea.vmem %s1486_s1, %s1152_s22  ;;  %282 = vst [vmem:[#allocation2] sm:$0xff] (!%p1061_p6), %v1328_v0  ;;  %283 = vst [vmem:[#allocation2 + $0x8] sm:$0xff] (!%p1061_p6), %v1328_v0 }
  0x11   : > { %281 = sbr.rel (%p1061_p6) target bundleno = 24 (0x18), region = 36 }
  0x18 PF: > { %v1179_v1 = vld [vmem:[%s1380_s25 + $0x4] ss:$8 sps:$4 sm:$0xff]   ;;  %v1183_v3 = vld [vmem:[%s1380_s25] ss:$8 sps:$4 sm:$0xff]   ;;  %v1185_v5 = vld [vmem:[%s1380_s25 + $0x14] ss:$8 sps:$4 sm:$0xff]  }
  0x19   : > { %v1181_v2 = vld [vmem:[%s1380_s25 + $0x104] ss:$8 sps:$4 sm:$0xff]   ;;  %787 = vmatprep.subr.bf16.mxu0 %v1179_v1  ;;  %v1184_v4 = vld [vmem:[%s1380_s25 + $0x100] ss:$8 sps:$4 sm:$0xff]   ;;  %v1187_v6 = vld [vmem:[%s1380_s25 + $0x114] ss:$8 sps:$4 sm:$0xff]  }
  0x1a   : > { %828 = vmatprep.subr.bf16.mxu1 %v1181_v2  ;;  %788 = vmatpush1.bf16.msra.mxu0 %v1183_v3  ;;  %v1189_v7 = vld [vmem:[%s1380_s25 + $0x10] ss:$8 sps:$4 sm:$0xff]   ;;  %v1191_v9 = vld [vmem:[%s1380_s25 + $0x24] ss:$8 sps:$4 sm:$0xff]   ;;  %v1195_v11 = vld [vmem:[%s1380_s25 + $0x20] ss:$8 sps:$4 sm:$0xff]  }
  0x1b   : > { %829 = vmatpush1.bf16.msra.mxu1 %v1184_v4  ;;  %789 = vmatprep.subr.bf16.mxu0 %v1185_v5  ;;  %v1190_v8 = vld [vmem:[%s1380_s25 + $0x110] ss:$8 sps:$4 sm:$0xff]   ;;  %v1193_v10 = vld [vmem:[%s1380_s25 + $0x124] ss:$8 sps:$4 sm:$0xff]   ;;  %v1196_v12 = vld [vmem:[%s1380_s25 + $0x120] ss:$8 sps:$4 sm:$0xff]  }
  0x1c   : > { %830 = vmatprep.subr.bf16.mxu1 %v1187_v6  ;;  %v1197_v13 = vld [vmem:[%s1380_s25 + $0x34] ss:$8 sps:$4 sm:$0xff]   ;;  %v1201_v15 = vld [vmem:[%s1380_s25 + $0x30] ss:$8 sps:$4 sm:$0xff]   ;;  %v1203_v17 = vld [vmem:[%s1380_s25 + $0x44] ss:$8 sps:$4 sm:$0xff]  }
  0x1d   : > { %v1199_v14 = vld [vmem:[%s1380_s25 + $0x134] ss:$8 sps:$4 sm:$0xff]   ;;  %v1202_v16 = vld [vmem:[%s1380_s25 + $0x130] ss:$8 sps:$4 sm:$0xff]   ;;  %v1205_v18 = vld [vmem:[%s1380_s25 + $0x144] ss:$8 sps:$4 sm:$0xff]  }
  0x1e   : > { %790 = vmatpush1.bf16.msra.mxu0 %v1189_v7  ;;  %v1207_v19 = vld [vmem:[%s1380_s25 + $0x40] ss:$8 sps:$4 sm:$0xff]   ;;  %v1209_v21 = vld [vmem:[%s1380_s25 + $0x54] ss:$8 sps:$4 sm:$0xff]   ;;  %v1213_v23 = vld [vmem:[%s1380_s25 + $0x50] ss:$8 sps:$4 sm:$0xff]  }
  0x1f   : > { %831 = vmatpush1.bf16.msra.mxu1 %v1190_v8  ;;  %791 = vmatprep.subr.bf16.mxu0 %v1191_v9  ;;  %v1208_v20 = vld [vmem:[%s1380_s25 + $0x140] ss:$8 sps:$4 sm:$0xff]   ;;  %v1211_v22 = vld [vmem:[%s1380_s25 + $0x154] ss:$8 sps:$4 sm:$0xff]   ;;  %v1214_v24 = vld [vmem:[%s1380_s25 + $0x150] ss:$8 sps:$4 sm:$0xff]  }
  0x20   : > { %832 = vmatprep.subr.bf16.mxu1 %v1193_v10  ;;  %v1215_v25 = vld [vmem:[%s1380_s25 + $0x64] ss:$8 sps:$4 sm:$0xff]   ;;  %v1219_v27 = vld [vmem:[%s1380_s25 + $0x60] ss:$8 sps:$4 sm:$0xff]   ;;  %v1221_v29 = vld [vmem:[%s1380_s25 + $0x74] ss:$8 sps:$4 sm:$0xff]  }
  0x21   : > { %v1217_v26 = vld [vmem:[%s1380_s25 + $0x164] ss:$8 sps:$4 sm:$0xff]   ;;  %v1220_v28 = vld [vmem:[%s1380_s25 + $0x160] ss:$8 sps:$4 sm:$0xff]   ;;  %v1223_v30 = vld [vmem:[%s1380_s25 + $0x174] ss:$8 sps:$4 sm:$0xff]  }
  0x22   : > { %792 = vmatpush1.bf16.msra.mxu0 %v1195_v11  ;;  %v1225_v31 = vld [vmem:[%s1380_s25 + $0x70] ss:$8 sps:$4 sm:$0xff]   ;;  %v1227_v33 = vld [vmem:[%s1380_s25 + $0x84] ss:$8 sps:$4 sm:$0xff]   ;;  %v1231_v35 = vld [vmem:[%s1380_s25 + $0x80] ss:$8 sps:$4 sm:$0xff]  }
  0x23   : > { %833 = vmatpush1.bf16.msra.mxu1 %v1196_v12  ;;  %793 = vmatprep.subr.bf16.mxu0 %v1197_v13  ;;  %v1226_v32 = vld [vmem:[%s1380_s25 + $0x170] ss:$8 sps:$4 sm:$0xff]   ;;  %v1229_v34 = vld [vmem:[%s1380_s25 + $0x184] ss:$8 sps:$4 sm:$0xff]   ;;  %v1232_v36 = vld [vmem:[%s1380_s25 + $0x180] ss:$8 sps:$4 sm:$0xff]  }
  0x24   : > { %834 = vmatprep.subr.bf16.mxu1 %v1199_v14  ;;  %v1233_v37 = vld [vmem:[%s1380_s25 + $0x94] ss:$8 sps:$4 sm:$0xff]   ;;  %v1237_v39 = vld [vmem:[%s1380_s25 + $0x90] ss:$8 sps:$4 sm:$0xff]   ;;  %v1239_v41 = vld [vmem:[%s1380_s25 + $0xa4] ss:$8 sps:$4 sm:$0xff]  }
  0x25   : > { %v1235_v38 = vld [vmem:[%s1380_s25 + $0x194] ss:$8 sps:$4 sm:$0xff]   ;;  %v1238_v40 = vld [vmem:[%s1380_s25 + $0x190] ss:$8 sps:$4 sm:$0xff]   ;;  %v1241_v42 = vld [vmem:[%s1380_s25 + $0x1a4] ss:$8 sps:$4 sm:$0xff]  }
  0x26   : > { %794 = vmatpush1.bf16.msra.mxu0 %v1201_v15  ;;  %v1243_v43 = vld [vmem:[%s1380_s25 + $0xa0] ss:$8 sps:$4 sm:$0xff]   ;;  %v1245_v45 = vld [vmem:[%s1380_s25 + $0xb4] ss:$8 sps:$4 sm:$0xff]   ;;  %v1249_v50 = vld [vmem:[%s1380_s25 + $0xb0] ss:$8 sps:$4 sm:$0xff]  }
  0x27   : > { %835 = vmatpush1.bf16.msra.mxu1 %v1202_v16  ;;  %795 = vmatprep.subr.bf16.mxu0 %v1203_v17  ;;  %v1244_v44 = vld [vmem:[%s1380_s25 + $0x1a0] ss:$8 sps:$4 sm:$0xff]   ;;  %v1247_v46 = vld [vmem:[%s1380_s25 + $0x1b4] ss:$8 sps:$4 sm:$0xff]   ;;  %v1250_v51 = vld [vmem:[%s1380_s25 + $0x1b0] ss:$8 sps:$4 sm:$0xff]  }
  0x28   : > { %836 = vmatprep.subr.bf16.mxu1 %v1205_v18  ;;  %v286_v47 = vld [vmem:[%s1375_s21] sm:$0xff]  ;;  %v287_v49 = vld [vmem:[%s1375_s21 + $0x8] sm:$0xff]  ;;  %v1257_v57 = vld [vmem:[%s1380_s25 + $0xd4] ss:$8 sps:$4 sm:$0xff]   ;;  %v1329_v11 = vmov 0   ;;  %p1147_p7 = scmp.ne.s32.totalorder %s1318_s12, 4 }
  0x29   : > { %v1063_v48 = vcombine.high %v286_v47, %v286_v47  ;;  %v1065_v52 = vcombine.high %v287_v49, %v287_v49  ;;  %v1251_v53 = vld [vmem:[%s1380_s25 + $0xc4] ss:$8 sps:$4 sm:$0xff]   ;;  %v1255_v55 = vld [vmem:[%s1380_s25 + $0xc0] ss:$8 sps:$4 sm:$0xff]   ;;  %v1259_v58 = vld [vmem:[%s1380_s25 + $0x1d4] ss:$8 sps:$4 sm:$0xff]   ;;  %v1062_v6 = vcombine.low %v286_v47, %v286_v47  ;;  %v1064_v7 = vcombine.low %v287_v49, %v287_v49 }
  0x2a   : > { %796 = vmatpush1.bf16.msra.mxu0 %v1207_v19  ;;  %v1253_v54 = vld [vmem:[%s1380_s25 + $0x1c4] ss:$8 sps:$4 sm:$0xff]   ;;  %v1256_v56 = vld [vmem:[%s1380_s25 + $0x1c0] ss:$8 sps:$4 sm:$0xff]   ;;  %v1261_v59 = vld [vmem:[%s1380_s25 + $0xd0] ss:$8 sps:$4 sm:$0xff]  }
  0x2b   : > { %837 = vmatpush1.bf16.msra.mxu1 %v1208_v20  ;;  %797 = vmatprep.subr.bf16.mxu0 %v1209_v21  ;;  %v1262_v60 = vld [vmem:[%s1380_s25 + $0x1d0] ss:$8 sps:$4 sm:$0xff]   ;;  %v1263_v61 = vld [vmem:[%s1380_s25 + $0xe4] ss:$8 sps:$4 sm:$0xff]   ;;  %v1267_v63 = vld [vmem:[%s1380_s25 + $0xe0] ss:$8 sps:$4 sm:$0xff]  }
  0x2c   : > { %838 = vmatprep.subr.bf16.mxu1 %v1211_v22  ;;  %819 = vmatprep.mubr.bf16.mxu0 %v1063_v48  ;;  %v1265_v62 = vld [vmem:[%s1380_s25 + $0x1e4] ss:$8 sps:$4 sm:$0xff]   ;;  %v1268_v0 = vld [vmem:[%s1380_s25 + $0x1e0] ss:$8 sps:$4 sm:$0xff]   ;;  %v1269_v1 = vld [vmem:[%s1380_s25 + $0xf4] ss:$8 sps:$4 sm:$0xff]  }
  0x2d   : > { %860 = vmatprep.mubr.bf16.mxu1 %v1065_v52  ;;  %v1271_v2 = vld [vmem:[%s1380_s25 + $0x1f4] ss:$8 sps:$4 sm:$0xff]   ;;  %v1273_v3 = vld [vmem:[%s1380_s25 + $0xf0] ss:$8 sps:$4 sm:$0xff]   ;;  %v1281_v5 = vld [vmem:[%s1380_s25 + $0x204] ss:$8 sps:$4 sm:$0xff]  }
  0x2e   : > { %798 = vmatpush1.bf16.msra.mxu0 %v1213_v23  ;;  %v1274_v4 = vld [vmem:[%s1380_s25 + $0x1f0] ss:$8 sps:$4 sm:$0xff]   ;;  %v1279_v8 = vld [vmem:[%s1380_s25 + $0x200] ss:$8 sps:$4 sm:$0xff]   ;;  %v1284_v9 = vld [vmem:[%s1380_s25 + $0x214] ss:$8 sps:$4 sm:$0xff]  }
  0x2f   : > { %839 = vmatpush1.bf16.msra.mxu1 %v1214_v24  ;;  %799 = vmatprep.subr.bf16.mxu0 %v1215_v25  ;;  %v1282_v10 = vld [vmem:[%s1380_s25 + $0x210] ss:$8 sps:$4 sm:$0xff]   ;;  %v1287_v12 = vld [vmem:[%s1380_s25 + $0x224] ss:$8 sps:$4 sm:$0xff]   ;;  %v1285_v13 = vld [vmem:[%s1380_s25 + $0x220] ss:$8 sps:$4 sm:$0xff]  }
  0x30   : > { %840 = vmatprep.subr.bf16.mxu1 %v1217_v26  ;;  %v1290_v14 = vld [vmem:[%s1380_s25 + $0x234] ss:$8 sps:$4 sm:$0xff]   ;;  %v1288_v15 = vld [vmem:[%s1380_s25 + $0x230] ss:$8 sps:$4 sm:$0xff]   ;;  %v1293_v16 = vld [vmem:[%s1380_s25 + $0x244] ss:$8 sps:$4 sm:$0xff]  }
  0x31   : > { %v1291_v17 = vld [vmem:[%s1380_s25 + $0x240] ss:$8 sps:$4 sm:$0xff]   ;;  %v1296_v18 = vld [vmem:[%s1380_s25 + $0x254] ss:$8 sps:$4 sm:$0xff]   ;;  %v1294_v19 = vld [vmem:[%s1380_s25 + $0x250] ss:$8 sps:$4 sm:$0xff]  }
  0x32   : > { %800 = vmatpush1.bf16.msra.mxu0 %v1219_v27  ;;  %v1299_v20 = vld [vmem:[%s1380_s25 + $0x264] ss:$8 sps:$4 sm:$0xff]   ;;  %v1297_v21 = vld [vmem:[%s1380_s25 + $0x260] ss:$8 sps:$4 sm:$0xff]   ;;  %v1302_v22 = vld [vmem:[%s1380_s25 + $0x274] ss:$8 sps:$4 sm:$0xff]  }
  0x33   : > { %841 = vmatpush1.bf16.msra.mxu1 %v1220_v28  ;;  %801 = vmatprep.subr.bf16.mxu0 %v1221_v29  ;;  %v1300_v23 = vld [vmem:[%s1380_s25 + $0x270] ss:$8 sps:$4 sm:$0xff]   ;;  %v920_v47 = vld [vmem:[%s1487_s2] sm:$0x3] (!%p1147_p7) }
  0x34   : > { %842 = vmatprep.subr.bf16.mxu1 %v1223_v30  ;;  %v1303_v24 = vld [vmem:[%s1375_s21 + $0x10] ss:$0 sps:$4 sm:$0xff]  }
  0x36   : > { %802 = vmatpush1.bf16.msra.mxu0 %v1225_v31 }
  0x37   : > { %843 = vmatpush1.bf16.msra.mxu1 %v1226_v32  ;;  %803 = vmatprep.subr.bf16.mxu0 %v1227_v33 }
  0x38   : > { %844 = vmatprep.subr.bf16.mxu1 %v1229_v34 }
  0x3a   : > { %804 = vmatpush1.bf16.msra.mxu0 %v1231_v35  ;;  %v284_v35 = vld [vmem:[#allocation2] sm:$0xff] }
  0x3b   : > { %845 = vmatpush1.bf16.msra.mxu1 %v1232_v36  ;;  %805 = vmatprep.subr.bf16.mxu0 %v1233_v37 }
  0x3c   : > { %846 = vmatprep.subr.bf16.mxu1 %v1235_v38  ;;  %v285_v38 = vld [vmem:[#allocation2 + $0x8] sm:$0xff] }
  0x3e   : > { %806 = vmatpush1.bf16.msra.mxu0 %v1237_v39 }
  0x3f   : > { %847 = vmatpush1.bf16.msra.mxu1 %v1238_v40  ;;  %807 = vmatprep.subr.bf16.mxu0 %v1239_v41 }
  0x40   : > { %848 = vmatprep.subr.bf16.mxu1 %v1241_v42 }
  0x42   : > { %808 = vmatpush1.bf16.msra.mxu0 %v1243_v43 }
  0x43   : > { %849 = vmatpush1.bf16.msra.mxu1 %v1244_v44  ;;  %809 = vmatprep.subr.bf16.mxu0 %v1245_v45  ;;  %v922_v45 = vlaneseq (!%p1147_p7) }
  0x44   : > { %850 = vmatprep.subr.bf16.mxu1 %v1247_v46 }
  0x45   : > { %v923_v46 = vshrl.u32 (!%p1147_p7), %v922_v45, 7 }
  0x46   : > { %810 = vmatpush1.bf16.msra.mxu0 %v1249_v50 }
  0x47   : > { %851 = vmatpush1.bf16.msra.mxu1 %v1250_v51  ;;  %811 = vmatprep.subr.bf16.mxu0 %v1251_v53  ;;  %v924_v48 = vsub.s32 (!%p1147_p7), 0, %v923_v46  ;;  %v928_v49 = vsub.s32 (!%p1147_p7), 1, %v923_v46 }
  0x48   : > { %852 = vmatprep.subr.bf16.mxu1 %v1253_v54 }
  0x49   : > { %v925_v52 = vrot.slane (!%p1147_p7), %v920_v47, %v924_v48  ;;  %v929_v53 = vrot.slane (!%p1147_p7), %v920_v47, %v928_v49 }
  0x4a   : > { %812 = vmatpush1.bf16.msra.mxu0 %v1255_v55 }
  0x4b   : > { %853 = vmatpush1.bf16.msra.mxu1 %v1256_v56  ;;  %813 = vmatprep.subr.bf16.mxu0 %v1257_v57 }
  0x4c   : > { %854 = vmatprep.subr.bf16.mxu1 %v1259_v58 }
  0x4e   : > { %814 = vmatpush1.bf16.msra.mxu0 %v1261_v59 }
  0x4f   : > { %855 = vmatpush1.bf16.msra.mxu1 %v1262_v60  ;;  %815 = vmatprep.subr.bf16.mxu0 %v1263_v61 }
  0x50   : > { %856 = vmatprep.subr.bf16.mxu1 %v1265_v62 }
  0x52   : > { %816 = vmatpush1.bf16.msra.mxu0 %v1267_v63 }
  0x53   : > { %857 = vmatpush1.bf16.msra.mxu1 %v1268_v0  ;;  %817 = vmatprep.subr.bf16.mxu0 %v1269_v1 }
  0x54   : > { %858 = vmatprep.subr.bf16.mxu1 %v1271_v2 }
  0x56   : > { %818 = vmatpush1.bf16.msra.mxu0 %v1273_v3 }
  0x57   : > { %859 = vmatpush1.bf16.msra.mxu1 %v1274_v4  ;;  %869 = vmatprep.subr.bf16.mxu0 %v1281_v5 }
  0x59   : > { %820 = vmatmul.mubr.bf16.vlgmr.msra.gmra.mrb[0].mxu0 %v1062_v6 }
  0x5a   : > { %861 = vmatmul.mubr.bf16.vlgmr.msra.gmra.mrb[0].mxu1 %v1064_v7  ;;  %870 = vmatpush1.bf16.msra.mxu0 %v1279_v8 }
  0x5b   : > { %901 = vmatprep.mubr.bf16.mxu0 %v1329_v11  ;;  %871 = vmatprep.subr.bf16.mxu0 %v1284_v9 }
  0x5e   : > { %872 = vmatpush1.bf16.msra.mxu0 %v1282_v10 }
  0x5f   : > { %873 = vmatprep.subr.bf16.mxu0 %v1287_v12 }
  0x62   : > { %874 = vmatpush1.bf16.msra.mxu0 %v1285_v13 }
  0x63   : > { %875 = vmatprep.subr.bf16.mxu0 %v1290_v14 }
  0x66   : > { %876 = vmatpush1.bf16.msra.mxu0 %v1288_v15 }
  0x67   : > { %877 = vmatprep.subr.bf16.mxu0 %v1293_v16 }
  0x6a   : > { %878 = vmatpush1.bf16.msra.mxu0 %v1291_v17 }
  0x6b   : > { %879 = vmatprep.subr.bf16.mxu0 %v1296_v18 }
  0x6e   : > { %880 = vmatpush1.bf16.msra.mxu0 %v1294_v19 }
  0x6f   : > { %881 = vmatprep.subr.bf16.mxu0 %v1299_v20 }
  0x72   : > { %882 = vmatpush1.bf16.msra.mxu0 %v1297_v21 }
  0x73   : > { %883 = vmatprep.subr.bf16.mxu0 %v1302_v22 }
  0x76   : > { %884 = vmatpush1.bf16.msra.mxu0 %v1300_v23 }
  0x79   : > { %902 = vmatmul.mubr.bf16.vlgmr.msra.gmra.mrb[4].mxu0 %v1303_v24 }
 0x12c   : > { %v821_v25 = vpop.f32.mrb[0].mxu0 }
 0x12d   : > { %v862_v26 = vpop.f32.mrb[0].mxu1  ;;  %v823_v28 = vpop.f32.mrb[1].mxu0 }
 0x12e   : > { %v863_v27 = vadd.f32 %v862_v26, %v821_v25  ;;  %v864_v29 = vpop.f32.mrb[1].mxu1  ;;  %v825_v31 = vpop.f32.mrb[2].mxu0 }
 0x12f   : > { %v865_v30 = vadd.f32 %v864_v29, %v823_v28  ;;  %v866_v32 = vpop.f32.mrb[2].mxu1  ;;  %v826_v33 = vpop.f32.mrb[3].mxu0 }
 0x130   : > { %v867_v34 = vpop.f32.mrb[3].mxu1 }
 0x14c   : > { %v903_v36 = vpop.f32.mrb[4].mxu0  ;;  %917 = sbr.rel (%p1147_p7) target bundleno = 349 (0x15d), region = 40 }
 0x14d   : > { %v904_v37 = vadd.f32 %v903_v36, %v863_v27  ;;  %v905_v39 = vpop.f32.mrb[5].mxu0 }
 0x14e   : > { %v906_v40 = vadd.f32 %v905_v39, %v865_v30  ;;  %v907_v41 = vpop.f32.mrb[6].mxu0 }
 0x14f   : > { %v910_v42 = vadd.f32 %v904_v37, %v284_v35  ;;  %v908_v43 = vpop.f32.mrb[7].mxu0 }
 0x150   : > { %v911_v44 = vadd.f32 %v906_v40, %v285_v38 }
 0x151   : > { %912 = vst [vmem:[#allocation2] sm:$0xff] %v910_v42 }
 0x152   : > { %913 = vst [vmem:[#allocation2 + $0x8] sm:$0xff] %v911_v44 }
 0x158   : > { %v918_v50 = vld [vmem:[#allocation2] sm:$0xff] }
 0x159   : > { %v919_v51 = vld [vmem:[#allocation2 + $0x8] sm:$0xff]  ;;  %v932_v54 = vadd.f32 %v925_v52, %v918_v50 }
 0x15a   : > { %v933_v55 = vadd.f32 %v929_v53, %v919_v51 }
 0x15b   : > { %934 = vst [vmem:[%s1488_s3] sm:$0xff] %v932_v54 }
 0x15c   : > { %935 = vst [vmem:[%s1488_s3 + $0x8] sm:$0xff] %v933_v55 }
 0x15d PF: > { %s13_s14 = sadd.s32 1, %s1326_s14   ;;  %s1489_s12 = smov %s1322_s13 }
 0x15e   : > { %p10_p8 = scmp.ge.s32.totalorder %s13_s14, 7   ;;  %s1490_s13 = smov %s1492_s15 }
 0x160   :  { %12 = sbr.rel (!%p10_p8) target bundleno = 2 (0x2), region = 76 }

// kernel: conv_cfc_forward.11
= control target key start
LH: loop header
LB: loop body
LE: loop exit
PB: predicated region body
PF: predicated region fallthrough
CT: control target
= control target key end

     0   :  { %s352_s1 = inlined_call_operand.vmem [shape: bf16[256,128], index: 1, kind: input, shape index: {}]   ;;  %s353_s0 = inlined_call_operand.vmem [shape: bf16[8,256], index: 0, kind: input, shape index: {}]   ;;  %s354_s2 = inlined_call_operand.vmem [shape: f32[1,128], index: 2, kind: input, shape index: {}]   ;;  %s355_s3 = inlined_call_operand.vmem [shape: f32[8,128], index: 3, kind: output, shape index: {}]  }
   0x1   :  { %v257_v0 = vld [vmem:[%s352_s1 + $0x40] sm:$0xff]   ;;  %v259_v2 = vld [vmem:[%s352_s1 + $0x48] sm:$0xff]   ;;  %v261_v4 = vld [vmem:[%s352_s1 + $0x50] sm:$0xff]  }
   0x2   :  { %v258_v1 = vld [vmem:[%s352_s1] sm:$0xff]   ;;  %235 = vmatprep.subr.bf16.mxu0 %v257_v0  ;;  %v260_v3 = vld [vmem:[%s352_s1 + $0x8] sm:$0xff]   ;;  %v262_v5 = vld [vmem:[%s352_s1 + $0x10] sm:$0xff]  }
   0x3   :  { %236 = vmatpush3.bf16.msra.mxu0 %v258_v1  ;;  %v263_v6 = vld [vmem:[%s352_s1 + $0x58] sm:$0xff]   ;;  %v265_v8 = vld [vmem:[%s352_s1 + $0x60] sm:$0xff]   ;;  %v267_v10 = vld [vmem:[%s352_s1 + $0x68] sm:$0xff]  }
   0x4   :  { %237 = vmatprep.subr.bf16.mxu0 %v259_v2  ;;  %v264_v7 = vld [vmem:[%s352_s1 + $0x18] sm:$0xff]   ;;  %v266_v9 = vld [vmem:[%s352_s1 + $0x20] sm:$0xff]   ;;  %v268_v13 = vld [vmem:[%s352_s1 + $0x28] sm:$0xff]  }
   0x5   :  { %v21_v11 = vld [vmem:[%s353_s0] sm:$0xff]  ;;  %v269_v14 = vld [vmem:[%s352_s1 + $0x70] sm:$0xff]   ;;  %v271_v16 = vld [vmem:[%s352_s1 + $0x78] sm:$0xff]  }
   0x6   :  { %v217_v12 = vcombine.high %v21_v11, %v21_v11  ;;  %v270_v15 = vld [vmem:[%s352_s1 + $0x30] sm:$0xff]   ;;  %v272_v17 = vld [vmem:[%s352_s1 + $0x38] sm:$0xff]   ;;  %v216_v18 = vcombine.low %v21_v11, %v21_v11  ;;  %v234_v21 = vld [vmem:[%s354_s2] ss:$0 sm:$0xff] }
   0x7   :  { %238 = vmatpush3.bf16.msra.mxu0 %v260_v3 }
   0x8   :  { %239 = vmatprep.subr.bf16.mxu0 %v261_v4  ;;  %189 = vmatprep.mubr.bf16.mxu0 %v217_v12 }
   0xb   :  { %240 = vmatpush3.bf16.msra.mxu0 %v262_v5 }
   0xc   :  { %241 = vmatprep.subr.bf16.mxu0 %v263_v6 }
   0xf   :  { %242 = vmatpush3.bf16.msra.mxu0 %v264_v7 }
  0x10   :  { %243 = vmatprep.subr.bf16.mxu0 %v265_v8 }
  0x13   :  { %244 = vmatpush3.bf16.msra.mxu0 %v266_v9 }
  0x14   :  { %245 = vmatprep.subr.bf16.mxu0 %v267_v10 }
  0x17   :  { %246 = vmatpush3.bf16.msra.mxu0 %v268_v13 }
  0x18   :  { %247 = vmatprep.subr.bf16.mxu0 %v269_v14 }
  0x1b   :  { %248 = vmatpush3.bf16.msra.mxu0 %v270_v15 }
  0x1c   :  { %249 = vmatprep.subr.bf16.mxu0 %v271_v16 }
  0x1f   :  { %250 = vmatpush3.bf16.msra.mxu0 %v272_v17 }
  0x22   :  { %190 = vmatmul.mubr.bf16.vlgmr.msra.gmra.mrb[0].mxu0 %v216_v18 }
  0xf5   :  { %v251_v19 = vpop.f32.mrb[0].mxu0 }
  0xf6   :  { %v252_v20 = vpop.f32.mrb[1].mxu0 }
  0xf7   :  { %v253_v22 = vadd.f32 %v252_v20, %v251_v19  ;;  %v254_v23 = vpop.f32.mrb[2].mxu0 }
  0xf8   :  { %v255_v24 = vpop.f32.mrb[3].mxu0 }
  0xf9   :  { %v210_v25 = vadd.f32 %v253_v22, %v234_v21 }
  0xfb   :  { %211 = vst [vmem:[%s355_s3] sm:$0xff] %v210_v25 }

// kernel: conv_cfc_forward.12
= control target key start
LH: loop header
LB: loop body
LE: loop exit
PB: predicated region body
PF: predicated region fallthrough
CT: control target
= control target key end

     0   :  { %v1157_v3 = vmov 0.0|0.0   ;;  %vm1158_vm0 = vmmov 0   ;;  %v1159_v6 = vmov 0.0   ;;  %vm28_vm1 = vcmask 517120   ;;  %s1538_s0 = inlined_call_operand.vmem [shape: f32[4,2,128], index: 0, kind: input, shape index: {}]   ;;  %s1539_s1 = inlined_call_operand.vmem [shape: f32[2,64], index: 1, kind: input, shape index: {}]   ;;  %s1540_s2 = inlined_call_operand.vmem [shape: f32[64,128], index: 2, kind: input, shape index: {}]   ;;  %s1541_s3 = inlined_call_operand.vmem [shape: f32[128,256], index: 3, kind: input, shape index: {}]   ;;  %s1542_s4 = inlined_call_operand.vmem [shape: f32[1,256], index: 4, kind: input, shape index: {}]   ;;  %s1543_s5 = inlined_call_operand.vmem [shape: f32[4,2,64], index: 5, kind: output, shape index: {0}]   ;;  %s1544_s6 = inlined_call_operand.hbm [shape: f32[2,64], index: 6, kind: output, shape index: {1}]  }
   0x1   :  { %v31_v0 = vld [vmem:[%s1540_s2] sm:$0xff]  ;;  %v32_v1 = vld [vmem:[%s1540_s2 + $0x8] sm:$0xff]  ;;  %v33_v2 = vld [vmem:[%s1540_s2 + $0x10] sm:$0xff]  ;;  %920 = vmatprep.subr.bf16.mxu1 %v1157_v3  ;;  %860 = vmatprep.mubr.msk.f32.mxu1 %vm1158_vm0, %v1159_v6 }
   0x2   :  { %v1207_v4 = vpack.c.bf16 %v32_v1, %v31_v0  ;;  %v34_v5 = vld [vmem:[%s1540_s2 + $0x18] sm:$0xff]  ;;  %v27_v7 = vld [vmem:[%s1539_s1] sm:$0x3]  ;;  %964 = vmatprep.subr.bf16.mxu0 %v1157_v3  ;;  %879 = vmatprep.mubr.msk.f32.mxu0 %vm1158_vm0, %v1159_v6  ;;  %v36_v10 = vld [vmem:[%s1540_s2 + $0x28] sm:$0xff] }
   0x3   :  { %v1221_v8 = vpack.c.bf16 %v34_v5, %v33_v2  ;;  %29 = vst.msk [vmem:[#allocation2] sm:$0x3] %vm28_vm1, %v27_v7  ;;  %v35_v9 = vld [vmem:[%s1540_s2 + $0x20] sm:$0xff]  ;;  %v37_v12 = vld [vmem:[%s1540_s2 + $0x30] sm:$0xff]  ;;  %v38_v13 = vld [vmem:[%s1540_s2 + $0x38] sm:$0xff] }
   0x4   :  { %922 = vmatpush3.bf16.msra.mxu1 %v1207_v4  ;;  %966 = vmatpush3.bf16.msra.mxu0 %v1207_v4  ;;  %v1234_v11 = vpack.c.bf16 %v36_v10, %v35_v9 }
   0x5   :  { %923 = vmatprep.subr.bf16.mxu1 %v1157_v3  ;;  %967 = vmatprep.subr.bf16.mxu0 %v1157_v3 }
   0x8   :  { %925 = vmatpush3.bf16.msra.mxu1 %v1221_v8  ;;  %969 = vmatpush3.bf16.msra.mxu0 %v1221_v8 }
   0x9   :  { %926 = vmatprep.subr.bf16.mxu1 %v1157_v3  ;;  %970 = vmatprep.subr.bf16.mxu0 %v1157_v3 }
   0xa   :  { %12 = vsyncpa [#allocation4], 0  ;;  %v40_v14 = vld [vmem:[%s1541_s3 + $0x8] sm:$0xff]  ;;  %v42_v15 = vld [vmem:[%s1541_s3 + $0x18] sm:$0xff]  ;;  %v1252_v16 = vpack.c.bf16 %v38_v13, %v37_v12  ;;  %vm73_vm2 = vcmask 523264   ;;  %v152_v12 = vlaneseq  ;;  %s1160_s28 = smov 64  }
   0xb   :  { %v1256_v17 = vpack.c.bf16 %v42_v15, %v40_v14  ;;  %v39_v18 = vld [vmem:[%s1541_s3] sm:$0xff]  ;;  %v41_v19 = vld [vmem:[%s1541_s3 + $0x10] sm:$0xff]  ;;  %v44_v20 = vld [vmem:[%s1541_s3 + $0x28] sm:$0xff] }
   0xc   :  { %928 = vmatpush3.bf16.msra.mxu1 %v1234_v11  ;;  %972 = vmatpush3.bf16.msra.mxu0 %v1234_v11  ;;  %v46_v21 = vld [vmem:[%s1541_s3 + $0x38] sm:$0xff]  ;;  %v30_v22 = vld [vmem:[#allocation2] sm:$0x3]  ;;  %v1272_v23 = vpack.c.bf16 %v41_v19, %v39_v18  ;;  %v45_v26 = vld [vmem:[%s1541_s3 + $0x30] sm:$0xff]  ;;  %v153_v13 = vshrl.u32 %v152_v12, 7 }
   0xd   :  { %929 = vmatprep.subr.bf16.mxu1 %v1157_v3  ;;  %973 = vmatprep.subr.bf16.mxu0 %v1157_v3  ;;  %v1276_v24 = vpack.c.bf16 %v46_v21, %v44_v20  ;;  %v43_v25 = vld [vmem:[%s1541_s3 + $0x20] sm:$0xff]  ;;  %v48_v27 = vld [vmem:[%s1541_s3 + $0x48] sm:$0xff]  ;;  %v50_v28 = vld [vmem:[%s1541_s3 + $0x58] sm:$0xff] }
   0xe   :  { %v1293_v29 = vpack.c.bf16 %v45_v26, %v43_v25  ;;  %v1297_v30 = vpack.c.bf16 %v50_v28, %v48_v27  ;;  %v47_v31 = vld [vmem:[%s1541_s3 + $0x40] sm:$0xff]  ;;  %v49_v32 = vld [vmem:[%s1541_s3 + $0x50] sm:$0xff]  ;;  %v52_v33 = vld [vmem:[%s1541_s3 + $0x68] sm:$0xff]  ;;  %v154_v14 = vsub.s32 0, %v153_v13  ;;  %v158_v18 = vsub.s32 1, %v153_v13 }
   0xf   :  { %v54_v34 = vld [vmem:[%s1541_s3 + $0x78] sm:$0xff]  ;;  %v1312_v35 = vpack.c.bf16 %v49_v32, %v47_v31  ;;  %v51_v37 = vld [vmem:[%s1541_s3 + $0x60] sm:$0xff]  ;;  %v53_v38 = vld [vmem:[%s1541_s3 + $0x70] sm:$0xff] }
  0x10   :  { %931 = vmatpush3.bf16.msra.mxu1 %v1252_v16  ;;  %975 = vmatpush3.bf16.msra.mxu0 %v1252_v16  ;;  %v1315_v36 = vpack.c.bf16 %v54_v34, %v52_v33  ;;  %v1324_v39 = vpack.c.bf16 %v53_v38, %v51_v37  ;;  %v56_v40 = vld [vmem:[%s1541_s3 + $0x88] sm:$0xff]  ;;  %v58_v41 = vld [vmem:[%s1541_s3 + $0x98] sm:$0xff]  ;;  %v55_v43 = vld [vmem:[%s1541_s3 + $0x80] sm:$0xff] }
  0x11   :  { %933 = vmatprep.subr.bf16.mxu1 %v1256_v17  ;;  %977 = vmatprep.subr.bf16.mxu0 %v1256_v17  ;;  %v1334_v42 = vpack.c.bf16 %v58_v41, %v56_v40  ;;  %v57_v44 = vld [vmem:[%s1541_s3 + $0x90] sm:$0xff]  ;;  %v60_v46 = vld [vmem:[%s1541_s3 + $0xa8] sm:$0xff]  ;;  %v62_v47 = vld [vmem:[%s1541_s3 + $0xb8] sm:$0xff] }
  0x12   :  { %v1342_v45 = vpack.c.bf16 %v57_v44, %v55_v43  ;;  %v1352_v48 = vpack.c.bf16 %v62_v47, %v60_v46  ;;  %v59_v49 = vld [vmem:[%s1541_s3 + $0xa0] sm:$0xff]  ;;  %v61_v50 = vld [vmem:[%s1541_s3 + $0xb0] sm:$0xff]  ;;  %v64_v52 = vld [vmem:[%s1541_s3 + $0xc8] sm:$0xff] }
  0x13   :  { %861 = vmatmul.mubr.msk.f32.vlgmr.msra.gmra.mrb[0].mxu1 %vm73_vm2, %v30_v22  ;;  %v1360_v51 = vpack.c.bf16 %v61_v50, %v59_v49  ;;  %v66_v53 = vld [vmem:[%s1541_s3 + $0xd8] sm:$0xff]  ;;  %v63_v55 = vld [vmem:[%s1541_s3 + $0xc0] sm:$0xff]  ;;  %v65_v56 = vld [vmem:[%s1541_s3 + $0xd0] sm:$0xff] }
  0x14   :  { %935 = vmatpush1.bf16.msra.mxu1 %v1272_v23  ;;  %226 = vmatprep.mubr.f32.mxu1 %v1159_v6  ;;  %v1370_v54 = vpack.c.bf16 %v66_v53, %v64_v52  ;;  %v1378_v57 = vpack.c.bf16 %v65_v56, %v63_v55  ;;  %v68_v58 = vld [vmem:[%s1541_s3 + $0xe8] sm:$0xff]  ;;  %v70_v59 = vld [vmem:[%s1541_s3 + $0xf8] sm:$0xff]  ;;  %v67_v61 = vld [vmem:[%s1541_s3 + $0xe0] sm:$0xff] }
  0x15   :  { %937 = vmatprep.subr.bf16.mxu1 %v1276_v24  ;;  %v1388_v60 = vpack.c.bf16 %v70_v59, %v68_v58  ;;  %v69_v62 = vld [vmem:[%s1541_s3 + $0xf0] sm:$0xff]  ;;  %v72_v0 = vld [vmem:[%s1538_s0] sm:$0x3]  ;;  %v796_v46 = vld [vmem:[%s1538_s0 + $0x2] sm:$0x3] }
  0x16   :  { %v1396_v63 = vpack.c.bf16 %v69_v62, %v67_v61  ;;  %v71_v15 = vld [vmem:[%s1542_s4] sm:$0x3] }
  0x17   :  { %v1417_v19 = vrot.slane %v71_v15, %v154_v14  ;;  %v1419_v20 = vrot.slane %v71_v15, %v158_v18 }
  0x18   :  { %939 = vmatpush1.bf16.msra.mxu1 %v1293_v29 }
  0x19   :  { %941 = vmatprep.subr.bf16.mxu1 %v1297_v30 }
  0x1c   :  { %943 = vmatpush1.bf16.msra.mxu1 %v1312_v35 }
  0x1d   :  { %945 = vmatprep.subr.bf16.mxu1 %v1315_v36 }
  0x20   :  { %947 = vmatpush1.bf16.msra.mxu1 %v1324_v39 }
  0x21   :  { %949 = vmatprep.subr.bf16.mxu1 %v1334_v42 }
  0x24   :  { %951 = vmatpush1.bf16.msra.mxu1 %v1342_v45 }
  0x25   :  { %953 = vmatprep.subr.bf16.mxu1 %v1352_v48 }
  0x28   :  { %955 = vmatpush1.bf16.msra.mxu1 %v1360_v51 }
  0x29   :  { %957 = vmatprep.subr.bf16.mxu1 %v1370_v54 }
  0x2c   :  { %959 = vmatpush1.bf16.msra.mxu1 %v1378_v57 }
  0x2d   :  { %961 = vmatprep.subr.bf16.mxu1 %v1388_v60 }
  0x30   :  { %963 = vmatpush1.bf16.msra.mxu1 %v1396_v63 }
  0x31   :  { %1008 = vmatprep.subr.bf16.mxu1 %v1157_v3 }
  0xe6   :  { %v143_v1 = vpop.f32.mrb[0].mxu1 }
  0xe7   :  { %v147_v2 = vadd.f32 %v143_v1, %v72_v0  ;;  %v862_v5 = vpop.f32.mrb[1].mxu1 }
  0xe9   :  { %v148_v7 = vmul.f32 0.666, %v147_v2 }
  0xeb   :  { %1101 = vtanh.f32 %v148_v7 }
  0xf5   :  { %v1102_v9 = vpop.eup %1101 }
  0xf6   :  { %v150_v10 = vmul.f32 1.7159, %v1102_v9  ;;  %v800_v9 = vld [vmem:[%s1538_s0 + $0x4] sm:$0x3] }
  0xf8   :  { %227 = vmatmul.mubr.f32.vlgmr.msra.gmra.mrb[2].mxu1 %v150_v10 }
  0xf9   :  { %1010 = vmatpush3.bf16.msra.mxu1 %v1207_v4  ;;  %898 = vmatprep.mubr.msk.f32.mxu1 %vm1158_vm0, %v1159_v6 }
  0xfa   :  { %1011 = vmatprep.subr.bf16.mxu1 %v1157_v3 }
  0xfd   :  { %1013 = vmatpush3.bf16.msra.mxu1 %v1221_v8 }
  0xfe   :  { %1014 = vmatprep.subr.bf16.mxu1 %v1157_v3 }
 0x101   :  { %1016 = vmatpush3.bf16.msra.mxu1 %v1234_v11 }
 0x102   :  { %1017 = vmatprep.subr.bf16.mxu1 %v1157_v3 }
 0x105   :  { %1019 = vmatpush3.bf16.msra.mxu1 %v1252_v16 }
 0x106   :  { %1021 = vmatprep.subr.bf16.mxu1 %v1256_v17 }
 0x1cb   :  { %v228_v21 = vpop.f32.mrb[2].mxu1 }
 0x1cc   :  { %v229_v22 = vadd.f32 %v228_v21, %v1417_v19  ;;  %v230_v25 = vpop.f32.mrb[3].mxu1 }
 0x1cd   :  { %v231_v26 = vadd.f32 %v230_v25, %v1419_v20 }
 0x1ce   :  { %1103 = vtanh.f32 %v229_v22 }
 0x1cf   :  { %235 = vrot.lane.b32.xlu0 %v231_v26, %s1160_s28 }
 0x1d8   :  { %v1104_v27 = vpop.eup %1103 }
 0x1d9   :  { %248 = vrot.lane.b32.xlu0 %v1104_v27, %s1160_s28 }
 0x241   :  { %v236_v28 = vpop.permute.xlu0 %235 }
 0x242   :  { %v238_v31 = vadd.f32 %v236_v28, %v231_v26 }
 0x244   :  { %v795_v32 = vmul.f32 -1.442695, %v238_v31 }
 0x246   :  { %1105 = vpow2.f32 %v795_v32 }
 0x24b   :  { %v249_v40 = vpop.permute.xlu0 %248 }
 0x250   :  { %v1106_v33 = vpop.eup %1105 }
 0x251   :  { %v242_v34 = vadd.f32 1.0, %v1106_v33 }
 0x253   :  { %1107 = vrcp.f32 %v242_v34 }
 0x25d   :  { %v1108_v37 = vpop.eup %1107 }
 0x25e   :  { %v245_v38 = vsub.f32 1.0, %v1108_v37  ;;  %v251_v43 = vmul.f32 %v1108_v37, %v249_v40 }
 0x260   :  { %v246_v41 = vmul.f32 %v1104_v27, %v245_v38 }
 0x262   :  { %v252_v44 = vadd.f32 %v251_v43, %v246_v41 }
 0x264   :  { %254 = vst.msk [vmem:[%s1543_s5] sm:$0x3] %vm28_vm1, %v252_v44  ;;  %880 = vmatmul.mubr.msk.f32.vlgmr.msra.gmra.mrb[0].mxu0 %vm73_vm2, %v252_v44 }
 0x265   :  { %979 = vmatpush1.bf16.msra.mxu0 %v1272_v23  ;;  %398 = vmatprep.mubr.f32.mxu0 %v1159_v6 }
 0x266   :  { %981 = vmatprep.subr.bf16.mxu0 %v1276_v24 }
 0x269   :  { %983 = vmatpush1.bf16.msra.mxu0 %v1293_v29 }
 0x26a   :  { %985 = vmatprep.subr.bf16.mxu0 %v1297_v30 }
 0x26d   :  { %987 = vmatpush1.bf16.msra.mxu0 %v1312_v35 }
 0x26e   :  { %989 = vmatprep.subr.bf16.mxu0 %v1315_v36 }
 0x271   :  { %991 = vmatpush1.bf16.msra.mxu0 %v1324_v39 }
 0x272   :  { %993 = vmatprep.subr.bf16.mxu0 %v1334_v42 }
 0x275   :  { %995 = vmatpush1.bf16.msra.mxu0 %v1342_v45 }
 0x276   :  { %997 = vmatprep.subr.bf16.mxu0 %v1352_v48 }
 0x279   :  { %999 = vmatpush1.bf16.msra.mxu0 %v1360_v51 }
 0x27a   :  { %1001 = vmatprep.subr.bf16.mxu0 %v1370_v54 }
 0x27d   :  { %1003 = vmatpush1.bf16.msra.mxu0 %v1378_v57 }
 0x27e   :  { %1005 = vmatprep.subr.bf16.mxu0 %v1388_v60 }
 0x281   :  { %1007 = vmatpush1.bf16.msra.mxu0 %v1396_v63 }
 0x282   :  { %1052 = vmatprep.subr.bf16.mxu0 %v1157_v3 }
 0x337   :  { %v326_v47 = vpop.f32.mrb[0].mxu0 }
 0x338   :  { %v330_v49 = vadd.f32 %v796_v46, %v326_v47  ;;  %v881_v50 = vpop.f32.mrb[1].mxu0 }
 0x33a   :  { %v331_v52 = vmul.f32 0.666, %v330_v49 }
 0x33c   :  { %1109 = vtanh.f32 %v331_v52 }
 0x346   :  { %v1110_v53 = vpop.eup %1109 }
 0x347   :  { %v333_v55 = vmul.f32 1.7159, %v1110_v53 }
 0x349   :  { %399 = vmatmul.mubr.f32.vlgmr.msra.gmra.mrb[2].mxu0 %v333_v55 }
 0x34a   :  { %1054 = vmatpush3.bf16.msra.mxu0 %v1207_v4  ;;  %917 = vmatprep.mubr.msk.f32.mxu0 %vm1158_vm0, %v1159_v6 }
 0x34b   :  { %1055 = vmatprep.subr.bf16.mxu0 %v1157_v3 }
 0x34e   :  { %1057 = vmatpush3.bf16.msra.mxu0 %v1221_v8 }
 0x34f   :  { %1058 = vmatprep.subr.bf16.mxu0 %v1157_v3 }
 0x352   :  { %1060 = vmatpush3.bf16.msra.mxu0 %v1234_v11 }
 0x353   :  { %1061 = vmatprep.subr.bf16.mxu0 %v1157_v3 }
 0x356   :  { %1063 = vmatpush3.bf16.msra.mxu0 %v1252_v16 }
 0x357   :  { %1065 = vmatprep.subr.bf16.mxu0 %v1256_v17 }
 0x41c   :  { %v400_v56 = vpop.f32.mrb[2].mxu0 }
 0x41d   :  { %v401_v4 = vadd.f32 %v400_v56, %v1417_v19  ;;  %v402_v58 = vpop.f32.mrb[3].mxu0 }
 0x41e   :  { %v403_v59 = vadd.f32 %v402_v58, %v1419_v20 }
 0x41f   :  { %1111 = vtanh.f32 %v401_v4 }
 0x420   :  { %407 = vrot.lane.b32.xlu1 %v403_v59, %s1160_s28 }
 0x429   :  { %v1112_v8 = vpop.eup %1111 }
 0x42a   :  { %420 = vrot.lane.b32.xlu1 %v1112_v8, %s1160_s28 }
 0x492   :  { %v408_v61 = vpop.permute.xlu1 %407 }
 0x493   :  { %v410_v11 = vadd.f32 %v408_v61, %v403_v59 }
 0x495   :  { %v798_v62 = vmul.f32 -1.442695, %v410_v11 }
 0x497   :  { %1113 = vpow2.f32 %v798_v62 }
 0x49c   :  { %v421_v1 = vpop.permute.xlu1 %420 }
 0x4a1   :  { %v1114_v3 = vpop.eup %1113 }
 0x4a2   :  { %v414_v16 = vadd.f32 1.0, %v1114_v3 }
 0x4a4   :  { %1115 = vrcp.f32 %v414_v16 }
 0x4ae   :  { %v1116_v17 = vpop.eup %1115 }
 0x4af   :  { %v417_v0 = vsub.f32 1.0, %v1116_v17  ;;  %v423_v5 = vmul.f32 %v1116_v17, %v421_v1 }
 0x4b1   :  { %v418_v2 = vmul.f32 %v1112_v8, %v417_v0 }
 0x4b3   :  { %v424_v7 = vadd.f32 %v423_v5, %v418_v2 }
 0x4b5   :  { %799 = vst.msk [vmem:[%s1543_s5 + $0x2] sm:$0x3] %vm28_vm1, %v424_v7  ;;  %899 = vmatmul.mubr.msk.f32.vlgmr.msra.gmra.mrb[4].mxu1 %vm73_vm2, %v424_v7 }
 0x4b6   :  { %1023 = vmatpush1.bf16.msra.mxu1 %v1272_v23  ;;  %570 = vmatprep.mubr.f32.mxu1 %v1159_v6 }
 0x4b7   :  { %1025 = vmatprep.subr.bf16.mxu1 %v1276_v24 }
 0x4ba   :  { %1027 = vmatpush1.bf16.msra.mxu1 %v1293_v29 }
 0x4bb   :  { %1029 = vmatprep.subr.bf16.mxu1 %v1297_v30 }
 0x4be   :  { %1031 = vmatpush1.bf16.msra.mxu1 %v1312_v35 }
 0x4bf   :  { %1033 = vmatprep.subr.bf16.mxu1 %v1315_v36 }
 0x4c2   :  { %1035 = vmatpush1.bf16.msra.mxu1 %v1324_v39 }
 0x4c3   :  { %1037 = vmatprep.subr.bf16.mxu1 %v1334_v42 }
 0x4c6   :  { %1039 = vmatpush1.bf16.msra.mxu1 %v1342_v45 }
 0x4c7   :  { %1041 = vmatprep.subr.bf16.mxu1 %v1352_v48 }
 0x4ca   :  { %1043 = vmatpush1.bf16.msra.mxu1 %v1360_v51 }
 0x4cb   :  { %1045 = vmatprep.subr.bf16.mxu1 %v1370_v54 }
 0x4ce   :  { %1047 = vmatpush1.bf16.msra.mxu1 %v1378_v57 }
 0x4cf   :  { %1049 = vmatprep.subr.bf16.mxu1 %v1388_v60 }
 0x4d2   :  { %1051 = vmatpush1.bf16.msra.mxu1 %v1396_v63 }
 0x588   :  { %v498_v10 = vpop.f32.mrb[4].mxu1 }
 0x589   :  { %v502_v12 = vadd.f32 %v800_v9, %v498_v10  ;;  %v900_v13 = vpop.f32.mrb[5].mxu1 }
 0x58b   :  { %v503_v14 = vmul.f32 0.666, %v502_v12 }
 0x58d   :  { %1117 = vtanh.f32 %v503_v14 }
 0x597   :  { %v1118_v15 = vpop.eup %1117 }
 0x598   :  { %v505_v18 = vmul.f32 1.7159, %v1118_v15 }
 0x59a   :  { %571 = vmatmul.mubr.f32.vlgmr.msra.gmra.mrb[6].mxu1 %v505_v18 }
 0x66d   :  { %v572_v21 = vpop.f32.mrb[6].mxu1 }
 0x66e   :  { %v573_v22 = vadd.f32 %v572_v21, %v1417_v19  ;;  %v574_v25 = vpop.f32.mrb[7].mxu1 }
 0x66f   :  { %v575_v26 = vadd.f32 %v574_v25, %v1419_v20 }
 0x670   :  { %1119 = vtanh.f32 %v573_v22 }
 0x671   :  { %579 = vrot.lane.b32.xlu0 %v575_v26, %s1160_s28 }
 0x67a   :  { %v1120_v27 = vpop.eup %1119 }
 0x67b   :  { %592 = vrot.lane.b32.xlu1 %v1120_v27, %s1160_s28 }
 0x6e3   :  { %v580_v28 = vpop.permute.xlu0 %579 }
 0x6e4   :  { %v582_v31 = vadd.f32 %v580_v28, %v575_v26 }
 0x6e6   :  { %v802_v32 = vmul.f32 -1.442695, %v582_v31 }
 0x6e8   :  { %1121 = vpow2.f32 %v802_v32 }
 0x6ed   :  { %v593_v40 = vpop.permute.xlu1 %592 }
 0x6f2   :  { %v1122_v33 = vpop.eup %1121 }
 0x6f3   :  { %v586_v34 = vadd.f32 1.0, %v1122_v33 }
 0x6f5   :  { %1123 = vrcp.f32 %v586_v34 }
 0x6ff   :  { %v1124_v37 = vpop.eup %1123 }
 0x700   :  { %v589_v38 = vsub.f32 1.0, %v1124_v37  ;;  %v595_v43 = vmul.f32 %v1124_v37, %v593_v40 }
 0x702   :  { %v590_v41 = vmul.f32 %v1120_v27, %v589_v38 }
 0x704   :  { %v596_v44 = vadd.f32 %v595_v43, %v590_v41 }
 0x706   :  { %803 = vst.msk [vmem:[%s1543_s5 + $0x4] sm:$0x3] %vm28_vm1, %v596_v44  ;;  %918 = vmatmul.mubr.msk.f32.vlgmr.msra.gmra.mrb[4].mxu0 %vm73_vm2, %v596_v44 }
 0x707   :  { %1067 = vmatpush1.bf16.msra.mxu0 %v1272_v23  ;;  %742 = vmatprep.mubr.f32.mxu0 %v1159_v6  ;;  %v804_v6 = vld [vmem:[%s1538_s0 + $0x6] sm:$0x3]  ;;  %s1161_s0 = smov [#allocation3]  }
 0x708   :  { %1069 = vmatprep.subr.bf16.mxu0 %v1276_v24  ;;  %s784_s15 = sshll.u32 %s1161_s0, 4  ;;  %s785_s15 = int_to_ptr.vmem [resolvable:$true] %s784_s15 }
 0x709   :  { %s1133_s2 = scalar_lea.vmem %s785_s15, 32  ;;  %p1138_p1 = scmp.lt.s32.totalorder %s785_s15, %s785_s15 }
 0x70a   :  { %p1134_p0 = scmp.ne.s32.totalorder %s785_s15, %s1133_s2  ;;  %p1139_p2 = scmp.lt.s32.totalorder %s1133_s2, %s1133_s2 }
 0x70b   :  { %1071 = vmatpush1.bf16.msra.mxu0 %v1293_v29 }
 0x70c   :  { %1073 = vmatprep.subr.bf16.mxu0 %v1297_v30  ;;  %p1140_p3 = por %p1139_p2, %p1138_p1 }
 0x70e   :  { %p1141_p4 = pnand %p1140_p3, %p1134_p0 }
 0x70f   :  { %1075 = vmatpush1.bf16.msra.mxu0 %v1312_v35 }
 0x710   :  { %1077 = vmatprep.subr.bf16.mxu0 %v1315_v36 }
 0x713   :  { %1079 = vmatpush1.bf16.msra.mxu0 %v1324_v39 }
 0x714   :  { %1081 = vmatprep.subr.bf16.mxu0 %v1334_v42 }
 0x717   :  { %1083 = vmatpush1.bf16.msra.mxu0 %v1342_v45 }
 0x718   :  { %1085 = vmatprep.subr.bf16.mxu0 %v1352_v48 }
 0x71b   :  { %1087 = vmatpush1.bf16.msra.mxu0 %v1360_v51 }
 0x71c   :  { %1089 = vmatprep.subr.bf16.mxu0 %v1370_v54 }
 0x71f   :  { %1091 = vmatpush1.bf16.msra.mxu0 %v1378_v57 }
 0x720   :  { %1093 = vmatprep.subr.bf16.mxu0 %v1388_v60 }
 0x723   :  { %1095 = vmatpush1.bf16.msra.mxu0 %v1396_v63 }
 0x7d9   :  { %v670_v23 = vpop.f32.mrb[4].mxu0 }
 0x7da   :  { %v674_v24 = vadd.f32 %v804_v6, %v670_v23  ;;  %v919_v29 = vpop.f32.mrb[5].mxu0 }
 0x7dc   :  { %v675_v30 = vmul.f32 0.666, %v674_v24 }
 0x7de   :  { %1125 = vtanh.f32 %v675_v30 }
 0x7e8   :  { %v1126_v35 = vpop.eup %1125 }
 0x7e9   :  { %v677_v36 = vmul.f32 1.7159, %v1126_v35 }
 0x7eb   :  { %743 = vmatmul.mubr.f32.vlgmr.msra.gmra.mrb[6].mxu0 %v677_v36 }
 0x8be   :  { %v744_v39 = vpop.f32.mrb[6].mxu0 }
 0x8bf   :  { %v745_v42 = vadd.f32 %v744_v39, %v1417_v19  ;;  %v746_v45 = vpop.f32.mrb[7].mxu0 }
 0x8c0   :  { %v747_v48 = vadd.f32 %v746_v45, %v1419_v20 }
 0x8c1   :  { %1127 = vtanh.f32 %v745_v42 }
 0x8c2   :  { %751 = vrot.lane.b32.xlu0 %v747_v48, %s1160_s28 }
 0x8cb   :  { %v1128_v51 = vpop.eup %1127 }
 0x8cc   :  { %764 = vrot.lane.b32.xlu1 %v1128_v51, %s1160_s28 }
 0x934   :  { %v752_v54 = vpop.permute.xlu0 %751 }
 0x935   :  { %v754_v57 = vadd.f32 %v752_v54, %v747_v48 }
 0x937   :  { %v806_v60 = vmul.f32 -1.442695, %v754_v57 }
 0x939   :  { %1129 = vpow2.f32 %v806_v60 }
 0x93e   :  { %v765_v50 = vpop.permute.xlu1 %764 }
 0x943   :  { %v1130_v63 = vpop.eup %1129 }
 0x944   :  { %v758_v46 = vadd.f32 1.0, %v1130_v63 }
 0x946   :  { %1131 = vrcp.f32 %v758_v46 }
 0x950   :  { %v1132_v47 = vpop.eup %1131 }
 0x951   :  { %v761_v49 = vsub.f32 1.0, %v1132_v47  ;;  %v767_v20 = vmul.f32 %v1132_v47, %v765_v50 }
 0x953   :  { %v762_v19 = vmul.f32 %v1128_v51, %v761_v49 }
 0x955   :  { %v768_v52 = vadd.f32 %v767_v20, %v762_v19 }
 0x957   :  { %807 = vst.msk [vmem:[%s1543_s5 + $0x6] sm:$0x3] %vm28_vm1, %v768_v52  ;;  %771 = vst.msk [vmem:[#allocation2] sm:$0x3] %vm28_vm1, %v768_v52 }
 0x958   :  { %775 = vst.msk [vmem:[#allocation3] sm:$0x3] %vm28_vm1, %v768_v52 }
 0x959   :  { %1144 = shalt.err (!%p1141_p4)
}
 0x95a   :  { %s1145_s20 = scalar_lea.hbm %s1544_s6, 32 }
 0x95b   :  { %p1146_p5 = scmp.ne.s32.totalorder %s1544_s6, %s1145_s20  ;;  %p1149_p6 = scmp.lt.u32.totalorder %s1145_s20, %s1544_s6 }
 0x95d   :  { %p1151_p7 = pnand %p1149_p6, %p1146_p5 }
 0x95f   :  { %1154 = shalt.err (!%p1151_p7)
}
 0x960   :  { %787 = dma.vmem_to_hbm [thread:$0]  %s785_s15, 32, %s1544_s6, [#allocation4]  }
 0x961   :  { %1155 = dma.done.wait [#allocation4], 32  }
 0x962   :  { %1156 = vsyncadd [#allocation4], 4294967264 }
 0x963   :  { %793 = vsyncpa [#allocation4], 1 }

// kernel: conv_cfc_forward.13
= control target key start
LH: loop header
LB: loop body
LE: loop exit
PB: predicated region body
PF: predicated region fallthrough
CT: control target
= control target key end

     0   :  { %v193_v0 = vmov 0.0   ;;  %vm194_vm0 = vmmov 0   ;;  %s248_s1 = inlined_call_operand.vmem [shape: bf16[128,128], index: 1, kind: input, shape index: {}]   ;;  %s249_s0 = inlined_call_operand.vmem [shape: bf16[8,128], index: 0, kind: input, shape index: {}]   ;;  %s250_s2 = inlined_call_operand.vmem [shape: f32[1,128], index: 2, kind: input, shape index: {}]   ;;  %s251_s3 = inlined_call_operand.vmem [shape: f32[8,128], index: 3, kind: output, shape index: {}]  }
   0x1   :  { %163 = vmatprep.subr.bf16.mxu0 %v193_v0  ;;  %v185_v1 = vld [vmem:[%s248_s1] sm:$0xff]   ;;  %179 = vmatprep.mubr.msk.bf16.mxu0 %vm194_vm0, %v193_v0  ;;  %v186_v2 = vld [vmem:[%s248_s1 + $0x8] sm:$0xff]   ;;  %v187_v3 = vld [vmem:[%s248_s1 + $0x10] sm:$0xff]  }
   0x2   :  { %164 = vmatpush3.bf16.msra.mxu0 %v185_v1  ;;  %v188_v4 = vld [vmem:[%s248_s1 + $0x18] sm:$0xff]   ;;  %v189_v5 = vld [vmem:[%s248_s1 + $0x20] sm:$0xff]   ;;  %v190_v6 = vld [vmem:[%s248_s1 + $0x28] sm:$0xff]  }
   0x3   :  { %165 = vmatprep.subr.bf16.mxu0 %v193_v0  ;;  %v191_v7 = vld [vmem:[%s248_s1 + $0x30] sm:$0xff]   ;;  %v192_v8 = vld [vmem:[%s248_s1 + $0x38] sm:$0xff]   ;;  %v21_v9 = vld [vmem:[%s249_s0] sm:$0xf] }
   0x4   :  { %v153_v10 = vld [vmem:[%s250_s2] ss:$0 sm:$0xff] }
   0x6   :  { %166 = vmatpush3.bf16.msra.mxu0 %v186_v2 }
   0x7   :  { %167 = vmatprep.subr.bf16.mxu0 %v193_v0 }
   0xa   :  { %168 = vmatpush3.bf16.msra.mxu0 %v187_v3 }
   0xb   :  { %169 = vmatprep.subr.bf16.mxu0 %v193_v0 }
   0xe   :  { %170 = vmatpush3.bf16.msra.mxu0 %v188_v4 }
   0xf   :  { %171 = vmatprep.subr.bf16.mxu0 %v193_v0 }
  0x12   :  { %172 = vmatpush3.bf16.msra.mxu0 %v189_v5 }
  0x13   :  { %173 = vmatprep.subr.bf16.mxu0 %v193_v0 }
  0x16   :  { %174 = vmatpush3.bf16.msra.mxu0 %v190_v6 }
  0x17   :  { %175 = vmatprep.subr.bf16.mxu0 %v193_v0 }
  0x1a   :  { %176 = vmatpush3.bf16.msra.mxu0 %v191_v7 }
  0x1b   :  { %177 = vmatprep.subr.bf16.mxu0 %v193_v0 }
  0x1e   :  { %178 = vmatpush3.bf16.msra.mxu0 %v192_v8 }
  0x21   :  { %180 = vmatmul.mubr.bf16.vlgmr.msra.gmra.mrb[0].mxu0 %v21_v9 }
  0xf4   :  { %v120_v11 = vpop.f32.mrb[0].mxu0 }
  0xf5   :  { %v139_v12 = vadd.f32 %v153_v10, %v120_v11  ;;  %v181_v13 = vpop.f32.mrb[1].mxu0 }
  0xf6   :  { %v123_v14 = vpop.f32.mrb[2].mxu0 }
  0xf7   :  { %140 = vst [vmem:[%s251_s3] sm:$0xff] %v139_v12  ;;  %v182_v15 = vpop.f32.mrb[3].mxu0 }

</bundles_post_ra>
